<compile_context>
chip_gen: v5e
topology: v5e:2x2
jax: 0.10.0
libtpu: 0.0.40
codegen_flags: <defaults>
</compile_context>

<pallas_src>
import math

import jax
import jax.numpy as jnp
import numpy as np
from jax import lax
from jax.experimental import pallas as pl
from jax.experimental.pallas import tpu as pltpu

MAX_BLOCK = 4          # max_block_size -> block sizes (1,0),(2,0),(3,0),(4,0)
DS = 4                 # downsample_factor
NUM_BLOCKS = MAX_BLOCK
BLOCK_MULT = 12        # lcm(1,2,3,4)
PAD = MAX_BLOCK - 1    # shift range needed by block pooling / anti-causal conv
NSHIFT = 2 * PAD + 1   # shifts delta in [-3, 3]
HALO = 8               # sublane-aligned halo (>= PAD) for staging scratches


def gbst_kernel(x_ref, waug_ref, convb_ref, sbias_ref, poolw_ref, out_ref,
                xstage_ref, cpad_ref, xbuf_ref):
    """One grid step processes Bt sequences.

    x_ref     : (Bt, n, d)          bf16 embedded tokens
    waug_ref  : (4d, 2d)            bf16; [:, :d] folded Conv1d weight,
                                    [:, d] = wcat @ score_w, rest zero
    convb_ref : (1, d)              f32 Conv1d bias
    sbias_ref : (1, 1)              f32 conv_b @ score_w + score_b
    poolw_ref : (Bt*n, 28)          f32 per-position block mean-pool weights
    out_ref   : (Bt, n//DS, d)      f32
    xstage_ref: (Bt*(n+HALO), d)    bf16 scratch, per-sequence end-zero-padded
    cpad_ref  : (Bt*n + 2*HALO, d)  f32 scratch, conv with zero halos
    xbuf_ref  : (Bt*n, d)           f32 scratch, weighted sum (strided reads)
    """
    Bt, n, d = x_ref.shape
    NP = n + HALO
    M = Bt * n

    # ---- stage input with per-sequence zero tails (conv reads x[i+k], k<4) ----
    for b in range(Bt):
        xstage_ref[pl.ds(b * NP, n), :] = x_ref[b]
        xstage_ref[pl.ds(b * NP + n, HALO), :] = jnp.zeros((HALO, d),
                                                           xstage_ref.dtype)

    # ---- fused Conv1d + score projection: one bf16 MXU matmul, K=4d, N=2d ----
    xcat = jnp.concatenate(
        [jnp.concatenate(
            [xstage_ref[pl.ds(b * NP + k, n), :] for k in range(MAX_BLOCK)],
            axis=1)
         for b in range(Bt)], axis=0)                                # (M, 4d)
    out2 = jnp.dot(xcat, waug_ref[...],
                   preferred_element_type=jnp.float32)               # (M, 2d)
    conv = out2[:, :d] + convb_ref[...]                              # (M, d)
    spre = out2[:, d:d + 1] + sbias_ref[...]                         # (M, 1)

    # ---- stage conv with zero halos for shifted (+-3) reads (halos only) ----
    cpad_ref[pl.ds(0, HALO), :] = jnp.zeros((HALO, d), jnp.float32)
    cpad_ref[pl.ds(HALO, M), :] = conv
    cpad_ref[pl.ds(HALO + M, HALO), :] = jnp.zeros((HALO, d), jnp.float32)

    # ---- block scores via linearity: pool the projected score column.
    # scores_s(i) = pool_s(conv @ sw)(i) + conv_b@sw + score_b; pooling
    # weights sum to 1 so both biases were pre-folded into spre.
    def shift_col(v, delta):          # v[i] -> v[i + delta], zero-filled
        if delta == 0:
            return v
        if delta > 0:
            return jnp.concatenate(
                [v[delta:, :], jnp.zeros((delta, 1), jnp.float32)], axis=0)
        return jnp.concatenate(
            [jnp.zeros((-delta, 1), jnp.float32), v[:delta, :]], axis=0)

    score_cols = []
    for s in range(1, MAX_BLOCK + 1):
        acc = None
        for delta in range(-(s - 1), s):
            col = (s - 1) * NSHIFT + delta + PAD
            term = poolw_ref[:, col:col + 1] * shift_col(spre, delta)
            acc = term if acc is None else acc + term
        score_cols.append(acc)                                       # (M, 1)

    # softmax over the 4 block sizes (tiny -> exact divide)
    mx = jnp.maximum(jnp.maximum(score_cols[0], score_cols[1]),
                     jnp.maximum(score_cols[2], score_cols[3]))
    exps = [jnp.exp(c - mx) for c in score_cols]
    denom = exps[0] + exps[1] + exps[2] + exps[3]
    probs = jnp.concatenate(exps, axis=1) / denom                    # (M, 4)

    # ---- score consensus attention (per sequence, tiled over query rows) ----
    if n <= 512:
        tq = n
    else:
        tq = next(t for t in range(512, 0, -4) if n % t == 0)
    new_probs = []
    for b in range(Bt):
        pb = probs[b * n:(b + 1) * n, :]                             # (n, 4)
        chunks = []
        for q0 in range(0, n, tq):
            qs = pb[q0:q0 + tq, :]
            sim = lax.dot_general(qs, pb, (((1,), (1,)), ((), ())),
                                  preferred_element_type=jnp.float32)  # (tq,n)
            mm = jnp.max(sim, axis=-1, keepdims=True)
            ee = jnp.exp(sim - mm)
            attn = ee * pl.reciprocal(jnp.sum(ee, axis=-1, keepdims=True),
                                      approx=True)
            chunks.append(jnp.dot(attn, pb,
                                  preferred_element_type=jnp.float32))
        new_probs.append(chunks[0] if len(chunks) == 1
                         else jnp.concatenate(chunks, axis=0))
    probs = new_probs[0] if Bt == 1 else jnp.concatenate(new_probs, axis=0)

    # ---- weighted sum of block representations WITHOUT materializing them:
    # x(i) = sum_delta [ sum_s p_s(i) * w_{s,delta}(i) ] * conv(i + delta).
    # Weights are 0 whenever i+delta crosses a block (hence sequence) boundary,
    # so the flat, gap-free cpad layout and its zero halos are safe.
    x = None
    for delta in range(-PAD, PAD + 1):
        cw = None
        for s in range(1, MAX_BLOCK + 1):
            if abs(delta) <= s - 1:
                col = (s - 1) * NSHIFT + delta + PAD
                t = probs[:, s - 1:s] * poolw_ref[:, col:col + 1]
                cw = t if cw is None else cw + t
        term = cw * cpad_ref[pl.ds(HALO + delta, M), :]
        x = term if x is None else x + term                          # (M, d)

    # ---- downsample: mean over non-overlapping groups of DS positions ----
    xbuf_ref[...] = x
    acc = xbuf_ref[pl.ds(0, M // DS, stride=DS), :]
    for r in range(1, DS):
        acc = acc + xbuf_ref[pl.ds(r, M // DS, stride=DS), :]
    acc = acc * (1.0 / DS)
    no = n // DS
    for b in range(Bt):
        out_ref[b] = acc[b * no:(b + 1) * no, :]


def _choose_block_batch(B, n, d):
    # Batch-tile so the fused matmul gets a useful M while the f32 staging
    # scratches stay well under the scoped-VMEM limit.
    cap_rows = max(n, (16 * 1024 * 1024) // (64 * d))
    bt = 1
    for cand in range(1, B + 1):
        if B % cand == 0 and cand * n <= cap_rows:
            bt = cand
    return bt


def gbst_encoder_forward(ids, params, block_batch=None):
    """ids: (B, n) int32 token ids. Returns (B, n // DS, d_model) float32."""
    emb_table = params["emb"]
    d = emb_table.shape[1]
    B, n = ids.shape
    # TODO(synk): general sequence padding/masking to a multiple of
    # lcm(block sizes)=12 is not implemented; require n % 12 == 0.
    assert n % BLOCK_MULT == 0
    assert d % 128 == 0  # lane-dense layout assumed by this kernel

    bt = _choose_block_batch(B, n, d) if block_batch is None else block_batch
    assert B % bt == 0
    M = bt * n
    n_out = n // DS

    # Embedding gather stays in XLA; MXU operands go to bf16 (f32 accumulate).
    x = emb_table[ids].astype(jnp.bfloat16)                          # (B, n, d)

    # Conv1d weight folded to (4d, d); score Linear folded in as one extra
    # column via linearity of mean pooling; zero-padded to 2d output lanes so
    # the single matmul fills a 256-wide MXU.
    wcat = jnp.transpose(params["conv_w"], (2, 1, 0)).reshape(MAX_BLOCK * d, d)
    sw = params["score_w"].reshape(d)
    wscore = wcat @ sw                                               # (4d,)
    waug = jnp.zeros((MAX_BLOCK * d, 2 * d), jnp.float32)
    waug = waug.at[:, :d].set(wcat)
    waug = waug.at[:, d].set(wscore)
    waug = waug.astype(jnp.bfloat16)

    convb = params["conv_b"].reshape(1, d).astype(jnp.float32)
    sbias = (params["conv_b"] @ sw + params["score_b"][0]).reshape(1, 1)
    sbias = sbias.astype(jnp.float32)

    # Per-position block mean-pool weights over shifts delta in [-3, 3]:
    # poolw[i, (s-1)*7 + delta + 3] = 1/s iff i and i+delta share an s-block.
    # (Only 12 distinct rows exist; shipped per-position and tiled over the
    #  bt sequences of a grid step so pooling runs on flat (bt*n, .) data.)
    idx = np.arange(n)
    poolw_n = np.zeros((n, NUM_BLOCKS * NSHIFT), np.float32)
    for s in range(1, MAX_BLOCK + 1):
        for delta in range(-(s - 1), s):
            ok = ((idx % s + delta) >= 0) & ((idx % s + delta) <= s - 1)
            poolw_n[:, (s - 1) * NSHIFT + delta + PAD] = ok.astype(np.float32) / s
    poolw = jnp.asarray(np.tile(poolw_n, (bt, 1)))                   # (bt*n, 28)

    grid = (B // bt,)
    grid_spec = pltpu.PrefetchScalarGridSpec(
        num_scalar_prefetch=0,
        grid=grid,
        in_specs=[
            pl.BlockSpec((bt, n, d), lambda g: (g, 0, 0)),
            pl.BlockSpec((MAX_BLOCK * d, 2 * d), lambda g: (0, 0)),
            pl.BlockSpec((1, d), lambda g: (0, 0)),
            pl.BlockSpec((1, 1), lambda g: (0, 0)),
            pl.BlockSpec((M, NUM_BLOCKS * NSHIFT), lambda g: (0, 0)),
        ],
        out_specs=pl.BlockSpec((bt, n_out, d), lambda g: (g, 0, 0)),
        scratch_shapes=[
            pltpu.VMEM((bt * (n + HALO), d), jnp.bfloat16),   # staged input
            pltpu.VMEM((M + 2 * HALO, d), jnp.float32),       # conv + halos
            pltpu.VMEM((M, d), jnp.float32),                  # weighted sum
        ],
    )

    # Explicit scoped-VMEM limit from the real per-step footprint (raises the
    # 16 MiB v5e default when needed; stays inside v7x's 64 MiB physical VMEM).
    est = (2 * M * d * 2 + 2 * MAX_BLOCK * d * 2 * d * 2 + 2 * M * 128 * 4
           + 2 * bt * n_out * d * 4
           + bt * (n + HALO) * d * 2 + (M + 2 * HALO) * d * 4 + M * d * 4
           + M * MAX_BLOCK * d * 2 + M * 2 * d * 4 + 8 * M * d * 4
           + bt * min(n, 512) * n * 4 * 2)
    vmem_limit = int(min(48 * 1024 * 1024, max(32 * 1024 * 1024, 2 * est)))

    steps = B // bt
    cost = pl.CostEstimate(
        flops=(2 * M * (MAX_BLOCK * d) * (2 * d)   # fused conv + score matmul
               + 16 * bt * n * n                   # consensus sim + attn@scores
               + 16 * M * d) * steps,              # pooling / weighted sum
        transcendentals=(bt * n * n + 8 * M) * steps,
        bytes_accessed=(B * n * d * 2 + B * n_out * d * 4
                        + MAX_BLOCK * d * 2 * d * 2 + M * 128 * 4),
    )

    return pl.pallas_call(
        gbst_kernel,
        out_shape=jax.ShapeDtypeStruct((B, n_out, d), jnp.float32),
        grid_spec=grid_spec,
        compiler_params=pltpu.CompilerParams(
            dimension_semantics=("parallel",),
            vmem_limit_bytes=vmem_limit),
        cost_estimate=cost,
    )(x, waug, convb, sbias, poolw)


# -------------------- numpy reference (mirrors PyTorch GBST) --------------------
def _np_softmax(x, axis):
    m = x.max(axis=axis, keepdims=True)
    e = np.exp(x - m)
    return e / e.sum(axis=axis, keepdims=True)


def gbst_ref_numpy(ids, emb_table, conv_w, conv_b, score_w, score_b):
    ids = np.asarray(ids)
    E = np.asarray(emb_table, np.float64)
    W = np.asarray(conv_w, np.float64)
    bW = np.asarray(conv_b, np.float64)
    sw = np.asarray(score_w, np.float64)[0]
    sb = float(np.asarray(score_b)[0])
    B, n = ids.shape
    d = E.shape[1]

    x = E[ids]
    xp = np.pad(x, ((0, 0), (0, MAX_BLOCK - 1), (0, 0)))
    conv = np.zeros((B, n, d))
    for k in range(MAX_BLOCK):
        conv += np.einsum('bic,oc->bio', xp[:, k:k + n, :], W[:, :, k])
    conv += bW

    brs = []
    for s in range(1, MAX_BLOCK + 1):
        br = conv.reshape(B, n // s, s, d).mean(axis=2)
        br = np.repeat(br, s, axis=1)
        brs.append(br)
    brs = np.stack(brs, axis=2)                              # (B, n, 4, d)

    scores = brs @ sw + sb                                   # (B, n, 4)
    scores = _np_softmax(scores, -1)
    sim = np.einsum('bis,bjs->bij', scores, scores)
    attn = _np_softmax(sim, -1)
    scores = np.einsum('bij,bjs->bis', attn, scores)

    x = (brs * scores[..., None]).sum(axis=2)                # (B, n, d)
    x = x.reshape(B, n // DS, DS, d).mean(axis=2)            # (B, n//DS, d)
    return x


if __name__ == "__main__":
    B, N, NTOKEN, D = 2, 24, 32, 128   # D=128 keeps every vreg lane-dense

    key = jax.random.PRNGKey(0)
    k_emb, k_cw, k_cb, k_sw, k_sb, k_ids = jax.random.split(key, 6)

    params = {
        "emb": jax.random.normal(k_emb, (NTOKEN, D), jnp.float32),
        "conv_w": jax.random.normal(k_cw, (D, D, MAX_BLOCK), jnp.float32)
                  * (1.0 / math.sqrt(D * MAX_BLOCK)),
        "conv_b": jax.random.normal(k_cb, (D,), jnp.float32) * 0.01,
        "score_w": jax.random.normal(k_sw, (1, D), jnp.float32)
                   * (1.0 / math.sqrt(D)),
        "score_b": jax.random.normal(k_sb, (1,), jnp.float32) * 0.01,
    }
    ids = jax.random.randint(k_ids, (B, N), 0, NTOKEN, dtype=jnp.int32)

    out = gbst_encoder_forward(ids, params)
    out = jax.block_until_ready(out)

    ref = gbst_ref_numpy(ids, params["emb"], params["conv_w"], params["conv_b"],
                         params["score_w"], params["score_b"])
    # bf16 MXU operands -> slightly looser tolerance than the pure-f32 kernel.
    np.testing.assert_allclose(np.asarray(out), ref, rtol=2e-2, atol=2e-2)
    print("KERNEL_OK")
</pallas_src>

<mosaic_0001>
module attributes {stable_mosaic.version = 11 : i64} {
  func.func @gbst_kernel(%arg0: i32, %arg1: memref<2x24x128xbf16, #tpu.memory_space<vmem>>, %arg2: memref<512x256xbf16, #tpu.memory_space<vmem>>, %arg3: memref<1x128xf32, #tpu.memory_space<vmem>>, %arg4: memref<1x1xf32, #tpu.memory_space<vmem>>, %arg5: memref<48x28xf32, #tpu.memory_space<vmem>>, %arg6: memref<2x6x128xf32, #tpu.memory_space<vmem>>, %arg7: memref<64x128xbf16, #tpu.memory_space<vmem>>, %arg8: memref<64x128xf32, #tpu.memory_space<vmem>>, %arg9: memref<48x128xf32, #tpu.memory_space<vmem>>) attributes {dimension_semantics = [#tpu.dimension_semantics<parallel>], iteration_bounds = array<i64: 1>, scalar_prefetch = 0 : i64, scratch_operands = 3 : i64, tpu.core_type = #tpu.core_type<tc>, window_params = [{transform_indices = @transform_0, window_bounds = array<i64: 2, 24, 128>}, {pipeline_mode = #tpu.pipeline_mode<synchronous>, transform_indices = @transform_1, window_bounds = array<i64: 512, 256>}, {pipeline_mode = #tpu.pipeline_mode<synchronous>, transform_indices = @transform_2, window_bounds = array<i64: 1, 128>}, {pipeline_mode = #tpu.pipeline_mode<synchronous>, transform_indices = @transform_3, window_bounds = array<i64: 1, 1>}, {pipeline_mode = #tpu.pipeline_mode<synchronous>, transform_indices = @transform_4, window_bounds = array<i64: 48, 28>}, {transform_indices = @transform_5, window_bounds = array<i64: 2, 6, 128>}]} {
    %c0 = arith.constant 0 : index
    %c0_0 = arith.constant 0 : index
    %c0_1 = arith.constant 0 : index
    %0 = vector.load %arg1[%c0, %c0_0, %c0_1] : memref<2x24x128xbf16, #tpu.memory_space<vmem>>, vector<1x24x128xbf16>
    %1 = vector.shape_cast %0 : vector<1x24x128xbf16> to vector<24x128xbf16>
    %c0_2 = arith.constant 0 : index
    %c0_3 = arith.constant 0 : index
    %2 = vector.load %arg7[%c0_2, %c0_3] : memref<64x128xbf16, #tpu.memory_space<vmem>>, vector<24x128xbf16>
    tpu.vector_store %arg7[%c0_2, %c0_3], %1 {strides = array<i32>} : memref<64x128xbf16, #tpu.memory_space<vmem>>, vector<24x128xbf16>,
    %cst = arith.constant 0.000000e+00 : bf16
    %3 = vector.broadcast %cst : bf16 to vector<8x128xbf16>
    %c24 = arith.constant 24 : index
    %c0_4 = arith.constant 0 : index
    %4 = vector.load %arg7[%c24, %c0_4] : memref<64x128xbf16, #tpu.memory_space<vmem>>, vector<8x128xbf16>
    tpu.vector_store %arg7[%c24, %c0_4], %3 {strides = array<i32>} : memref<64x128xbf16, #tpu.memory_space<vmem>>, vector<8x128xbf16>,
    %c1 = arith.constant 1 : index
    %c0_5 = arith.constant 0 : index
    %c0_6 = arith.constant 0 : index
    %5 = vector.load %arg1[%c1, %c0_5, %c0_6] : memref<2x24x128xbf16, #tpu.memory_space<vmem>>, vector<1x24x128xbf16>
    %6 = vector.shape_cast %5 : vector<1x24x128xbf16> to vector<24x128xbf16>
    %c32 = arith.constant 32 : index
    %c0_7 = arith.constant 0 : index
    %7 = vector.load %arg7[%c32, %c0_7] : memref<64x128xbf16, #tpu.memory_space<vmem>>, vector<24x128xbf16>
    tpu.vector_store %arg7[%c32, %c0_7], %6 {strides = array<i32>} : memref<64x128xbf16, #tpu.memory_space<vmem>>, vector<24x128xbf16>,
    %cst_8 = arith.constant 0.000000e+00 : bf16
    %8 = vector.broadcast %cst_8 : bf16 to vector<8x128xbf16>
    %c56 = arith.constant 56 : index
    %c0_9 = arith.constant 0 : index
    %9 = vector.load %arg7[%c56, %c0_9] : memref<64x128xbf16, #tpu.memory_space<vmem>>, vector<8x128xbf16>
    tpu.vector_store %arg7[%c56, %c0_9], %8 {strides = array<i32>} : memref<64x128xbf16, #tpu.memory_space<vmem>>, vector<8x128xbf16>,
    %c0_10 = arith.constant 0 : index
    %c0_11 = arith.constant 0 : index
    %10 = vector.load %arg7[%c0_10, %c0_11] : memref<64x128xbf16, #tpu.memory_space<vmem>>, vector<24x128xbf16>
    %c1_12 = arith.constant 1 : index
    %c0_13 = arith.constant 0 : index
    %11 = vector.load %arg7[%c1_12, %c0_13] : memref<64x128xbf16, #tpu.memory_space<vmem>>, vector<24x128xbf16>
    %c2 = arith.constant 2 : index
    %c0_14 = arith.constant 0 : index
    %12 = vector.load %arg7[%c2, %c0_14] : memref<64x128xbf16, #tpu.memory_space<vmem>>, vector<24x128xbf16>
    %c3 = arith.constant 3 : index
    %c0_15 = arith.constant 0 : index
    %13 = vector.load %arg7[%c3, %c0_15] : memref<64x128xbf16, #tpu.memory_space<vmem>>, vector<24x128xbf16>
    %14 = tpu.concatenate %10, %11, %12, %13 in 1 : vector<24x128xbf16>, vector<24x128xbf16>, vector<24x128xbf16>, vector<24x128xbf16> -> vector<24x512xbf16>
    %c32_16 = arith.constant 32 : index
    %c0_17 = arith.constant 0 : index
    %15 = vector.load %arg7[%c32_16, %c0_17] : memref<64x128xbf16, #tpu.memory_space<vmem>>, vector<24x128xbf16>
    %c33 = arith.constant 33 : index
    %c0_18 = arith.constant 0 : index
    %16 = vector.load %arg7[%c33, %c0_18] : memref<64x128xbf16, #tpu.memory_space<vmem>>, vector<24x128xbf16>
    %c34 = arith.constant 34 : index
    %c0_19 = arith.constant 0 : index
    %17 = vector.load %arg7[%c34, %c0_19] : memref<64x128xbf16, #tpu.memory_space<vmem>>, vector<24x128xbf16>
    %c35 = arith.constant 35 : index
    %c0_20 = arith.constant 0 : index
    %18 = vector.load %arg7[%c35, %c0_20] : memref<64x128xbf16, #tpu.memory_space<vmem>>, vector<24x128xbf16>
    %19 = tpu.concatenate %15, %16, %17, %18 in 1 : vector<24x128xbf16>, vector<24x128xbf16>, vector<24x128xbf16>, vector<24x128xbf16> -> vector<24x512xbf16>
    %20 = tpu.concatenate %14, %19 in 0 : vector<24x512xbf16>, vector<24x512xbf16> -> vector<48x512xbf16>
    %c0_21 = arith.constant 0 : index
    %c0_22 = arith.constant 0 : index
    %21 = vector.load %arg2[%c0_21, %c0_22] : memref<512x256xbf16, #tpu.memory_space<vmem>>, vector<512x256xbf16>
    %cst_23 = arith.constant dense<0.000000e+00> : vector<48x256xf32>
    %22 = tpu.matmul %20, %21, %cst_23 {dimension_numbers = #tpu.dot_dimension_numbers<[1], [0], [0], [1], [0, 0, 1, 1], [], []>} : vector<48x512xbf16>, vector<512x256xbf16>, vector<48x256xf32> -> vector<48x256xf32>
    %23 = vector.extract_strided_slice %22 {offsets = [0, 0], sizes = [48, 128], strides = [1, 1]} : vector<48x256xf32> to vector<48x128xf32>
    %c0_24 = arith.constant 0 : index
    %c0_25 = arith.constant 0 : index
    %24 = vector.load %arg3[%c0_24, %c0_25] : memref<1x128xf32, #tpu.memory_space<vmem>>, vector<1x128xf32>
    %25 = vector.broadcast %24 : vector<1x128xf32> to vector<48x128xf32>
    %26 = arith.addf %23, %25 : vector<48x128xf32>
    %27 = vector.extract_strided_slice %22 {offsets = [0, 128], sizes = [48, 1], strides = [1, 1]} : vector<48x256xf32> to vector<48x1xf32>
    %c0_26 = arith.constant 0 : index
    %c0_27 = arith.constant 0 : index
    %28 = vector.load %arg4[%c0_26, %c0_27] : memref<1x1xf32, #tpu.memory_space<vmem>>, vector<1x1xf32>
    %29 = vector.broadcast %28 : vector<1x1xf32> to vector<48x1xf32>
    %30 = arith.addf %27, %29 : vector<48x1xf32>
    %cst_28 = arith.constant 0.000000e+00 : f32
    %31 = vector.broadcast %cst_28 : f32 to vector<8x128xf32>
    %c0_29 = arith.constant 0 : index
    %c0_30 = arith.constant 0 : index
    %32 = vector.load %arg8[%c0_29, %c0_30] : memref<64x128xf32, #tpu.memory_space<vmem>>, vector<8x128xf32>
    tpu.vector_store %arg8[%c0_29, %c0_30], %31 {strides = array<i32>} : memref<64x128xf32, #tpu.memory_space<vmem>>, vector<8x128xf32>,
    %c8 = arith.constant 8 : index
    %c0_31 = arith.constant 0 : index
    %33 = vector.load %arg8[%c8, %c0_31] : memref<64x128xf32, #tpu.memory_space<vmem>>, vector<48x128xf32>
    tpu.vector_store %arg8[%c8, %c0_31], %26 {strides = array<i32>} : memref<64x128xf32, #tpu.memory_space<vmem>>, vector<48x128xf32>,
    %cst_32 = arith.constant 0.000000e+00 : f32
    %34 = vector.broadcast %cst_32 : f32 to vector<8x128xf32>
    %c56_33 = arith.constant 56 : index
    %c0_34 = arith.constant 0 : index
    %35 = vector.load %arg8[%c56_33, %c0_34] : memref<64x128xf32, #tpu.memory_space<vmem>>, vector<8x128xf32>
    tpu.vector_store %arg8[%c56_33, %c0_34], %34 {strides = array<i32>} : memref<64x128xf32, #tpu.memory_space<vmem>>, vector<8x128xf32>,
    %c0_35 = arith.constant 0 : index
    %c3_36 = arith.constant 3 : index
    %36 = vector.load %arg5[%c0_35, %c3_36] : memref<48x28xf32, #tpu.memory_space<vmem>>, vector<48x1xf32>
    %37 = arith.mulf %36, %30 : vector<48x1xf32>
    %c0_37 = arith.constant 0 : index
    %c9 = arith.constant 9 : index
    %38 = vector.load %arg5[%c0_37, %c9] : memref<48x28xf32, #tpu.memory_space<vmem>>, vector<48x1xf32>
    %cst_38 = arith.constant 0.000000e+00 : f32
    %39 = vector.broadcast %cst_38 : f32 to vector<1x1xf32>
    %40 = vector.extract_strided_slice %30 {offsets = [0, 0], sizes = [47, 1], strides = [1, 1]} : vector<48x1xf32> to vector<47x1xf32>
    %41 = tpu.concatenate %39, %40 in 0 : vector<1x1xf32>, vector<47x1xf32> -> vector<48x1xf32>
    %42 = arith.mulf %38, %41 : vector<48x1xf32>
    %c0_39 = arith.constant 0 : index
    %c10 = arith.constant 10 : index
    %43 = vector.load %arg5[%c0_39, %c10] : memref<48x28xf32, #tpu.memory_space<vmem>>, vector<48x1xf32>
    %44 = arith.mulf %43, %30 : vector<48x1xf32>
    %45 = arith.addf %42, %44 : vector<48x1xf32>
    %c0_40 = arith.constant 0 : index
    %c11 = arith.constant 11 : index
    %46 = vector.load %arg5[%c0_40, %c11] : memref<48x28xf32, #tpu.memory_space<vmem>>, vector<48x1xf32>
    %47 = vector.extract_strided_slice %30 {offsets = [1, 0], sizes = [47, 1], strides = [1, 1]} : vector<48x1xf32> to vector<47x1xf32>
    %cst_41 = arith.constant 0.000000e+00 : f32
    %48 = vector.broadcast %cst_41 : f32 to vector<1x1xf32>
    %49 = tpu.concatenate %47, %48 in 0 : vector<47x1xf32>, vector<1x1xf32> -> vector<48x1xf32>
    %50 = arith.mulf %46, %49 : vector<48x1xf32>
    %51 = arith.addf %45, %50 : vector<48x1xf32>
    %c0_42 = arith.constant 0 : index
    %c15 = arith.constant 15 : index
    %52 = vector.load %arg5[%c0_42, %c15] : memref<48x28xf32, #tpu.memory_space<vmem>>, vector<48x1xf32>
    %cst_43 = arith.constant 0.000000e+00 : f32
    %53 = vector.broadcast %cst_43 : f32 to vector<2x1xf32>
    %54 = vector.extract_strided_slice %30 {offsets = [0, 0], sizes = [46, 1], strides = [1, 1]} : vector<48x1xf32> to vector<46x1xf32>
    %55 = tpu.concatenate %53, %54 in 0 : vector<2x1xf32>, vector<46x1xf32> -> vector<48x1xf32>
    %56 = arith.mulf %52, %55 : vector<48x1xf32>
    %c0_44 = arith.constant 0 : index
    %c16 = arith.constant 16 : index
    %57 = vector.load %arg5[%c0_44, %c16] : memref<48x28xf32, #tpu.memory_space<vmem>>, vector<48x1xf32>
    %cst_45 = arith.constant 0.000000e+00 : f32
    %58 = vector.broadcast %cst_45 : f32 to vector<1x1xf32>
    %59 = vector.extract_strided_slice %30 {offsets = [0, 0], sizes = [47, 1], strides = [1, 1]} : vector<48x1xf32> to vector<47x1xf32>
    %60 = tpu.concatenate %58, %59 in 0 : vector<1x1xf32>, vector<47x1xf32> -> vector<48x1xf32>
    %61 = arith.mulf %57, %60 : vector<48x1xf32>
    %62 = arith.addf %56, %61 : vector<48x1xf32>
    %c0_46 = arith.constant 0 : index
    %c17 = arith.constant 17 : index
    %63 = vector.load %arg5[%c0_46, %c17] : memref<48x28xf32, #tpu.memory_space<vmem>>, vector<48x1xf32>
    %64 = arith.mulf %63, %30 : vector<48x1xf32>
    %65 = arith.addf %62, %64 : vector<48x1xf32>
    %c0_47 = arith.constant 0 : index
    %c18 = arith.constant 18 : index
    %66 = vector.load %arg5[%c0_47, %c18] : memref<48x28xf32, #tpu.memory_space<vmem>>, vector<48x1xf32>
    %67 = vector.extract_strided_slice %30 {offsets = [1, 0], sizes = [47, 1], strides = [1, 1]} : vector<48x1xf32> to vector<47x1xf32>
    %cst_48 = arith.constant 0.000000e+00 : f32
    %68 = vector.broadcast %cst_48 : f32 to vector<1x1xf32>
    %69 = tpu.concatenate %67, %68 in 0 : vector<47x1xf32>, vector<1x1xf32> -> vector<48x1xf32>
    %70 = arith.mulf %66, %69 : vector<48x1xf32>
    %71 = arith.addf %65, %70 : vector<48x1xf32>
    %c0_49 = arith.constant 0 : index
    %c19 = arith.constant 19 : index
    %72 = vector.load %arg5[%c0_49, %c19] : memref<48x28xf32, #tpu.memory_space<vmem>>, vector<48x1xf32>
    %73 = vector.extract_strided_slice %30 {offsets = [2, 0], sizes = [46, 1], strides = [1, 1]} : vector<48x1xf32> to vector<46x1xf32>
    %cst_50 = arith.constant 0.000000e+00 : f32
    %74 = vector.broadcast %cst_50 : f32 to vector<2x1xf32>
    %75 = tpu.concatenate %73, %74 in 0 : vector<46x1xf32>, vector<2x1xf32> -> vector<48x1xf32>
    %76 = arith.mulf %72, %75 : vector<48x1xf32>
    %77 = arith.addf %71, %76 : vector<48x1xf32>
    %c0_51 = arith.constant 0 : index
    %c21 = arith.constant 21 : index
    %78 = vector.load %arg5[%c0_51, %c21] : memref<48x28xf32, #tpu.memory_space<vmem>>, vector<48x1xf32>
    %cst_52 = arith.constant 0.000000e+00 : f32
    %79 = vector.broadcast %cst_52 : f32 to vector<3x1xf32>
    %80 = vector.extract_strided_slice %30 {offsets = [0, 0], sizes = [45, 1], strides = [1, 1]} : vector<48x1xf32> to vector<45x1xf32>
    %81 = tpu.concatenate %79, %80 in 0 : vector<3x1xf32>, vector<45x1xf32> -> vector<48x1xf32>
    %82 = arith.mulf %78, %81 : vector<48x1xf32>
    %c0_53 = arith.constant 0 : index
    %c22 = arith.constant 22 : index
    %83 = vector.load %arg5[%c0_53, %c22] : memref<48x28xf32, #tpu.memory_space<vmem>>, vector<48x1xf32>
    %cst_54 = arith.constant 0.000000e+00 : f32
    %84 = vector.broadcast %cst_54 : f32 to vector<2x1xf32>
    %85 = vector.extract_strided_slice %30 {offsets = [0, 0], sizes = [46, 1], strides = [1, 1]} : vector<48x1xf32> to vector<46x1xf32>
    %86 = tpu.concatenate %84, %85 in 0 : vector<2x1xf32>, vector<46x1xf32> -> vector<48x1xf32>
    %87 = arith.mulf %83, %86 : vector<48x1xf32>
    %88 = arith.addf %82, %87 : vector<48x1xf32>
    %c0_55 = arith.constant 0 : index
    %c23 = arith.constant 23 : index
    %89 = vector.load %arg5[%c0_55, %c23] : memref<48x28xf32, #tpu.memory_space<vmem>>, vector<48x1xf32>
    %cst_56 = arith.constant 0.000000e+00 : f32
    %90 = vector.broadcast %cst_56 : f32 to vector<1x1xf32>
    %91 = vector.extract_strided_slice %30 {offsets = [0, 0], sizes = [47, 1], strides = [1, 1]} : vector<48x1xf32> to vector<47x1xf32>
    %92 = tpu.concatenate %90, %91 in 0 : vector<1x1xf32>, vector<47x1xf32> -> vector<48x1xf32>
    %93 = arith.mulf %89, %92 : vector<48x1xf32>
    %94 = arith.addf %88, %93 : vector<48x1xf32>
    %c0_57 = arith.constant 0 : index
    %c24_58 = arith.constant 24 : index
    %95 = vector.load %arg5[%c0_57, %c24_58] : memref<48x28xf32, #tpu.memory_space<vmem>>, vector<48x1xf32>
    %96 = arith.mulf %95, %30 : vector<48x1xf32>
    %97 = arith.addf %94, %96 : vector<48x1xf32>
    %c0_59 = arith.constant 0 : index
    %c25 = arith.constant 25 : index
    %98 = vector.load %arg5[%c0_59, %c25] : memref<48x28xf32, #tpu.memory_space<vmem>>, vector<48x1xf32>
    %99 = vector.extract_strided_slice %30 {offsets = [1, 0], sizes = [47, 1], strides = [1, 1]} : vector<48x1xf32> to vector<47x1xf32>
    %cst_60 = arith.constant 0.000000e+00 : f32
    %100 = vector.broadcast %cst_60 : f32 to vector<1x1xf32>
    %101 = tpu.concatenate %99, %100 in 0 : vector<47x1xf32>, vector<1x1xf32> -> vector<48x1xf32>
    %102 = arith.mulf %98, %101 : vector<48x1xf32>
    %103 = arith.addf %97, %102 : vector<48x1xf32>
    %c0_61 = arith.constant 0 : index
    %c26 = arith.constant 26 : index
    %104 = vector.load %arg5[%c0_61, %c26] : memref<48x28xf32, #tpu.memory_space<vmem>>, vector<48x1xf32>
    %105 = vector.extract_strided_slice %30 {offsets = [2, 0], sizes = [46, 1], strides = [1, 1]} : vector<48x1xf32> to vector<46x1xf32>
    %cst_62 = arith.constant 0.000000e+00 : f32
    %106 = vector.broadcast %cst_62 : f32 to vector<2x1xf32>
    %107 = tpu.concatenate %105, %106 in 0 : vector<46x1xf32>, vector<2x1xf32> -> vector<48x1xf32>
    %108 = arith.mulf %104, %107 : vector<48x1xf32>
    %109 = arith.addf %103, %108 : vector<48x1xf32>
    %c0_63 = arith.constant 0 : index
    %c27 = arith.constant 27 : index
    %110 = vector.load %arg5[%c0_63, %c27] : memref<48x28xf32, #tpu.memory_space<vmem>>, vector<48x1xf32>
    %111 = vector.extract_strided_slice %30 {offsets = [3, 0], sizes = [45, 1], strides = [1, 1]} : vector<48x1xf32> to vector<45x1xf32>
    %cst_64 = arith.constant 0.000000e+00 : f32
    %112 = vector.broadcast %cst_64 : f32 to vector<3x1xf32>
    %113 = tpu.concatenate %111, %112 in 0 : vector<45x1xf32>, vector<3x1xf32> -> vector<48x1xf32>
    %114 = arith.mulf %110, %113 : vector<48x1xf32>
    %115 = arith.addf %109, %114 : vector<48x1xf32>
    %116 = arith.maximumf %37, %51 : vector<48x1xf32>
    %117 = arith.maximumf %77, %115 : vector<48x1xf32>
    %118 = arith.maximumf %116, %117 : vector<48x1xf32>
    %119 = arith.subf %37, %118 : vector<48x1xf32>
    %120 = math.exp %119 : vector<48x1xf32>
    %121 = arith.subf %51, %118 : vector<48x1xf32>
    %122 = math.exp %121 : vector<48x1xf32>
    %123 = arith.subf %77, %118 : vector<48x1xf32>
    %124 = math.exp %123 : vector<48x1xf32>
    %125 = arith.subf %115, %118 : vector<48x1xf32>
    %126 = math.exp %125 : vector<48x1xf32>
    %127 = arith.addf %120, %122 : vector<48x1xf32>
    %128 = arith.addf %127, %124 : vector<48x1xf32>
    %129 = arith.addf %128, %126 : vector<48x1xf32>
    %130 = tpu.concatenate %120, %122, %124, %126 in 1 : vector<48x1xf32>, vector<48x1xf32>, vector<48x1xf32>, vector<48x1xf32> -> vector<48x4xf32>
    %131 = vector.broadcast %129 : vector<48x1xf32> to vector<48x4xf32>
    %132 = arith.divf %130, %131 : vector<48x4xf32>
    %133 = vector.extract_strided_slice %132 {offsets = [0, 0], sizes = [24, 4], strides = [1, 1]} : vector<48x4xf32> to vector<24x4xf32>
    %cst_65 = arith.constant dense<0.000000e+00> : vector<24x24xf32>
    %134 = tpu.matmul %133, %133, %cst_65 {dimension_numbers = #tpu.dot_dimension_numbers<[1], [1], [0], [0], [0, 0, 1, 0], [], []>} : vector<24x4xf32>, vector<24x4xf32>, vector<24x24xf32> -> vector<24x24xf32>
    %cst_66 = arith.constant dense<0xFF800000> : vector<24xf32>
    %135 = vector.multi_reduction <maximumf>, %134, %cst_66 [1] : vector<24x24xf32> to vector<24xf32>
    %136 = vector.shape_cast %135 : vector<24xf32> to vector<24x1xf32>
    %137 = vector.broadcast %136 : vector<24x1xf32> to vector<24x24xf32>
    %138 = arith.subf %134, %137 : vector<24x24xf32>
    %139 = math.exp %138 : vector<24x24xf32>
    %cst_67 = arith.constant dense<0.000000e+00> : vector<24xf32>
    %140 = vector.multi_reduction <add>, %139, %cst_67 [1] : vector<24x24xf32> to vector<24xf32>
    %141 = vector.shape_cast %140 : vector<24xf32> to vector<24x1xf32>
    %142 = tpu.reciprocal %141 {approx = true} : vector<24x1xf32> -> vector<24x1xf32>
    %143 = vector.broadcast %142 : vector<24x1xf32> to vector<24x24xf32>
    %144 = arith.mulf %139, %143 : vector<24x24xf32>
    %cst_68 = arith.constant dense<0.000000e+00> : vector<24x4xf32>
    %145 = tpu.matmul %144, %133, %cst_68 {dimension_numbers = #tpu.dot_dimension_numbers<[1], [0], [0], [1], [0, 0, 1, 1], [], []>} : vector<24x24xf32>, vector<24x4xf32>, vector<24x4xf32> -> vector<24x4xf32>
    %146 = vector.extract_strided_slice %132 {offsets = [24, 0], sizes = [24, 4], strides = [1, 1]} : vector<48x4xf32> to vector<24x4xf32>
    %cst_69 = arith.constant dense<0.000000e+00> : vector<24x24xf32>
    %147 = tpu.matmul %146, %146, %cst_69 {dimension_numbers = #tpu.dot_dimension_numbers<[1], [1], [0], [0], [0, 0, 1, 0], [], []>} : vector<24x4xf32>, vector<24x4xf32>, vector<24x24xf32> -> vector<24x24xf32>
    %cst_70 = arith.constant dense<0xFF800000> : vector<24xf32>
    %148 = vector.multi_reduction <maximumf>, %147, %cst_70 [1] : vector<24x24xf32> to vector<24xf32>
    %149 = vector.shape_cast %148 : vector<24xf32> to vector<24x1xf32>
    %150 = vector.broadcast %149 : vector<24x1xf32> to vector<24x24xf32>
    %151 = arith.subf %147, %150 : vector<24x24xf32>
    %152 = math.exp %151 : vector<24x24xf32>
    %cst_71 = arith.constant dense<0.000000e+00> : vector<24xf32>
    %153 = vector.multi_reduction <add>, %152, %cst_71 [1] : vector<24x24xf32> to vector<24xf32>
    %154 = vector.shape_cast %153 : vector<24xf32> to vector<24x1xf32>
    %155 = tpu.reciprocal %154 {approx = true} : vector<24x1xf32> -> vector<24x1xf32>
    %156 = vector.broadcast %155 : vector<24x1xf32> to vector<24x24xf32>
    %157 = arith.mulf %152, %156 : vector<24x24xf32>
    %cst_72 = arith.constant dense<0.000000e+00> : vector<24x4xf32>
    %158 = tpu.matmul %157, %146, %cst_72 {dimension_numbers = #tpu.dot_dimension_numbers<[1], [0], [0], [1], [0, 0, 1, 1], [], []>} : vector<24x24xf32>, vector<24x4xf32>, vector<24x4xf32> -> vector<24x4xf32>
    %159 = tpu.concatenate %145, %158 in 0 : vector<24x4xf32>, vector<24x4xf32> -> vector<48x4xf32>
    %160 = vector.extract_strided_slice %159 {offsets = [0, 3], sizes = [48, 1], strides = [1, 1]} : vector<48x4xf32> to vector<48x1xf32>
    %c0_73 = arith.constant 0 : index
    %c21_74 = arith.constant 21 : index
    %161 = vector.load %arg5[%c0_73, %c21_74] : memref<48x28xf32, #tpu.memory_space<vmem>>, vector<48x1xf32>
    %162 = arith.mulf %160, %161 : vector<48x1xf32>
    %c5 = arith.constant 5 : index
    %c0_75 = arith.constant 0 : index
    %163 = vector.load %arg8[%c5, %c0_75] : memref<64x128xf32, #tpu.memory_space<vmem>>, vector<48x128xf32>
    %164 = vector.broadcast %162 : vector<48x1xf32> to vector<48x128xf32>
    %165 = arith.mulf %164, %163 : vector<48x128xf32>
    %166 = vector.extract_strided_slice %159 {offsets = [0, 2], sizes = [48, 1], strides = [1, 1]} : vector<48x4xf32> to vector<48x1xf32>
    %c0_76 = arith.constant 0 : index
    %c15_77 = arith.constant 15 : index
    %167 = vector.load %arg5[%c0_76, %c15_77] : memref<48x28xf32, #tpu.memory_space<vmem>>, vector<48x1xf32>
    %168 = arith.mulf %166, %167 : vector<48x1xf32>
    %169 = vector.extract_strided_slice %159 {offsets = [0, 3], sizes = [48, 1], strides = [1, 1]} : vector<48x4xf32> to vector<48x1xf32>
    %c0_78 = arith.constant 0 : index
    %c22_79 = arith.constant 22 : index
    %170 = vector.load %arg5[%c0_78, %c22_79] : memref<48x28xf32, #tpu.memory_space<vmem>>, vector<48x1xf32>
    %171 = arith.mulf %169, %170 : vector<48x1xf32>
    %172 = arith.addf %168, %171 : vector<48x1xf32>
    %c6 = arith.constant 6 : index
    %c0_80 = arith.constant 0 : index
    %173 = vector.load %arg8[%c6, %c0_80] : memref<64x128xf32, #tpu.memory_space<vmem>>, vector<48x128xf32>
    %174 = vector.broadcast %172 : vector<48x1xf32> to vector<48x128xf32>
    %175 = arith.mulf %174, %173 : vector<48x128xf32>
    %176 = arith.addf %165, %175 : vector<48x128xf32>
    %177 = vector.extract_strided_slice %159 {offsets = [0, 1], sizes = [48, 1], strides = [1, 1]} : vector<48x4xf32> to vector<48x1xf32>
    %c0_81 = arith.constant 0 : index
    %c9_82 = arith.constant 9 : index
    %178 = vector.load %arg5[%c0_81, %c9_82] : memref<48x28xf32, #tpu.memory_space<vmem>>, vector<48x1xf32>
    %179 = arith.mulf %177, %178 : vector<48x1xf32>
    %180 = vector.extract_strided_slice %159 {offsets = [0, 2], sizes = [48, 1], strides = [1, 1]} : vector<48x4xf32> to vector<48x1xf32>
    %c0_83 = arith.constant 0 : index
    %c16_84 = arith.constant 16 : index
    %181 = vector.load %arg5[%c0_83, %c16_84] : memref<48x28xf32, #tpu.memory_space<vmem>>, vector<48x1xf32>
    %182 = arith.mulf %180, %181 : vector<48x1xf32>
    %183 = arith.addf %179, %182 : vector<48x1xf32>
    %184 = vector.extract_strided_slice %159 {offsets = [0, 3], sizes = [48, 1], strides = [1, 1]} : vector<48x4xf32> to vector<48x1xf32>
    %c0_85 = arith.constant 0 : index
    %c23_86 = arith.constant 23 : index
    %185 = vector.load %arg5[%c0_85, %c23_86] : memref<48x28xf32, #tpu.memory_space<vmem>>, vector<48x1xf32>
    %186 = arith.mulf %184, %185 : vector<48x1xf32>
    %187 = arith.addf %183, %186 : vector<48x1xf32>
    %c7 = arith.constant 7 : index
    %c0_87 = arith.constant 0 : index
    %188 = vector.load %arg8[%c7, %c0_87] : memref<64x128xf32, #tpu.memory_space<vmem>>, vector<48x128xf32>
    %189 = vector.broadcast %187 : vector<48x1xf32> to vector<48x128xf32>
    %190 = arith.mulf %189, %188 : vector<48x128xf32>
    %191 = arith.addf %176, %190 : vector<48x128xf32>
    %192 = vector.extract_strided_slice %159 {offsets = [0, 0], sizes = [48, 1], strides = [1, 1]} : vector<48x4xf32> to vector<48x1xf32>
    %c0_88 = arith.constant 0 : index
    %c3_89 = arith.constant 3 : index
    %193 = vector.load %arg5[%c0_88, %c3_89] : memref<48x28xf32, #tpu.memory_space<vmem>>, vector<48x1xf32>
    %194 = arith.mulf %192, %193 : vector<48x1xf32>
    %195 = vector.extract_strided_slice %159 {offsets = [0, 1], sizes = [48, 1], strides = [1, 1]} : vector<48x4xf32> to vector<48x1xf32>
    %c0_90 = arith.constant 0 : index
    %c10_91 = arith.constant 10 : index
    %196 = vector.load %arg5[%c0_90, %c10_91] : memref<48x28xf32, #tpu.memory_space<vmem>>, vector<48x1xf32>
    %197 = arith.mulf %195, %196 : vector<48x1xf32>
    %198 = arith.addf %194, %197 : vector<48x1xf32>
    %199 = vector.extract_strided_slice %159 {offsets = [0, 2], sizes = [48, 1], strides = [1, 1]} : vector<48x4xf32> to vector<48x1xf32>
    %c0_92 = arith.constant 0 : index
    %c17_93 = arith.constant 17 : index
    %200 = vector.load %arg5[%c0_92, %c17_93] : memref<48x28xf32, #tpu.memory_space<vmem>>, vector<48x1xf32>
    %201 = arith.mulf %199, %200 : vector<48x1xf32>
    %202 = arith.addf %198, %201 : vector<48x1xf32>
    %203 = vector.extract_strided_slice %159 {offsets = [0, 3], sizes = [48, 1], strides = [1, 1]} : vector<48x4xf32> to vector<48x1xf32>
    %c0_94 = arith.constant 0 : index
    %c24_95 = arith.constant 24 : index
    %204 = vector.load %arg5[%c0_94, %c24_95] : memref<48x28xf32, #tpu.memory_space<vmem>>, vector<48x1xf32>
    %205 = arith.mulf %203, %204 : vector<48x1xf32>
    %206 = arith.addf %202, %205 : vector<48x1xf32>
    %c8_96 = arith.constant 8 : index
    %c0_97 = arith.constant 0 : index
    %207 = vector.load %arg8[%c8_96, %c0_97] : memref<64x128xf32, #tpu.memory_space<vmem>>, vector<48x128xf32>
    %208 = vector.broadcast %206 : vector<48x1xf32> to vector<48x128xf32>
    %209 = arith.mulf %208, %207 : vector<48x128xf32>
    %210 = arith.addf %191, %209 : vector<48x128xf32>
    %211 = vector.extract_strided_slice %159 {offsets = [0, 1], sizes = [48, 1], strides = [1, 1]} : vector<48x4xf32> to vector<48x1xf32>
    %c0_98 = arith.constant 0 : index
    %c11_99 = arith.constant 11 : index
    %212 = vector.load %arg5[%c0_98, %c11_99] : memref<48x28xf32, #tpu.memory_space<vmem>>, vector<48x1xf32>
    %213 = arith.mulf %211, %212 : vector<48x1xf32>
    %214 = vector.extract_strided_slice %159 {offsets = [0, 2], sizes = [48, 1], strides = [1, 1]} : vector<48x4xf32> to vector<48x1xf32>
    %c0_100 = arith.constant 0 : index
    %c18_101 = arith.constant 18 : index
    %215 = vector.load %arg5[%c0_100, %c18_101] : memref<48x28xf32, #tpu.memory_space<vmem>>, vector<48x1xf32>
    %216 = arith.mulf %214, %215 : vector<48x1xf32>
    %217 = arith.addf %213, %216 : vector<48x1xf32>
    %218 = vector.extract_strided_slice %159 {offsets = [0, 3], sizes = [48, 1], strides = [1, 1]} : vector<48x4xf32> to vector<48x1xf32>
    %c0_102 = arith.constant 0 : index
    %c25_103 = arith.constant 25 : index
    %219 = vector.load %arg5[%c0_102, %c25_103] : memref<48x28xf32, #tpu.memory_space<vmem>>, vector<48x1xf32>
    %220 = arith.mulf %218, %219 : vector<48x1xf32>
    %221 = arith.addf %217, %220 : vector<48x1xf32>
    %c9_104 = arith.constant 9 : index
    %c0_105 = arith.constant 0 : index
    %222 = vector.load %arg8[%c9_104, %c0_105] : memref<64x128xf32, #tpu.memory_space<vmem>>, vector<48x128xf32>
    %223 = vector.broadcast %221 : vector<48x1xf32> to vector<48x128xf32>
    %224 = arith.mulf %223, %222 : vector<48x128xf32>
    %225 = arith.addf %210, %224 : vector<48x128xf32>
    %226 = vector.extract_strided_slice %159 {offsets = [0, 2], sizes = [48, 1], strides = [1, 1]} : vector<48x4xf32> to vector<48x1xf32>
    %c0_106 = arith.constant 0 : index
    %c19_107 = arith.constant 19 : index
    %227 = vector.load %arg5[%c0_106, %c19_107] : memref<48x28xf32, #tpu.memory_space<vmem>>, vector<48x1xf32>
    %228 = arith.mulf %226, %227 : vector<48x1xf32>
    %229 = vector.extract_strided_slice %159 {offsets = [0, 3], sizes = [48, 1], strides = [1, 1]} : vector<48x4xf32> to vector<48x1xf32>
    %c0_108 = arith.constant 0 : index
    %c26_109 = arith.constant 26 : index
    %230 = vector.load %arg5[%c0_108, %c26_109] : memref<48x28xf32, #tpu.memory_space<vmem>>, vector<48x1xf32>
    %231 = arith.mulf %229, %230 : vector<48x1xf32>
    %232 = arith.addf %228, %231 : vector<48x1xf32>
    %c10_110 = arith.constant 10 : index
    %c0_111 = arith.constant 0 : index
    %233 = vector.load %arg8[%c10_110, %c0_111] : memref<64x128xf32, #tpu.memory_space<vmem>>, vector<48x128xf32>
    %234 = vector.broadcast %232 : vector<48x1xf32> to vector<48x128xf32>
    %235 = arith.mulf %234, %233 : vector<48x128xf32>
    %236 = arith.addf %225, %235 : vector<48x128xf32>
    %237 = vector.extract_strided_slice %159 {offsets = [0, 3], sizes = [48, 1], strides = [1, 1]} : vector<48x4xf32> to vector<48x1xf32>
    %c0_112 = arith.constant 0 : index
    %c27_113 = arith.constant 27 : index
    %238 = vector.load %arg5[%c0_112, %c27_113] : memref<48x28xf32, #tpu.memory_space<vmem>>, vector<48x1xf32>
    %239 = arith.mulf %237, %238 : vector<48x1xf32>
    %c11_114 = arith.constant 11 : index
    %c0_115 = arith.constant 0 : index
    %240 = vector.load %arg8[%c11_114, %c0_115] : memref<64x128xf32, #tpu.memory_space<vmem>>, vector<48x128xf32>
    %241 = vector.broadcast %239 : vector<48x1xf32> to vector<48x128xf32>
    %242 = arith.mulf %241, %240 : vector<48x128xf32>
    %243 = arith.addf %236, %242 : vector<48x128xf32>
    %c0_116 = arith.constant 0 : index
    %c0_117 = arith.constant 0 : index
    %244 = vector.load %arg9[%c0_116, %c0_117] : memref<48x128xf32, #tpu.memory_space<vmem>>, vector<48x128xf32>
    tpu.vector_store %arg9[%c0_116, %c0_117], %243 {strides = array<i32>} : memref<48x128xf32, #tpu.memory_space<vmem>>, vector<48x128xf32>,
    %c0_118 = arith.constant 0 : index
    %c0_119 = arith.constant 0 : index
    %245 = tpu.strided_load %arg9[%c0_118, %c0_119] {strides = array<i32: 4, 1>} : memref<48x128xf32, #tpu.memory_space<vmem>>, vector<12x128xf32>
    %c1_120 = arith.constant 1 : index
    %c0_121 = arith.constant 0 : index
    %246 = tpu.strided_load %arg9[%c1_120, %c0_121] {strides = array<i32: 4, 1>} : memref<48x128xf32, #tpu.memory_space<vmem>>, vector<12x128xf32>
    %247 = arith.addf %245, %246 : vector<12x128xf32>
    %c2_122 = arith.constant 2 : index
    %c0_123 = arith.constant 0 : index
    %248 = tpu.strided_load %arg9[%c2_122, %c0_123] {strides = array<i32: 4, 1>} : memref<48x128xf32, #tpu.memory_space<vmem>>, vector<12x128xf32>
    %249 = arith.addf %247, %248 : vector<12x128xf32>
    %c3_124 = arith.constant 3 : index
    %c0_125 = arith.constant 0 : index
    %250 = tpu.strided_load %arg9[%c3_124, %c0_125] {strides = array<i32: 4, 1>} : memref<48x128xf32, #tpu.memory_space<vmem>>, vector<12x128xf32>
    %251 = arith.addf %249, %250 : vector<12x128xf32>
    %cst_126 = arith.constant 2.500000e-01 : f32
    %252 = vector.broadcast %cst_126 : f32 to vector<12x128xf32>
    %253 = arith.mulf %251, %252 : vector<12x128xf32>
    %254 = vector.extract_strided_slice %253 {offsets = [0, 0], sizes = [6, 128], strides = [1, 1]} : vector<12x128xf32> to vector<6x128xf32>
    %c0_127 = arith.constant 0 : index
    %c0_128 = arith.constant 0 : index
    %c0_129 = arith.constant 0 : index
    %255 = vector.load %arg6[%c0_127, %c0_128, %c0_129] : memref<2x6x128xf32, #tpu.memory_space<vmem>>, vector<1x6x128xf32>
    %256 = vector.shape_cast %255 : vector<1x6x128xf32> to vector<6x128xf32>
    %257 = vector.shape_cast %254 : vector<6x128xf32> to vector<1x6x128xf32>
    tpu.vector_store %arg6[%c0_127, %c0_128, %c0_129], %257 {strides = array<i32>} : memref<2x6x128xf32, #tpu.memory_space<vmem>>, vector<1x6x128xf32>,
    %258 = vector.extract_strided_slice %253 {offsets = [6, 0], sizes = [6, 128], strides = [1, 1]} : vector<12x128xf32> to vector<6x128xf32>
    %c1_130 = arith.constant 1 : index
    %c0_131 = arith.constant 0 : index
    %c0_132 = arith.constant 0 : index
    %259 = vector.load %arg6[%c1_130, %c0_131, %c0_132] : memref<2x6x128xf32, #tpu.memory_space<vmem>>, vector<1x6x128xf32>
    %260 = vector.shape_cast %259 : vector<1x6x128xf32> to vector<6x128xf32>
    %261 = vector.shape_cast %258 : vector<6x128xf32> to vector<1x6x128xf32>
    tpu.vector_store %arg6[%c1_130, %c0_131, %c0_132], %261 {strides = array<i32>} : memref<2x6x128xf32, #tpu.memory_space<vmem>>, vector<1x6x128xf32>,
    return
  }
  func.func @transform_0(%arg0: i32) -> (i32, i32, i32) {
    %c0_i32 = arith.constant 0 : i32
    %c0_i32_0 = arith.constant 0 : i32
    %c0_i32_1 = arith.constant 0 : i32
    return %arg0, %c0_i32, %c0_i32_0 : i32, i32, i32
  }
  func.func @transform_1(%arg0: i32) -> (i32, i32) {
    %c0_i32 = arith.constant 0 : i32
    %c0_i32_0 = arith.constant 0 : i32
    %c0_i32_1 = arith.constant 0 : i32
    return %c0_i32, %c0_i32_0 : i32, i32
  }
  func.func @transform_2(%arg0: i32) -> (i32, i32) {
    %c0_i32 = arith.constant 0 : i32
    %c0_i32_0 = arith.constant 0 : i32
    %c0_i32_1 = arith.constant 0 : i32
    return %c0_i32, %c0_i32_0 : i32, i32
  }
  func.func @transform_3(%arg0: i32) -> (i32, i32) {
    %c0_i32 = arith.constant 0 : i32
    %c0_i32_0 = arith.constant 0 : i32
    %c0_i32_1 = arith.constant 0 : i32
    return %c0_i32, %c0_i32_0 : i32, i32
  }
  func.func @transform_4(%arg0: i32) -> (i32, i32) {
    %c0_i32 = arith.constant 0 : i32
    %c0_i32_0 = arith.constant 0 : i32
    %c0_i32_1 = arith.constant 0 : i32
    return %c0_i32, %c0_i32_0 : i32, i32
  }
  func.func @transform_5(%arg0: i32) -> (i32, i32, i32) {
    %c0_i32 = arith.constant 0 : i32
    %c0_i32_0 = arith.constant 0 : i32
    %c0_i32_1 = arith.constant 0 : i32
    return %arg0, %c0_i32, %c0_i32_0 : i32, i32, i32
  }
}

</mosaic_0001>

<bundles_post_ra>
// kernel: tpu_custom_call.1
= control target key start
LH: loop header
LB: loop body
LE: loop exit
PB: predicated region body
PF: predicated region fallthrough
CT: control target
= control target key end

     0   :  { %s6203_s0 = inlined_call_operand.vmem [shape: bf16[2,24,128], index: 0, kind: input, shape index: {}]   ;;  %s6204_s1 = inlined_call_operand.hbm [shape: bf16[512,256], index: 1, kind: input, shape index: {}]   ;;  %s6205_s2 = inlined_call_operand.vmem [shape: f32[1,128], index: 2, kind: input, shape index: {}]   ;;  %s6206_s3 = inlined_call_operand.<no memory space> [shape: f32[1,1], index: 3, kind: input, shape index: {}]   ;;  %s6207_s4 = inlined_call_operand.vmem [shape: f32[48,28], index: 4, kind: input, shape index: {}]   ;;  %s6208_s5 = inlined_call_operand.vmem [shape: f32[2,6,128], index: 5, kind: output, shape index: {}]  }
   0x1   :  { %v10_v0 = vstv %s6206_s3 }
   0x2   :  { %11 = vst [vmem:[#allocation5] sm:$0x1] %v10_v0 }
   0x3   :  { %12 = vsyncpa [#allocation7], 0  ;;  %s19_s22 = sshll.u32 %s6204_s1, 4  ;;  %s3985_s23 = smov [#allocation6]   ;;  %s20_s22 = int_to_ptr.hbm [resolvable:$true] %s19_s22 }
   0x4   :  { %s21_s24 = sshll.u32 %s3985_s23, 4  ;;  %s3986_s25 = smov 128   ;;  %s22_s24 = int_to_ptr.vmem [resolvable:$true] %s21_s24 }
   0x5   :  { %s3987_s26 = smov 8  }
   0x6   :  { %27 = dma.hbm_to_vmem [thread:$0]  %s20_s22, 8192, %s22_s24, [#allocation7], %s3986_s25, %s3986_s25, %s3987_s26  }
   0x7   :  { %3983 = dma.done.wait [#allocation7], 8192  }
   0x8   :  { %3984 = vsyncadd [#allocation7], 4294959104  ;;  %v6209_v1 = vmov 0   ;;  %v3485_v2 = vld [vmem:[#allocation6 + $0x70] sm:$0xf]  ;;  %vm92_vm0 = vcmask 1046528  }
   0x9   :  { %45 = vst [vmem:[#allocation2 + $0xc] sm:$0xf] %v6209_v1  ;;  %v3719_v3 = vld [vmem:[#allocation6 + $0x74] sm:$0xf0]  ;;  %v3549_v4 = vld [vmem:[#allocation6 + $0xf0] sm:$0xf] }
   0xa   :  { %53 = vst [vmem:[#allocation2 + $0x1c] sm:$0xf] %v6209_v1  ;;  %v3486_v5 = vor.u32 %v3719_v3, %v3485_v2  ;;  %v3735_v6 = vld [vmem:[#allocation6 + $0xf4] sm:$0xf0]  ;;  %v3613_v7 = vld [vmem:[#allocation6 + $0x170] sm:$0xf] }
   0xb   :  { %v3751_v8 = vld [vmem:[#allocation6 + $0x174] sm:$0xf0]  ;;  %v3550_v9 = vor.u32 %v3735_v6, %v3549_v4  ;;  %v3677_v11 = vld [vmem:[#allocation6 + $0x1f0] sm:$0xf]  ;;  %v3477_v13 = vld [vmem:[#allocation6 + $0x60] sm:$0xf] }
   0xc   :  { %v3614_v10 = vor.u32 %v3751_v8, %v3613_v7  ;;  %v3767_v12 = vld [vmem:[#allocation6 + $0x1f4] sm:$0xf0]  ;;  %605 = vmatpush.bf16.msra.mxu0 %v3486_v5  ;;  %v3717_v15 = vld [vmem:[#allocation6 + $0x64] sm:$0xf0]  ;;  %v3541_v16 = vld [vmem:[#allocation6 + $0xe0] sm:$0xf] }
   0xd   :  { %v3678_v14 = vor.u32 %v3767_v12, %v3677_v11  ;;  %v3733_v17 = vld [vmem:[#allocation6 + $0xe4] sm:$0xf0]  ;;  %629 = vmatpush.bf16.msra.mxu1 %v3550_v9  ;;  %v3478_v18 = vor.u32 %v3717_v15, %v3477_v13  ;;  %v3605_v20 = vld [vmem:[#allocation6 + $0x160] sm:$0xf]  ;;  %v3469_v25 = vld [vmem:[#allocation6 + $0x50] sm:$0xf] }
   0xe   :  { %653 = vmatpush.bf16.msra.mxu2 %v3614_v10  ;;  %v3542_v19 = vor.u32 %v3733_v17, %v3541_v16  ;;  %v3749_v21 = vld [vmem:[#allocation6 + $0x164] sm:$0xf0]  ;;  %v3669_v22 = vld [vmem:[#allocation6 + $0x1e0] sm:$0xf]  ;;  %v3715_v26 = vld [vmem:[#allocation6 + $0x54] sm:$0xf0] }
   0xf   :  { %677 = vmatpush.bf16.msra.mxu3 %v3678_v14  ;;  %v3606_v23 = vor.u32 %v3749_v21, %v3605_v20  ;;  %v3765_v24 = vld [vmem:[#allocation6 + $0x1e4] sm:$0xf0]  ;;  %v3533_v28 = vld [vmem:[#allocation6 + $0xd0] sm:$0xf]  ;;  %v3731_v29 = vld [vmem:[#allocation6 + $0xd4] sm:$0xf0]  ;;  %v3470_v31 = vor.u32 %v3715_v26, %v3469_v25 }
  0x10   :  { %v3670_v27 = vor.u32 %v3765_v24, %v3669_v22  ;;  %v3597_v30 = vld [vmem:[#allocation6 + $0x150] sm:$0xf]  ;;  %606 = vmatpush.bf16.msra.mxu0 %v3478_v18  ;;  %v3747_v32 = vld [vmem:[#allocation6 + $0x154] sm:$0xf0]  ;;  %v3534_v35 = vor.u32 %v3731_v29, %v3533_v28  ;;  %v3461_v37 = vld [vmem:[#allocation6 + $0x40] sm:$0xf] }
  0x11   :  { %v3661_v33 = vld [vmem:[#allocation6 + $0x1d0] sm:$0xf]  ;;  %v3763_v34 = vld [vmem:[#allocation6 + $0x1d4] sm:$0xf0]  ;;  %630 = vmatpush.bf16.msra.mxu1 %v3542_v19  ;;  %v3598_v36 = vor.u32 %v3747_v32, %v3597_v30  ;;  %v3713_v38 = vld [vmem:[#allocation6 + $0x44] sm:$0xf0] }
  0x12   :  { %654 = vmatpush.bf16.msra.mxu2 %v3606_v23  ;;  %v3525_v39 = vld [vmem:[#allocation6 + $0xc0] sm:$0xf]  ;;  %v3662_v40 = vor.u32 %v3763_v34, %v3661_v33  ;;  %v3729_v41 = vld [vmem:[#allocation6 + $0xc4] sm:$0xf0]  ;;  %v3462_v46 = vor.u32 %v3713_v38, %v3461_v37  ;;  %v3453_v49 = vld [vmem:[#allocation6 + $0x30] sm:$0xf] }
  0x13   :  { %678 = vmatpush.bf16.msra.mxu3 %v3670_v27  ;;  %v3589_v42 = vld [vmem:[#allocation6 + $0x140] sm:$0xf]  ;;  %v3745_v43 = vld [vmem:[#allocation6 + $0x144] sm:$0xf0]  ;;  %v3526_v47 = vor.u32 %v3729_v41, %v3525_v39  ;;  %v3711_v50 = vld [vmem:[#allocation6 + $0x34] sm:$0xf0] }
  0x14   :  { %v3653_v44 = vld [vmem:[#allocation6 + $0x1c0] sm:$0xf]  ;;  %v3761_v45 = vld [vmem:[#allocation6 + $0x1c4] sm:$0xf0]  ;;  %607 = vmatpush.bf16.msra.mxu0 %v3470_v31  ;;  %v3590_v48 = vor.u32 %v3745_v43, %v3589_v42  ;;  %v3517_v51 = vld [vmem:[#allocation6 + $0xb0] sm:$0xf]  ;;  %v3454_v58 = vor.u32 %v3711_v50, %v3453_v49 }
  0x15   :  { %631 = vmatpush.bf16.msra.mxu1 %v3534_v35  ;;  %v3654_v52 = vor.u32 %v3761_v45, %v3653_v44  ;;  %v3727_v53 = vld [vmem:[#allocation6 + $0xb4] sm:$0xf0]  ;;  %v3581_v54 = vld [vmem:[#allocation6 + $0x130] sm:$0xf]  ;;  %v3445_v61 = vld [vmem:[#allocation6 + $0x20] sm:$0xf] }
  0x16   :  { %655 = vmatpush.bf16.msra.mxu2 %v3598_v36  ;;  %v3743_v55 = vld [vmem:[#allocation6 + $0x134] sm:$0xf0]  ;;  %v3645_v56 = vld [vmem:[#allocation6 + $0x1b0] sm:$0xf]  ;;  %v3518_v59 = vor.u32 %v3727_v53, %v3517_v51  ;;  %v3709_v62 = vld [vmem:[#allocation6 + $0x24] sm:$0xf0] }
  0x17   :  { %679 = vmatpush.bf16.msra.mxu3 %v3662_v40  ;;  %v3759_v57 = vld [vmem:[#allocation6 + $0x1b4] sm:$0xf0]  ;;  %v3582_v60 = vor.u32 %v3743_v55, %v3581_v54  ;;  %v3509_v63 = vld [vmem:[#allocation6 + $0xa0] sm:$0xf]  ;;  %v3725_v2 = vld [vmem:[#allocation6 + $0xa4] sm:$0xf0]  ;;  %v3446_v8 = vor.u32 %v3709_v62, %v3445_v61 }
  0x18   :  { %608 = vmatpush.bf16.msra.mxu0 %v3462_v46  ;;  %v3646_v0 = vor.u32 %v3759_v57, %v3645_v56  ;;  %v3573_v3 = vld [vmem:[#allocation6 + $0x120] sm:$0xf]  ;;  %v3741_v4 = vld [vmem:[#allocation6 + $0x124] sm:$0xf0]  ;;  %v3437_v7 = vld [vmem:[#allocation6 + $0x10] sm:$0xf]  ;;  %v3510_v12 = vor.u32 %v3725_v2, %v3509_v63 }
  0x19   :  { %632 = vmatpush.bf16.msra.mxu1 %v3526_v47  ;;  %v3637_v5 = vld [vmem:[#allocation6 + $0x1a0] sm:$0xf]  ;;  %v3757_v6 = vld [vmem:[#allocation6 + $0x1a4] sm:$0xf0]  ;;  %v3707_v9 = vld [vmem:[#allocation6 + $0x14] sm:$0xf0]  ;;  %v3574_v13 = vor.u32 %v3741_v4, %v3573_v3 }
  0x1a   :  { %656 = vmatpush.bf16.msra.mxu2 %v3590_v48  ;;  %v3501_v10 = vld [vmem:[#allocation6 + $0x90] sm:$0xf]  ;;  %v3723_v11 = vld [vmem:[#allocation6 + $0x94] sm:$0xf0]  ;;  %v3638_v17 = vor.u32 %v3757_v6, %v3637_v5  ;;  %v3429_v21 = vld [vmem:[#allocation6] sm:$0xf]  ;;  %v3438_v25 = vor.u32 %v3707_v9, %v3437_v7 }
  0x1b   :  { %680 = vmatpush.bf16.msra.mxu3 %v3654_v52  ;;  %v3565_v14 = vld [vmem:[#allocation6 + $0x110] sm:$0xf]  ;;  %v3739_v15 = vld [vmem:[#allocation6 + $0x114] sm:$0xf0]  ;;  %v3705_v22 = vld [vmem:[#allocation6 + $0x4] sm:$0xf0]  ;;  %v3502_v32 = vor.u32 %v3723_v11, %v3501_v10 }
  0x1c   :  { %609 = vmatpush.bf16.msra.mxu0 %v3454_v58  ;;  %v3629_v16 = vld [vmem:[#allocation6 + $0x190] sm:$0xf]  ;;  %v3755_v18 = vld [vmem:[#allocation6 + $0x194] sm:$0xf0]  ;;  %v3422_v24 = vld [vmem:[%s6203_s0 + $0x14] sm:$0xf]  ;;  %v3566_v33 = vor.u32 %v3739_v15, %v3565_v14  ;;  %v3430_v43 = vor.u32 %v3705_v22, %v3429_v21 }
  0x1d   :  { %633 = vmatpush.bf16.msra.mxu1 %v3518_v59  ;;  %v39_v19 = vld [vmem:[%s6203_s0] sm:$0xff]   ;;  %v41_v20 = vld [vmem:[%s6203_s0 + $0x8] sm:$0xf]  ;;  %v3420_v23 = vld [vmem:[%s6203_s0 + $0xc] sm:$0xff]   ;;  %v3630_v36 = vor.u32 %v3755_v18, %v3629_v16  ;;  %52 = vst [vmem:[#allocation2 + $0x18] sm:$0xf] %v3422_v24 }
  0x1e   :  { %657 = vmatpush.bf16.msra.mxu2 %v3582_v60  ;;  %42 = vst [vmem:[#allocation2] sm:$0xff] %v39_v19   ;;  %v3493_v26 = vld [vmem:[#allocation6 + $0x80] sm:$0xf]  ;;  %v3721_v27 = vld [vmem:[#allocation6 + $0x84] sm:$0xf0]  ;;  %vm187_vm3 = vcmask 1043456  }
  0x1f   :  { %681 = vmatpush.bf16.msra.mxu3 %v3646_v0  ;;  %v3557_v28 = vld [vmem:[#allocation6 + $0x100] sm:$0xf]  ;;  %v3737_v29 = vld [vmem:[#allocation6 + $0x104] sm:$0xf0]  ;;  %44 = vst [vmem:[#allocation2 + $0x8] sm:$0xf] %v41_v20  ;;  %v3494_v47 = vor.u32 %v3721_v27, %v3493_v26 }
  0x20   :  { %610 = vmatpush.bf16.msra.mxu0 %v3446_v8  ;;  %v4083_v30 = vld [vmem:[#allocation6 + $0x180] sm:$0xf]  ;;  %v3753_v31 = vld [vmem:[#allocation6 + $0x184] sm:$0xf0]  ;;  %50 = vst [vmem:[#allocation2 + $0x10] sm:$0xff] %v3420_v23   ;;  %v3558_v48 = vor.u32 %v3737_v29, %v3557_v28  ;;  %s3991_s9 = smov 10  }
  0x21   :  { %634 = vmatpush.bf16.msra.mxu1 %v3510_v12  ;;  %v57_v34 = vld [vmem:[#allocation2 + $0xc] sm:$0x1]  ;;  %v4085_v35 = vld [vmem:[#allocation2 + $0x1c] sm:$0x1]  ;;  %v3718_v38 = vld [vmem:[#allocation6 + $0x74] sm:$0xf]  ;;  %v3622_v49 = vor.u32 %v3753_v31, %v4083_v30 }
  0x22   :  { %658 = vmatpush.bf16.msra.mxu2 %v3574_v13  ;;  %v59_v37 = vld [vmem:[#allocation2 + $0xc] sm:$0x3]  ;;  %v4087_v39 = vld [vmem:[#allocation2 + $0x1c] sm:$0x3]  ;;  %v3734_v41 = vld [vmem:[#allocation6 + $0xf4] sm:$0xf]  ;;  %v70_v54 = vunpack.c.l.b16 %v57_v34  ;;  %v143_v55 = vunpack.c.l.b16 %v4085_v35 }
  0x23   :  { %682 = vmatpush.bf16.msra.mxu3 %v3638_v17  ;;  %v3487_v40 = vld [vmem:[#allocation6 + $0x78] sm:$0xf0]  ;;  %v3750_v44 = vld [vmem:[#allocation6 + $0x174] sm:$0xf]  ;;  %vm72_vm1 = vsmask.f32 7424  ;;  %v98_v58 = vunpack.c.l.b16 %v59_v37  ;;  %v168_v6 = vunpack.c.l.b16 %v4087_v39 }
  0x24   :  { %v3551_v42 = vld [vmem:[#allocation6 + $0xf8] sm:$0xf0]  ;;  %611 = vmatpush.bf16.msra.mxu0 %v3438_v25  ;;  %v3766_v46 = vld [vmem:[#allocation6 + $0x1f4] sm:$0xf]  ;;  %v3716_v51 = vld [vmem:[#allocation6 + $0x64] sm:$0xf]  ;;  %v3490_v59 = vor.u32 %v3718_v38, %v3487_v40 }
  0x25   :  { %v3615_v45 = vld [vmem:[#allocation6 + $0x178] sm:$0xf0]  ;;  %635 = vmatpush.bf16.msra.mxu1 %v3502_v32  ;;  %v3479_v52 = vld [vmem:[#allocation6 + $0x68] sm:$0xf0]  ;;  %v3776_v56 = vld [vmem:[#allocation2] sm:$0xf0]  ;;  %v3554_v0 = vor.u32 %v3734_v41, %v3551_v42 }
  0x26   :  { %659 = vmatpush.bf16.msra.mxu2 %v3566_v33  ;;  %v3679_v50 = vld [vmem:[#allocation6 + $0x1f8] sm:$0xf0]  ;;  %v4090_v53 = vld [vmem:[#allocation2] sm:$0xff]   ;;  %v56_v60 = vld [vmem:[#allocation2 + $0x8] sm:$0xf]  ;;  %v3618_v7 = vor.u32 %v3750_v44, %v3615_v45  ;;  %v3482_v13 = vor.u32 %v3716_v51, %v3479_v52  ;;  %s3992_s10 = smov 17  }
  0x27   :  { %683 = vmatpush.bf16.msra.mxu3 %v3630_v36  ;;  %v3777_v57 = vld [vmem:[#allocation2] sm:$0xe]  ;;  %v74_v61 = vshrl.u32 %v4090_v53, 16  ;;  %v76_v62 = vshll.u32 %v4090_v53, 16  ;;  %v4095_v2 = vunpack.c.l.b16 %v56_v60  ;;  %v4097_v3 = vld [vmem:[#allocation2 + $0x10] sm:$0xff]   ;;  %v3682_v8 = vor.u32 %v3766_v46, %v3679_v50  ;;  %s3993_s11 = smov 24  }
  0x28   :  { %v3778_v63 = vor.u32 %v3777_v57, %v3776_v56  ;;  %612 = vmatpush.bf16.msra.mxu0 %v3430_v43  ;;  %vm100_vm2 = vsmask.f32 6400  ;;  %v3780_v4 = vld [vmem:[#allocation2 + $0x10] sm:$0xf0]  ;;  %v3781_v5 = vld [vmem:[#allocation2 + $0x10] sm:$0xe] }
  0x29   :  { %636 = vmatpush.bf16.msra.mxu1 %v3494_v47  ;;  %v78_v9 = vrot.slane %v76_v62, 1  ;;  %v124_v10 = vld [vmem:[#allocation2 + $0x18] sm:$0xf]  ;;  %v149_v11 = vshll.u32 %v4097_v3, 16  ;;  %v4102_v14 = vpack.c.b16 %v70_v54, %v4095_v2  ;;  %v99_v16 = vpack.c.b16 %v98_v58, %v4095_v2  ;;  %v4123_v38 = vld [vmem:[#allocation2 + $0x10] sm:$0xff]  ;;  %s3994_s12 = smov 9  }
  0x2a   :  { %660 = vmatpush.bf16.msra.mxu2 %v3558_v48  ;;  %v93_v12 = vrot.slane %v3778_v63, 1  ;;  %v142_v15 = vunpack.c.l.b16 %v124_v10  ;;  %v102_v17 = vshrl.u32 %v3778_v63, 16  ;;  %v147_v19 = vshrl.u32 %v4097_v3, 16  ;;  %v3732_v42 = vld [vmem:[#allocation6 + $0xe4] sm:$0xf]  ;;  %s3995_s13 = smov 15  }
  0x2b   :  { %684 = vmatpush.bf16.msra.mxu3 %v3622_v49  ;;  %613 = vmatmul.bf16.vlgmr.msra.gmra.mxu0 %v4090_v53  ;;  %v79_v18 = vor.u32 %v78_v9, %v74_v61  ;;  %v105_v20 = vshll.u32 %v3778_v63, 16  ;;  %v4107_v21 = vor.u32 %v3781_v5, %v3780_v4  ;;  %v81_v22 = vshll.u32 %v4102_v14, 16  ;;  %v3543_v43 = vld [vmem:[#allocation6 + $0xe8] sm:$0xf0]  ;;  %v3748_v44 = vld [vmem:[#allocation6 + $0x164] sm:$0xf] }
  0x2c   :  { %701 = vmatpush.bf16.msrb.mxu0 %v3490_v59  ;;  %v4110_v23 = vpack.c.b16 %v143_v55, %v142_v15  ;;  %v94_v24 = vrot.slane %v4102_v14, 1  ;;  %v104_v25 = vrot.slane %v102_v17, 1  ;;  %v151_v26 = vrot.slane %v149_v11, 1  ;;  %v3607_v45 = vld [vmem:[#allocation6 + $0x168] sm:$0xf0]  ;;  %s3996_s14 = smov 16  }
  0x2d   :  { %725 = vmatpush.bf16.msrb.mxu1 %v3554_v0  ;;  %v107_v27 = vrot.slane %v105_v20, 2  ;;  %v110_v28 = vshrl.u32 %v99_v16, 16  ;;  %v113_v29 = vshll.u32 %v99_v16, 16  ;;  %v4113_v30 = vrot.slane %v81_v22, 1  ;;  %v3764_v49 = vld [vmem:[#allocation6 + $0x1e4] sm:$0xf] }
  0x2e   :  { %749 = vmatpush.bf16.msrb.mxu2 %v3618_v7  ;;  %v154_v31 = vshll.u32 %v4110_v23, 16  ;;  %v4119_v32 = vsel %vm92_vm0, %v93_v12, %v94_v24  ;;  %v169_v33 = vpack.c.b16 %v168_v6, %v142_v15  ;;  %v171_v37 = vshrl.u32 %v4107_v21, 16  ;;  %v3671_v50 = vld [vmem:[#allocation6 + $0x1e8] sm:$0xf0]  ;;  %v3714_v54 = vld [vmem:[#allocation6 + $0x54] sm:$0xf] }
  0x2f   :  { %773 = vmatpush.bf16.msrb.mxu3 %v3682_v8  ;;  %661 = vmatmul.bf16.vlgmr.msra.gmra.mxu2 %v4119_v32  ;;  %v108_v34 = vor.u32 %v107_v27, %v104_v25  ;;  %v112_v35 = vrot.slane %v110_v28, 1  ;;  %v115_v36 = vrot.slane %v113_v29, 2  ;;  %v4127_v39 = vsel %vm72_vm1, %v79_v18, %v4113_v30  ;;  %v3471_v55 = vld [vmem:[#allocation6 + $0x58] sm:$0xf0]  ;;  %v3730_v60 = vld [vmem:[#allocation6 + $0xd4] sm:$0xf] }
  0x30   :  { %702 = vmatpush.bf16.msrb.mxu0 %v3482_v13  ;;  %v174_v40 = vshll.u32 %v4107_v21, 16  ;;  %v179_v41 = vshrl.u32 %v169_v33, 16  ;;  %637 = vmatmul.bf16.vlgmr.msra.gmra.mxu1 %v4127_v39  ;;  %v173_v47 = vrot.slane %v171_v37, 1  ;;  %v182_v48 = vshll.u32 %v169_v33, 16  ;;  %v3535_v61 = vld [vmem:[#allocation6 + $0xd8] sm:$0xf0] }
  0x31   :  { %v4131_v46 = vor.u32 %v115_v36, %v112_v35  ;;  %v152_v56 = vor.u32 %v151_v26, %v147_v19  ;;  %v4133_v57 = vrot.slane %v154_v31, 1  ;;  %v67_v62 = vpack.c.b16 %v4095_v2, %v4095_v2  ;;  %v3746_v4 = vld [vmem:[#allocation6 + $0x154] sm:$0xf]  ;;  %v3599_v9 = vld [vmem:[#allocation6 + $0x158] sm:$0xf0]  ;;  %s3997_s15 = smov 21  }
  0x32   :  { %v176_v51 = vrot.slane %v174_v40, 2  ;;  %v181_v52 = vrot.slane %v179_v41, 1  ;;  %v184_v59 = vrot.slane %v182_v48, 2  ;;  %v188_v63 = vrot.slane %v4123_v38, 4  ;;  %v3762_v10 = vld [vmem:[#allocation6 + $0x1d4] sm:$0xf] }
  0x33   :  { %v4137_v58 = vsel %vm100_vm2, %v108_v34, %v4131_v46  ;;  %v164_v0 = vrot.slane %v4107_v21, 1  ;;  %v165_v3 = vrot.slane %v4110_v23, 1  ;;  %v3546_v7 = vor.u32 %v3732_v42, %v3543_v43  ;;  %v3663_v11 = vld [vmem:[#allocation6 + $0x1d8] sm:$0xf0]  ;;  %v3712_v16 = vld [vmem:[#allocation6 + $0x44] sm:$0xf] }
  0x34   :  { %685 = vmatmul.bf16.vlgmr.msra.gmra.mxu3 %v4137_v58  ;;  %v177_v5 = vor.u32 %v176_v51, %v173_v47  ;;  %v4145_v6 = vor.u32 %v184_v59, %v181_v52  ;;  %v3610_v8 = vor.u32 %v3748_v44, %v3607_v45  ;;  %v85_v12 = vshrl.u32 %v4102_v14, 16  ;;  %v3463_v17 = vld [vmem:[#allocation6 + $0x48] sm:$0xf0]  ;;  %v3728_v20 = vld [vmem:[#allocation6 + $0xc4] sm:$0xf]  ;;  %s3998_s16 = smov 22  }
  0x35   :  { %v4151_v2 = vsel %vm92_vm0, %v164_v0, %v165_v3  ;;  %v3674_v13 = vor.u32 %v3764_v49, %v3671_v50  ;;  %v3474_v15 = vor.u32 %v3714_v54, %v3471_v55  ;;  %v4155_v18 = vsel %vm72_vm1, %v152_v56, %v4133_v57  ;;  %726 = vmatpush.bf16.msrb.mxu1 %v3546_v7  ;;  %v3527_v21 = vld [vmem:[#allocation6 + $0xc8] sm:$0xf0]  ;;  %v3744_v28 = vld [vmem:[#allocation6 + $0x144] sm:$0xf]  ;;  %v3710_v41 = vld [vmem:[#allocation6 + $0x34] sm:$0xf] }
  0x36   :  { %750 = vmatpush.bf16.msrb.mxu2 %v3610_v8  ;;  %v3538_v19 = vor.u32 %v3730_v60, %v3535_v61  ;;  %v4160_v22 = vsel %vm187_vm3, %v67_v62, %v188_v63  ;;  %v190_v25 = vrot.slane %v4151_v2, 4  ;;  %v3602_v26 = vor.u32 %v3746_v4, %v3599_v9  ;;  %v121_v29 = vld [vmem:[#allocation2 + $0x18] sm:$0xf]  ;;  %v3591_v34 = vld [vmem:[#allocation6 + $0x148] sm:$0xf0]  ;;  %s3999_s17 = smov 23  }
  0x37   :  { %774 = vmatpush.bf16.msrb.mxu3 %v3674_v13  ;;  %703 = vmatpush.bf16.msrb.mxu0 %v3474_v15  ;;  %v3666_v27 = vor.u32 %v3762_v10, %v3663_v11  ;;  %v4165_v31 = vsel %vm100_vm2, %v177_v5, %v4145_v6  ;;  %v3466_v33 = vor.u32 %v3712_v16, %v3463_v17  ;;  %v3760_v35 = vld [vmem:[#allocation6 + $0x1c4] sm:$0xf]  ;;  %v3655_v36 = vld [vmem:[#allocation6 + $0x1c8] sm:$0xf0]  ;;  %v189_v40 = vrot.slane %v4155_v18, 4  ;;  %s4000_s18 = smov 11  }
  0x38   :  { %v87_v37 = vor.u32 %v85_v12, %v4113_v30  ;;  %v3455_v42 = vld [vmem:[#allocation6 + $0x38] sm:$0xf0]  ;;  %v3530_v43 = vor.u32 %v3728_v20, %v3527_v21  ;;  %v133_v44 = vunpack.c.l.b16 %v121_v29  ;;  %v4175_v45 = vsel %vm187_vm3, %v94_v24, %v190_v25  ;;  %v3726_v49 = vld [vmem:[#allocation6 + $0xb4] sm:$0xf]  ;;  %v3708_v56 = vld [vmem:[#allocation6 + $0x24] sm:$0xf] }
  0x39   :  { %727 = vmatpush.bf16.msrb.mxu1 %v3538_v19  ;;  %v191_v47 = vrot.slane %v4165_v31, 4  ;;  %v3594_v30 = vor.u32 %v3744_v28, %v3591_v34  ;;  %v3658_v48 = vor.u32 %v3760_v35, %v3655_v36  ;;  %v3519_v50 = vld [vmem:[#allocation6 + $0xb8] sm:$0xf0]  ;;  %v3458_v51 = vor.u32 %v3710_v41, %v3455_v42  ;;  %v3742_v52 = vld [vmem:[#allocation6 + $0x134] sm:$0xf]  ;;  %s4001_s19 = smov 18  }
  0x3a   :  { %751 = vmatpush.bf16.msrb.mxu2 %v3602_v26  ;;  %v3583_v54 = vld [vmem:[#allocation6 + $0x138] sm:$0xf0]  ;;  %v3758_v55 = vld [vmem:[#allocation6 + $0x1b4] sm:$0xf]  ;;  %v4181_v14 = vsel %vm187_vm3, %v87_v37, %v189_v40  ;;  %v3447_v59 = vld [vmem:[#allocation6 + $0x28] sm:$0xf0]  ;;  %v135_v60 = vpack.c.b16 %v133_v44, %v133_v44  ;;  %v3522_v61 = vor.u32 %v3726_v49, %v3519_v50 }
  0x3b   :  { %618 = vmatmul.bf16.gmra.mxu0 %v4160_v22  ;;  %775 = vmatpush.bf16.msrb.mxu3 %v3666_v27  ;;  %v3647_v24 = vld [vmem:[#allocation6 + $0x1b8] sm:$0xf0]  ;;  %v158_v62 = vshrl.u32 %v4110_v23, 16  ;;  %v3586_v0 = vor.u32 %v3742_v52, %v3583_v54  ;;  %v3724_v4 = vld [vmem:[#allocation6 + $0xa4] sm:$0xf]  ;;  %v4190_v7 = vsel %vm187_vm3, %v4131_v46, %v191_v47  ;;  %v3450_v9 = vor.u32 %v3708_v56, %v3447_v59  ;;  %s4002_s20 = smov 19  }
  0x3c   :  { %704 = vmatpush.bf16.msrb.mxu0 %v3466_v33  ;;  %v3511_v5 = vld [vmem:[#allocation6 + $0xa8] sm:$0xf0]  ;;  %v3650_v8 = vor.u32 %v3758_v55, %v3647_v24  ;;  %v3740_v10 = vld [vmem:[#allocation6 + $0x124] sm:$0xf]  ;;  %v3706_v15 = vld [vmem:[#allocation6 + $0x14] sm:$0xf] }
  0x3d   :  { %728 = vmatpush.bf16.msrb.mxu1 %v3530_v43  ;;  %v3575_v11 = vld [vmem:[#allocation6 + $0x128] sm:$0xf0]  ;;  %v3756_v12 = vld [vmem:[#allocation6 + $0x1a4] sm:$0xf]  ;;  %v3439_v16 = vld [vmem:[#allocation6 + $0x18] sm:$0xf0]  ;;  %v3514_v19 = vor.u32 %v3724_v4, %v3511_v5  ;;  %v160_v34 = vor.u32 %v158_v62, %v4133_v57 }
  0x3e   :  { %752 = vmatpush.bf16.msrb.mxu2 %v3594_v30  ;;  %v3639_v13 = vld [vmem:[#allocation6 + $0x1a8] sm:$0xf0]  ;;  %v192_v17 = vrot.slane %v135_v60, 4  ;;  %v3578_v20 = vor.u32 %v3740_v10, %v3575_v11  ;;  %v3722_v21 = vld [vmem:[#allocation6 + $0x94] sm:$0xf]  ;;  %v3442_v27 = vor.u32 %v3706_v15, %v3439_v16  ;;  %v196_v43 = vrot.slane %v165_v3, 4 }
  0x3f   :  { %666 = vmatmul.bf16.gmra.mxu2 %v4175_v45  ;;  %776 = vmatpush.bf16.msrb.mxu3 %v3658_v48  ;;  %v3503_v26 = vld [vmem:[#allocation6 + $0x98] sm:$0xf0]  ;;  %v3642_v46 = vor.u32 %v3756_v12, %v3639_v13  ;;  %v3738_v28 = vld [vmem:[#allocation6 + $0x114] sm:$0xf]  ;;  %v3704_v36 = vld [vmem:[#allocation6 + $0x4] sm:$0xf] }
  0x40   :  { %642 = vmatmul.bf16.gmra.mxu1 %v4181_v14  ;;  %705 = vmatpush.bf16.msrb.mxu0 %v3458_v51  ;;  %v3567_v29 = vld [vmem:[#allocation6 + $0x118] sm:$0xf0]  ;;  %v3754_v33 = vld [vmem:[#allocation6 + $0x194] sm:$0xf]  ;;  %v3431_v37 = vld [vmem:[#allocation6 + $0x8] sm:$0xf0]  ;;  %v3506_v41 = vor.u32 %v3722_v21, %v3503_v26  ;;  %v193_v42 = vsel %vm187_vm3, %v188_v63, %v192_v17  ;;  %v197_v23 = vsel %vm187_vm3, %v190_v25, %v196_v43 }
  0x41   :  { %729 = vmatpush.bf16.msrb.mxu1 %v3522_v61  ;;  %v3631_v35 = vld [vmem:[#allocation6 + $0x198] sm:$0xf0]  ;;  %v3570_v44 = vor.u32 %v3738_v28, %v3567_v29  ;;  %v3720_v30 = vld [vmem:[#allocation6 + $0x84] sm:$0xf]  ;;  %v3495_v48 = vld [vmem:[#allocation6 + $0x88] sm:$0xf0]  ;;  %v3434_v57 = vor.u32 %v3704_v36, %v3431_v37 }
  0x42   :  { %753 = vmatpush.bf16.msrb.mxu2 %v3586_v0  ;;  %v3634_v49 = vor.u32 %v3754_v33, %v3631_v35  ;;  %v3736_v50 = vld [vmem:[#allocation6 + $0x104] sm:$0xf]  ;;  %v3559_v51 = vld [vmem:[#allocation6 + $0x108] sm:$0xf0]  ;;  %v194_v52 = vrot.slane %v160_v34, 4  ;;  %v3498_v38 = vor.u32 %v3720_v30, %v3495_v48  ;;  %v198_v3 = vrot.slane %v4145_v6, 4 }
  0x43   :  { %777 = vmatpush.bf16.msrb.mxu3 %v3650_v8  ;;  %v3752_v54 = vld [vmem:[#allocation6 + $0x184] sm:$0xf]  ;;  %v3623_v55 = vld [vmem:[#allocation6 + $0x188] sm:$0xf0]  ;;  %v3562_v63 = vor.u32 %v3736_v50, %v3559_v51  ;;  %v3989_v6 = vmov 0.0   ;;  %vm861_vm4 = vcmask 1040384  }
  0x44   :  { %690 = vmatmul.bf16.gmra.mxu3 %v4190_v7  ;;  %706 = vmatpush.bf16.msrb.mxu0 %v3450_v9  ;;  %v3626_v24 = vor.u32 %v3752_v54, %v3623_v55  ;;  %v195_v56 = vsel %vm187_vm3, %v189_v40, %v194_v52  ;;  %v199_v2 = vsel %vm187_vm3, %v191_v47, %v198_v3  ;;  %vm1023_vm5 = vcmask 1041408   ;;  %s4003_s21 = smov 25   ;;  %s4004_s24 = smov 127  }
  0x45   :  { %730 = vmatpush.bf16.msrb.mxu1 %v3514_v19  ;;  %817 = vst [vmem:[#allocation3] sm:$0xff] %v3989_v6  ;;  %vm1293_vm6 = vcmask 1042432   ;;  %vm1224_vm7 = vcmask 1045504   ;;  %s4005_s1 = smov 126   ;;  %s4006_s28 = smov 125   ;;  %vm1602_vm8 = vcmask 1044480  }
  0x46   :  { %754 = vmatpush.bf16.msrb.mxu2 %v3578_v20  ;;  %824 = vst [vmem:[#allocation3 + $0x38] sm:$0xff] %v3989_v6  ;;  %s4007_s29 = smov 124   ;;  %s4008_s8 = smov 26   ;;  %vm2043_vm9 = vcmask 7168   ;;  %vm2050_vm10 = vcmask 15360   ;;  %vm2057_vm12 = vcmask 23552  }
  0x47   :  { %778 = vmatpush.bf16.msrb.mxu3 %v3642_v46  ;;  %s4020_s22 = smov 12   ;;  %s4023_s7 = smov 113  }
  0x48   :  { %707 = vmatpush.bf16.msrb.mxu0 %v3442_v27 }
  0x49   :  { %731 = vmatpush.bf16.msrb.mxu1 %v3506_v41 }
  0x4a   :  { %755 = vmatpush.bf16.msrb.mxu2 %v3570_v44 }
  0x4b   :  { %623 = vmatmul.bf16.gmra.mxu0 %v193_v42  ;;  %779 = vmatpush.bf16.msrb.mxu3 %v3634_v49 }
  0x4c   :  { %708 = vmatpush.bf16.msrb.mxu0 %v3434_v57 }
  0x4d   :  { %732 = vmatpush.bf16.msrb.mxu1 %v3498_v38  ;;  %v4220_v38 = vld [vmem:[#allocation5] ss:$0 sm:$0xff] }
  0x4e   :  { %756 = vmatpush.bf16.msrb.mxu2 %v3562_v63 }
  0x4f   :  { %671 = vmatmul.bf16.gmra.mxu2 %v197_v23  ;;  %780 = vmatpush.bf16.msrb.mxu3 %v3626_v24 }
  0x50   :  { %647 = vmatmul.bf16.gmra.mxu1 %v195_v56 }
  0x54   :  { %695 = vmatmul.bf16.gmra.mxu3 %v199_v2 }
  0x5b   :  { %709 = vmatmul.bf16.vlgmr.msrb.gmra.mxu0 %v4090_v53 }
  0x5f   :  { %757 = vmatmul.bf16.vlgmr.msrb.gmra.mxu2 %v4119_v32 }
  0x60   :  { %733 = vmatmul.bf16.vlgmr.msrb.gmra.mxu1 %v4127_v39 }
  0x64   :  { %781 = vmatmul.bf16.vlgmr.msrb.gmra.mxu3 %v4137_v58 }
  0x6b   :  { %714 = vmatmul.bf16.gmra.mxu0 %v4160_v22  ;;  %v3867_v22 = vld [vmem:[%s6205_s2] ss:$0 sm:$0xff]  ;;  %s3990_s2 = smov 3  }
  0x6f   :  { %762 = vmatmul.bf16.gmra.mxu2 %v4175_v45 }
  0x70   :  { %738 = vmatmul.bf16.gmra.mxu1 %v4181_v14 }
  0x74   :  { %786 = vmatmul.bf16.gmra.mxu3 %v4190_v7 }
  0x7b   :  { %719 = vmatmul.bf16.gmra.mxu0 %v193_v42 }
  0x7f   :  { %767 = vmatmul.bf16.gmra.mxu2 %v197_v23 }
  0x80   :  { %743 = vmatmul.bf16.gmra.mxu1 %v195_v56 }
  0x84   :  { %791 = vmatmul.bf16.gmra.mxu3 %v199_v2 }
  0xa8   :  { %v614_v53 = vpop.f32.mrf.mxu0 }
  0xad   :  { %v638_v32 = vpop.f32.mrf.mxu1 }
  0xae   :  { %v639_v39 = vadd.f32 %v638_v32, %v614_v53 }
  0xb0   :  { %v616_v18 = vpop.f32.mrf.mxu0 }
  0xb2   :  { %v662_v58 = vpop.f32.mrf.mxu2 }
  0xb3   :  { %v663_v25 = vadd.f32 %v662_v58, %v639_v39 }
  0xb5   :  { %v640_v31 = vpop.f32.mrf.mxu1 }
  0xb6   :  { %v641_v59 = vadd.f32 %v640_v31, %v616_v18 }
  0xb7   :  { %v686_v40 = vpop.f32.mrf.mxu3 }
  0xb8   :  { %v687_v45 = vadd.f32 %v686_v40, %v663_v25  ;;  %v619_v47 = vpop.f32.mrf.mxu0 }
  0xba   :  { %v801_v14 = vadd.f32 %v3867_v22, %v687_v45  ;;  %v664_v60 = vpop.f32.mrf.mxu2 }
  0xbb   :  { %v665_v61 = vadd.f32 %v664_v60, %v641_v59 }
  0xbc   :  { %818 = vst [vmem:[#allocation3 + $0x8] sm:$0xff] %v801_v14 }
  0xbd   :  { %v643_v62 = vpop.f32.mrf.mxu1 }
  0xbe   :  { %v644_v5 = vadd.f32 %v643_v62, %v619_v47 }
  0xbf   :  { %v688_v0 = vpop.f32.mrf.mxu3 }
  0xc0   :  { %v689_v4 = vadd.f32 %v688_v0, %v665_v61  ;;  %v621_v7 = vpop.f32.mrf.mxu0 }
  0xc2   :  { %v802_v8 = vadd.f32 %v3867_v22, %v689_v4  ;;  %v667_v9 = vpop.f32.mrf.mxu2 }
  0xc3   :  { %v668_v10 = vadd.f32 %v667_v9, %v644_v5 }
  0xc4   :  { %819 = vst [vmem:[#allocation3 + $0x10] sm:$0xff] %v802_v8 }
  0xc5   :  { %v645_v11 = vpop.f32.mrf.mxu1 }
  0xc6   :  { %v646_v17 = vadd.f32 %v645_v11, %v621_v7 }
  0xc7   :  { %v691_v12 = vpop.f32.mrf.mxu3 }
  0xc8   :  { %v692_v13 = vadd.f32 %v691_v12, %v668_v10  ;;  %v624_v15 = vpop.f32.mrf.mxu0 }
  0xca   :  { %v803_v16 = vadd.f32 %v3867_v22, %v692_v13  ;;  %v669_v19 = vpop.f32.mrf.mxu2 }
  0xcb   :  { %v670_v20 = vadd.f32 %v669_v19, %v646_v17 }
  0xcc   :  { %820 = vst [vmem:[#allocation3 + $0x18] sm:$0xff] %v803_v16 }
  0xcd   :  { %v648_v21 = vpop.f32.mrf.mxu1 }
  0xce   :  { %v649_v27 = vadd.f32 %v648_v21, %v624_v15 }
  0xcf   :  { %v693_v26 = vpop.f32.mrf.mxu3 }
  0xd0   :  { %v694_v46 = vadd.f32 %v693_v26, %v670_v20  ;;  %v626_v28 = vpop.f32.mrf.mxu0 }
  0xd2   :  { %v804_v29 = vadd.f32 %v3867_v22, %v694_v46  ;;  %v672_v33 = vpop.f32.mrf.mxu2 }
  0xd3   :  { %v673_v34 = vadd.f32 %v672_v33, %v649_v27 }
  0xd4   :  { %821 = vst [vmem:[#allocation3 + $0x20] sm:$0xff] %v804_v29 }
  0xd5   :  { %v650_v35 = vpop.f32.mrf.mxu1 }
  0xd6   :  { %v651_v42 = vadd.f32 %v650_v35, %v626_v28 }
  0xd7   :  { %v696_v36 = vpop.f32.mrf.mxu3 }
  0xd8   :  { %v697_v37 = vadd.f32 %v696_v36, %v673_v34  ;;  %v710_v44 = vpop.f32.mrf.mxu0 }
  0xda   :  { %v805_v41 = vadd.f32 %v3867_v22, %v697_v37  ;;  %v674_v43 = vpop.f32.mrf.mxu2 }
  0xdb   :  { %v675_v30 = vadd.f32 %v674_v43, %v651_v42 }
  0xdc   :  { %822 = vst [vmem:[#allocation3 + $0x28] sm:$0xff] %v805_v41 }
  0xdd   :  { %v734_v48 = vpop.f32.mrf.mxu1 }
  0xde   :  { %v735_v50 = vadd.f32 %v734_v48, %v710_v44 }
  0xdf   :  { %v698_v49 = vpop.f32.mrf.mxu3 }
  0xe0   :  { %v699_v57 = vadd.f32 %v698_v49, %v675_v30  ;;  %v712_v55 = vpop.f32.mrf.mxu0 }
  0xe2   :  { %v806_v51 = vadd.f32 %v3867_v22, %v699_v57  ;;  %v758_v52 = vpop.f32.mrf.mxu2 }
  0xe3   :  { %v759_v54 = vadd.f32 %v758_v52, %v735_v50 }
  0xe4   :  { %823 = vst [vmem:[#allocation3 + $0x30] sm:$0xff] %v806_v51 }
  0xe5   :  { %v736_v23 = vpop.f32.mrf.mxu1 }
  0xe6   :  { %v737_v56 = vadd.f32 %v736_v23, %v712_v55 }
  0xe7   :  { %v782_v63 = vpop.f32.mrf.mxu3 }
  0xe8   :  { %v783_v3 = vadd.f32 %v782_v63, %v759_v54  ;;  %v715_v53 = vpop.f32.mrf.mxu0 }
  0xea   :  { %v4223_v24 = vadd.f32 %v4220_v38, %v783_v3  ;;  %v760_v2 = vpop.f32.mrf.mxu2 }
  0xeb   :  { %v761_v6 = vadd.f32 %v760_v2, %v737_v56 }
  0xec   :  { %837 = vrot.lane.b32.xlu0 %v4223_v24, %s3990_s2  ;;  %v862_v59 = vrot.slane %v4223_v24, 7  ;;  %v1024_v4 = vrot.slane %v4223_v24, 6  ;;  %v1294_v12 = vrot.slane %v4223_v24, 5  ;;  %v955_v36 = vrot.slane %v4223_v24, 1 }
  0xed   :  { %v739_v32 = vpop.f32.mrf.mxu1  ;;  %v1225_v57 = vrot.slane %v4223_v24, 2 }
  0xee   :  { %v740_v58 = vadd.f32 %v739_v32, %v715_v53  ;;  %v874_v61 = vsel %vm861_vm4, 0.0, %v862_v59  ;;  %v1036_v8 = vsel %vm1023_vm5, 0.0, %v1024_v4  ;;  %v1306_v15 = vsel %vm1293_vm6, 0.0, %v1294_v12 }
  0xef   :  { %v784_v39 = vpop.f32.mrf.mxu3 }
  0xf0   :  { %v785_v18 = vadd.f32 %v784_v39, %v761_v6  ;;  %v717_v19 = vpop.f32.mrf.mxu0 }
  0xf2   :  { %v4228_v25 = vadd.f32 %v4220_v38, %v785_v18  ;;  %v763_v22 = vpop.f32.mrf.mxu2 }
  0xf3   :  { %v764_v31 = vadd.f32 %v763_v22, %v740_v58 }
  0xf4   :  { %902 = vrot.lane.b32.xlu1 %v4228_v25, %s3991_s9  ;;  %900 = vrot.lane.b32.xlu0 %v4223_v24, %s3991_s9  ;;  %v863_v14 = vrot.slane %v4228_v25, 7  ;;  %v1025_v0 = vrot.slane %v4228_v25, 6  ;;  %v1295_v11 = vrot.slane %v4228_v25, 5  ;;  %v956_v35 = vrot.slane %v4228_v25, 1 }
  0xf5   :  { %v741_v20 = vpop.f32.mrf.mxu1  ;;  %v1226_v30 = vrot.slane %v4228_v25, 2 }
  0xf6   :  { %v864_v60 = vsel %vm861_vm4, %v862_v59, %v863_v14  ;;  %v1026_v7 = vsel %vm1023_vm5, %v1024_v4, %v1025_v0  ;;  %v1296_v13 = vsel %vm1293_vm6, %v1294_v12, %v1295_v11  ;;  %v742_v21 = vadd.f32 %v741_v20, %v717_v19 }
  0xf7   :  { %v787_v40 = vpop.f32.mrf.mxu3  ;;  %v957_v42 = vsel %vm92_vm0, %v955_v36, %v956_v35  ;;  %v4330_v52 = vsel %vm1224_vm7, %v1225_v57, %v1226_v30 }
  0xf8   :  { %v788_v45 = vadd.f32 %v787_v40, %v764_v31  ;;  %v720_v48 = vpop.f32.mrf.mxu0 }
  0xfa   :  { %v4235_v47 = vadd.f32 %v4220_v38, %v788_v45  ;;  %v765_v26 = vpop.f32.mrf.mxu2 }
  0xfb   :  { %v766_v46 = vadd.f32 %v765_v26, %v742_v21 }
  0xfc   :  { %904 = vrot.lane.b32.xlu2 %v4235_v47, %s3991_s9  ;;  %1118 = vrot.lane.b32.xlu1 %v4228_v25, %s3992_s10  ;;  %v865_v62 = vrot.slane %v4235_v47, 7  ;;  %v1027_v9 = vrot.slane %v4235_v47, 6  ;;  %v1297_v16 = vrot.slane %v4235_v47, 5  ;;  %v958_v33 = vrot.slane %v4235_v47, 1 }
  0xfd   :  { %1116 = vrot.lane.b32.xlu0 %v4223_v24, %s3992_s10  ;;  %v1228_v43 = vrot.slane %v4235_v47, 2  ;;  %v744_v49 = vpop.f32.mrf.mxu1 }
  0xfe   :  { %v866_v5 = vsel %vm861_vm4, %v863_v14, %v865_v62  ;;  %v1028_v10 = vsel %vm1023_vm5, %v1025_v0, %v1027_v9  ;;  %v1298_v17 = vsel %vm1293_vm6, %v1295_v11, %v1297_v16  ;;  %v959_v41 = vsel %vm92_vm0, %v956_v35, %v958_v33 }
  0xff   :  { %v789_v27 = vpop.f32.mrf.mxu3  ;;  %v4325_v51 = vsel %vm1224_vm7, %v1226_v30, %v1228_v43  ;;  %v745_v55 = vadd.f32 %v744_v49, %v720_v48 }
 0x100   :  { %v790_v28 = vadd.f32 %v789_v27, %v766_v46  ;;  %v722_v3 = vpop.f32.mrf.mxu0 }
 0x102   :  { %v4293_v29 = vadd.f32 %v4220_v38, %v790_v28  ;;  %v768_v54 = vpop.f32.mrf.mxu2 }
 0x103   :  { %v769_v2 = vadd.f32 %v768_v54, %v745_v55 }
 0x104   :  { %1120 = vrot.lane.b32.xlu2 %v4235_v47, %s3992_s10  ;;  %1442 = vrot.lane.b32.xlu1 %v4228_v25, %s3993_s11  ;;  %v960_v34 = vrot.slane %v4293_v29, 1  ;;  %v1230_v44 = vrot.slane %v4293_v29, 2 }
 0x105   :  { %1440 = vrot.lane.b32.xlu0 %v4223_v24, %s3993_s11  ;;  %v746_v56 = vpop.f32.mrf.mxu1 }
 0x106   :  { %v961_v37 = vsel %vm92_vm0, %v958_v33, %v960_v34  ;;  %v4322_v50 = vsel %vm1224_vm7, %v1228_v43, %v1230_v44  ;;  %v747_v6 = vadd.f32 %v746_v56, %v722_v3 }
 0x107   :  { %v792_v63 = vpop.f32.mrf.mxu3 }
 0x108   :  { %v793_v32 = vadd.f32 %v792_v63, %v769_v2 }
 0x10a   :  { %v770_v53 = vpop.f32.mrf.mxu2  ;;  %v4346_v31 = vadd.f32 %v4220_v38, %v793_v32 }
 0x10b   :  { %v771_v58 = vadd.f32 %v770_v53, %v747_v6 }
 0x10c   :  { %1444 = vrot.lane.b32.xlu2 %v4235_v47, %s3993_s11  ;;  %878 = vrot.lane.b32.xlu1 %v864_v60, %s3994_s12  ;;  %v1031_v27 = vrot.slane %v4346_v31, 6  ;;  %v1301_v54 = vrot.slane %v4346_v31, 5  ;;  %v962_v32 = vrot.slane %v4346_v31, 1 }
 0x10d   :  { %876 = vrot.lane.b32.xlu0 %v874_v61, %s3994_s12 }
 0x10f   :  { %v794_v22 = vpop.f32.mrf.mxu3 }
 0x110   :  { %v795_v40 = vadd.f32 %v794_v22, %v771_v58  ;;  %v963_v58 = vsel %vm92_vm0, %v960_v34, %v962_v32 }
 0x114   :  { %880 = vrot.lane.b32.xlu2 %v866_v5, %s3994_s12  ;;  %1040 = vrot.lane.b32.xlu1 %v1026_v7, %s3995_s13 }
 0x115   :  { %1038 = vrot.lane.b32.xlu0 %v1036_v8, %s3995_s13 }
 0x11c   :  { %1042 = vrot.lane.b32.xlu2 %v1028_v10, %s3995_s13  ;;  %1064 = vrot.lane.b32.xlu1 %v864_v60, %s3996_s14 }
 0x11d   :  { %1062 = vrot.lane.b32.xlu0 %v874_v61, %s3996_s14 }
 0x124   :  { %1066 = vrot.lane.b32.xlu2 %v866_v5, %s3996_s14  ;;  %1310 = vrot.lane.b32.xlu1 %v1296_v13, %s3997_s15 }
 0x125   :  { %1308 = vrot.lane.b32.xlu0 %v1306_v15, %s3997_s15  ;;  %v869_v15 = vrot.slane %v4346_v31, 7 }
 0x12c   :  { %1312 = vrot.lane.b32.xlu2 %v1298_v17, %s3997_s15  ;;  %1334 = vrot.lane.b32.xlu1 %v1026_v7, %s3998_s16  ;;  %v1029_v17 = vrot.slane %v4293_v29, 6 }
 0x12d   :  { %1332 = vrot.lane.b32.xlu0 %v1036_v8, %s3998_s16  ;;  %v867_v8 = vrot.slane %v4293_v29, 7 }
 0x12e   :  { %v1032_v33 = vsel %vm1023_vm5, %v1029_v17, %v1031_v27 }
 0x12f   :  { %v870_v19 = vsel %vm861_vm4, %v867_v8, %v869_v15 }
 0x134   :  { %1336 = vrot.lane.b32.xlu2 %v1028_v10, %s3998_s16  ;;  %1388 = vrot.lane.b32.xlu1 %v864_v60, %s3999_s17  ;;  %v4361_v60 = vadd.f32 %v4220_v38, %v795_v40  ;;  %v868_v10 = vsel %vm861_vm4, %v865_v62, %v867_v8  ;;  %v1030_v62 = vsel %vm1023_vm5, %v1027_v9, %v1029_v17 }
 0x135   :  { %1386 = vrot.lane.b32.xlu0 %v874_v61, %s3999_s17 }
 0x136   :  { %v871_v46 = vrot.slane %v4361_v60, 7  ;;  %v1033_v57 = vrot.slane %v4361_v60, 6 }
 0x138   :  { %v4421_v28 = vsel %vm861_vm4, %v869_v15, %v871_v46  ;;  %v1034_v55 = vsel %vm1023_vm5, %v1031_v27, %v1033_v57  ;;  %v1303_v46 = vrot.slane %v4361_v60, 5  ;;  %v1232_v27 = vrot.slane %v4346_v31, 2 }
 0x13c   :  { %1390 = vrot.lane.b32.xlu2 %v866_v5, %s3999_s17  ;;  %841 = vrot.lane.b32.xlu1 %v4235_v47, %s3990_s2 }
 0x13d   :  { %839 = vrot.lane.b32.xlu0 %v4228_v25, %s3990_s2 }
 0x144   :  { %973 = vrot.lane.b32.xlu2 %v961_v37, %s4000_s18  ;;  %971 = vrot.lane.b32.xlu1 %v959_v41, %s4000_s18 }
 0x145   :  { %969 = vrot.lane.b32.xlu0 %v957_v42, %s4000_s18 }
 0x14c   :  { %1174 = vrot.lane.b32.xlu2 %v961_v37, %s4001_s19  ;;  %1172 = vrot.lane.b32.xlu1 %v959_v41, %s4001_s19 }
 0x14d   :  { %1170 = vrot.lane.b32.xlu0 %v957_v42, %s4001_s19 }
 0x154   :  { %1243 = vrot.lane.b32.xlu2 %v4322_v50, %s4002_s20  ;;  %1241 = vrot.lane.b32.xlu1 %v4325_v51, %s4002_s20 }
 0x155   :  { %1239 = vrot.lane.b32.xlu0 %v4330_v52, %s4002_s20 }
 0x156   :  { %v4336_v23 = vpop.permute.xlu2 %904 }
 0x15c   :  { %1498 = vrot.lane.b32.xlu2 %v961_v37, %s4003_s21  ;;  %1496 = vrot.lane.b32.xlu1 %v959_v41, %s4003_s21  ;;  %v964_v37 = vrot.slane %v4361_v60, 1  ;;  %v1299_v41 = vrot.slane %v4293_v29, 5 }
 0x15d   :  { %1494 = vrot.lane.b32.xlu0 %v957_v42, %s4003_s21 }
 0x15e   :  { %v4341_v39 = vpop.permute.xlu2 %1120  ;;  %v4343_v18 = vpop.permute.xlu0 %837  ;;  %v4437_v42 = vsel %vm92_vm0, %v964_v37, 0.0  ;;  %v1300_v43 = vsel %vm1293_vm6, %v1297_v16, %v1299_v41  ;;  %v1302_v63 = vsel %vm1293_vm6, %v1299_v41, %v1301_v54  ;;  %v965_v17 = vsel %vm92_vm0, %v962_v32, %v964_v37 }
 0x15f   :  { %6213 = vst [vmem:[#allocation9_spill] sm:$0xff] %v4343_v18  ;;  %v4511_v37 = vsel %vm1224_vm7, %v1230_v44, %v1232_v27  ;;  %vm2184_vm0 = vcmask 31744  }
 0x164   :  { %845 = vrot.lane.b32.xlu2 %v4346_v31, %s3990_s2  ;;  %843 = vrot.lane.b32.xlu1 %v4293_v29, %s3990_s2 }
 0x165   :  { %906 = vrot.lane.b32.xlu0 %v4293_v29, %s3991_s9 }
 0x166   :  { %v4354_v45 = vpop.permute.xlu2 %1444  ;;  %v4356_v14 = vpop.permute.xlu1 %902 }
 0x167   :  { %v4358_v59 = vpop.permute.xlu0 %900 }
 0x16c   :  { %847 = vrot.lane.b32.xlu2 %v4361_v60, %s3990_s2  ;;  %908 = vrot.lane.b32.xlu1 %v4346_v31, %s3991_s9 }
 0x16d   :  { %1122 = vrot.lane.b32.xlu0 %v4293_v29, %s3992_s10 }
 0x16e   :  { %v4369_v61 = vpop.permute.xlu1 %1118  ;;  %v4371_v0 = vpop.permute.xlu2 %880 }
 0x16f   :  { %v4373_v4 = vpop.permute.xlu0 %1116 }
 0x174   :  { %910 = vrot.lane.b32.xlu2 %v4361_v60, %s3991_s9  ;;  %1124 = vrot.lane.b32.xlu1 %v4346_v31, %s3992_s10 }
 0x175   :  { %1446 = vrot.lane.b32.xlu0 %v4293_v29, %s3993_s11 }
 0x176   :  { %v4381_v38 = vpop.permute.xlu1 %1442  ;;  %v4383_v5 = vpop.permute.xlu2 %1042 }
 0x177   :  { %6214 = vst [vmem:[#allocation10_spill] sm:$0xff] %v4383_v5  ;;  %v4385_v7 = vpop.permute.xlu0 %1440 }
 0x17c   :  { %1126 = vrot.lane.b32.xlu2 %v4361_v60, %s3992_s10  ;;  %1448 = vrot.lane.b32.xlu1 %v4346_v31, %s3993_s11  ;;  %s4009_s10 = smov 123  }
 0x17d   :  { %882 = vrot.lane.b32.xlu0 %v868_v10, %s3994_s12 }
 0x17e   :  { %v4396_v11 = vpop.permute.xlu2 %1066  ;;  %v4398_v12 = vpop.permute.xlu1 %878 }
 0x17f   :  { %v4400_v13 = vpop.permute.xlu0 %876 }
 0x184   :  { %1450 = vrot.lane.b32.xlu2 %v4361_v60, %s3993_s11  ;;  %884 = vrot.lane.b32.xlu1 %v870_v19, %s3994_s12  ;;  %s4010_s11 = smov 27  }
 0x185   :  { %1044 = vrot.lane.b32.xlu0 %v1030_v62, %s3995_s13 }
 0x186   :  { %v4412_v20 = vpop.permute.xlu2 %1312  ;;  %v4414_v21 = vpop.permute.xlu1 %1040 }
 0x187   :  { %6215 = vst [vmem:[#allocation11_spill] sm:$0xff] %v4414_v21  ;;  %v4416_v26 = vpop.permute.xlu0 %1038 }
 0x188   :  { %6216 = vst [vmem:[#allocation12_spill] sm:$0xff] %v4416_v26 }
 0x18c   :  { %886 = vrot.lane.b32.xlu2 %v4421_v28, %s3994_s12  ;;  %1046 = vrot.lane.b32.xlu1 %v1032_v33, %s3995_s13  ;;  %s4011_s12 = smov 122  }
 0x18d   :  { %1068 = vrot.lane.b32.xlu0 %v868_v10, %s3996_s14 }
 0x18e   :  { %v4428_v9 = vpop.permute.xlu2 %1336  ;;  %v4430_v35 = vpop.permute.xlu1 %1064 }
 0x18f   :  { %v4432_v36 = vpop.permute.xlu0 %1062 }
 0x194   :  { %979 = vrot.lane.b32.xlu2 %v4437_v42, %s4000_s18  ;;  %1070 = vrot.lane.b32.xlu1 %v870_v19, %s3996_s14 }
 0x195   :  { %1314 = vrot.lane.b32.xlu0 %v1300_v43, %s3997_s15 }
 0x196   :  { %v4446_v30 = vpop.permute.xlu2 %1390  ;;  %v4448_v48 = vpop.permute.xlu1 %1310 }
 0x197   :  { %v4450_v49 = vpop.permute.xlu0 %1308 }
 0x19c   :  { %1048 = vrot.lane.b32.xlu2 %v1034_v55, %s3995_s13  ;;  %1316 = vrot.lane.b32.xlu1 %v1302_v63, %s3997_s15  ;;  %s4012_s13 = smov 110  }
 0x19d   :  { %1338 = vrot.lane.b32.xlu0 %v1030_v62, %s3998_s16 }
 0x19e   :  { %v4459_v16 = vpop.permute.xlu2 %973  ;;  %v4461_v3 = vpop.permute.xlu1 %1334 }
 0x19f   :  { %v4463_v56 = vpop.permute.xlu0 %1332 }
 0x1a4   :  { %1072 = vrot.lane.b32.xlu2 %v4421_v28, %s3996_s14  ;;  %1340 = vrot.lane.b32.xlu1 %v1032_v33, %s3998_s16  ;;  %v1304_v33 = vsel %vm1293_vm6, %v1301_v54, %v1303_v46  ;;  %v4538_v46 = vld [vmem:[%s6207_s4] sm:$0xff]  ;;  %s4013_s14 = smov 115  }
 0x1a5   :  { %1392 = vrot.lane.b32.xlu0 %v868_v10, %s3999_s17  ;;  %v1234_v10 = vrot.slane %v4361_v60, 2 }
 0x1a6   :  { %v4469_v2 = vpop.permute.xlu2 %1174  ;;  %v4471_v6 = vpop.permute.xlu1 %1388 }
 0x1a7   :  { %v4473_v53 = vpop.permute.xlu0 %1386  ;;  %v4491_v15 = vsel %vm1224_vm7, %v1234_v10, 0.0  ;;  %v4523_v54 = vsel %vm1224_vm7, %v1232_v27, %v1234_v10  ;;  %v918_v10 = vmul.f32 %v4358_v59, %v4538_v46  ;;  %v4553_v27 = vld [vmem:[%s6207_s4 + $0x8] sm:$0xff] }
 0x1a8   :  { %v919_v59 = vmul.f32 %v4356_v14, %v4553_v27  ;;  %v4574_v14 = vld [vmem:[%s6207_s4 + $0x10] sm:$0xff] }
 0x1ac   :  { %1180 = vrot.lane.b32.xlu2 %v4437_v42, %s4001_s19  ;;  %1394 = vrot.lane.b32.xlu1 %v870_v19, %s3999_s17 }
 0x1ad   :  { %975 = vrot.lane.b32.xlu0 %v963_v58, %s4000_s18 }
 0x1ae   :  { %v4483_v22 = vpop.permute.xlu2 %1243  ;;  %v4485_v40 = vpop.permute.xlu1 %841 }
 0x1af   :  { %6217 = vst [vmem:[#allocation13_spill] sm:$0xff] %v4485_v40  ;;  %v4487_v8 = vpop.permute.xlu0 %839 }
 0x1b0   :  { %6218 = vst [vmem:[#allocation14_spill] sm:$0xff] %v4487_v8 }
 0x1b4   :  { %1249 = vrot.lane.b32.xlu2 %v4491_v15, %s4002_s20  ;;  %977 = vrot.lane.b32.xlu1 %v965_v17, %s4000_s18  ;;  %s4017_s18 = smov 108  }
 0x1b5   :  { %1176 = vrot.lane.b32.xlu0 %v963_v58, %s4001_s19 }
 0x1b6   :  { %v4498_v34 = vpop.permute.xlu2 %1498  ;;  %v4500_v19 = vpop.permute.xlu1 %971 }
 0x1b7   :  { %v4502_v62 = vpop.permute.xlu0 %969 }
 0x1bc   :  { %1318 = vrot.lane.b32.xlu2 %v1304_v33, %s3997_s15  ;;  %1178 = vrot.lane.b32.xlu1 %v965_v17, %s4001_s19  ;;  %s4014_s15 = smov 109  }
 0x1bd   :  { %1245 = vrot.lane.b32.xlu0 %v4511_v37, %s4002_s20 }
 0x1be   :  { %v4516_v41 = vpop.permute.xlu2 %845  ;;  %v4518_v43 = vpop.permute.xlu1 %1172 }
 0x1bf   :  { %6219 = vst [vmem:[#allocation15_spill] sm:$0xff] %v4516_v41  ;;  %v4520_v57 = vpop.permute.xlu0 %1170 }
 0x1c4   :  { %1342 = vrot.lane.b32.xlu2 %v1034_v55, %s3998_s16  ;;  %1247 = vrot.lane.b32.xlu1 %v4523_v54, %s4002_s20  ;;  %s4015_s16 = smov 120   ;;  %s4018_s20 = smov 116  }
 0x1c5   :  { %1500 = vrot.lane.b32.xlu0 %v963_v58, %s4003_s21 }
 0x1c6   :  { %v4529_v44 = vpop.permute.xlu2 %847  ;;  %v4531_v63 = vpop.permute.xlu1 %1241 }
 0x1c7   :  { %6220 = vst [vmem:[#allocation16_spill] sm:$0xff] %v4529_v44  ;;  %v4533_v32 = vpop.permute.xlu0 %1239 }
 0x1cc   :  { %1396 = vrot.lane.b32.xlu2 %v4421_v28, %s3999_s17  ;;  %1502 = vrot.lane.b32.xlu1 %v965_v17, %s4003_s21  ;;  %v1134_v28 = vmul.f32 %v4373_v4, %v4538_v46  ;;  %v920_v4 = vmul.f32 %v4336_v23, %v4574_v14  ;;  %v1136_v23 = vmul.f32 %v4341_v39, %v4574_v14  ;;  %s4016_s17 = smov 114  }
 0x1cd   :  { %930 = vrot.lane.b32.xlu0 %v918_v10, %s4004_s24  ;;  %v1460_v39 = vmul.f32 %v4354_v45, %v4574_v14  ;;  %v1082_v45 = vmul.f32 %v4396_v11, %v4574_v14  ;;  %v1352_v11 = vmul.f32 %v4428_v9, %v4574_v14  ;;  %v1406_v9 = vmul.f32 %v4446_v30, %v4574_v14 }
 0x1ce   :  { %v4546_v55 = vpop.permute.xlu2 %910  ;;  %v4548_v58 = vpop.permute.xlu1 %1496  ;;  %v989_v30 = vmul.f32 %v4459_v16, %v4574_v14  ;;  %v1190_v16 = vmul.f32 %v4469_v2, %v4574_v14  ;;  %v4689_v2 = vld [vmem:[%s6207_s4 + $0x18] sm:$0xff] }
 0x1cf   :  { %v4555_v33 = vpop.permute.xlu0 %1494 }
 0x1d4   :  { %1504 = vrot.lane.b32.xlu2 %v4437_v42, %s4003_s21  ;;  %932 = vrot.lane.b32.xlu1 %v919_v59, %s4004_s24  ;;  %v1135_v42 = vmul.f32 %v4369_v61, %v4553_v27  ;;  %v1458_v59 = vmul.f32 %v4385_v7, %v4538_v46  ;;  %v1459_v61 = vmul.f32 %v4381_v38, %v4553_v27  ;;  %s4019_s21 = smov 6  }
 0x1d5   :  { %1146 = vrot.lane.b32.xlu0 %v1134_v28, %s4005_s1  ;;  %v1080_v7 = vmul.f32 %v4432_v36, %v4538_v46  ;;  %v1081_v38 = vmul.f32 %v4430_v35, %v4553_v27  ;;  %v1350_v36 = vmul.f32 %v4463_v56, %v4538_v46  ;;  %v1351_v35 = vmul.f32 %v4461_v3, %v4553_v27 }
 0x1d6   :  { %v4565_v17 = vpop.permute.xlu2 %1126  ;;  %v4567_v10 = vpop.permute.xlu1 %843  ;;  %v1404_v56 = vmul.f32 %v4473_v53, %v4538_v46  ;;  %v1405_v3 = vmul.f32 %v4471_v6, %v4553_v27  ;;  %v987_v53 = vmul.f32 %v4502_v62, %v4538_v46  ;;  %v988_v6 = vmul.f32 %v4500_v19, %v4553_v27 }
 0x1d7   :  { %6221 = vst [vmem:[#allocation17_spill] sm:$0xff] %v4567_v10  ;;  %v4569_v1 = vpop.permute.xlu0 %906  ;;  %v1188_v62 = vmul.f32 %v4520_v57, %v4538_v46  ;;  %v1189_v19 = vmul.f32 %v4518_v43, %v4553_v27  ;;  %v1257_v57 = vmul.f32 %v4533_v32, %v4538_v46  ;;  %v1258_v43 = vmul.f32 %v4531_v63, %v4553_v27 }
 0x1d8   :  { %v1512_v32 = vmul.f32 %v4555_v33, %v4538_v46  ;;  %v1259_v63 = vmul.f32 %v4483_v22, %v4574_v14  ;;  %v1513_v33 = vmul.f32 %v4548_v58, %v4553_v27  ;;  %v4705_v22 = vld [vmem:[%s6207_s4 + $0x20] sm:$0xff]  ;;  %v1514_v58 = vmul.f32 %v4498_v34, %v4574_v14 }
 0x1dc   :  { %934 = vrot.lane.b32.xlu2 %v920_v4, %s4004_s24  ;;  %1148 = vrot.lane.b32.xlu1 %v1135_v42, %s4005_s1 }
 0x1dd   :  { %1470 = vrot.lane.b32.xlu0 %v1458_v59, %s4006_s28 }
 0x1de   :  { %v4585_v28 = vpop.permute.xlu2 %1450  ;;  %v4587_v41 = vpop.permute.xlu1 %908 }
 0x1df   :  { %v4589_v10 = vpop.permute.xlu0 %1122 }
 0x1e4   :  { %1150 = vrot.lane.b32.xlu2 %v1136_v23, %s4005_s1  ;;  %1472 = vrot.lane.b32.xlu1 %v1459_v61, %s4006_s28 }
 0x1e5   :  { %1092 = vrot.lane.b32.xlu0 %v1080_v7, %s4004_s24 }
 0x1e6   :  { %v4600_v4 = vpop.permute.xlu2 %886  ;;  %v4602_v42 = vpop.permute.xlu1 %1124 }
 0x1e7   :  { %v4604_v59 = vpop.permute.xlu0 %1446  ;;  %v1138_v44 = vmul.f32 %v4602_v42, %v4705_v22 }
 0x1e8   :  { %v1461_v34 = vmul.f32 %v4604_v59, %v4689_v2 }
 0x1ec   :  { %1474 = vrot.lane.b32.xlu2 %v1460_v39, %s4006_s28  ;;  %1094 = vrot.lane.b32.xlu1 %v1081_v38, %s4004_s24 }
 0x1ed   :  { %1362 = vrot.lane.b32.xlu0 %v1350_v36, %s4004_s24 }
 0x1ee   :  { %v4615_v23 = vpop.permute.xlu2 %979  ;;  %v4617_v61 = vpop.permute.xlu1 %1448 }
 0x1ef   :  { %v4619_v7 = vpop.permute.xlu0 %882  ;;  %v1462_v59 = vmul.f32 %v4617_v61, %v4705_v22 }
 0x1f4   :  { %1096 = vrot.lane.b32.xlu2 %v1082_v45, %s4004_s24  ;;  %1364 = vrot.lane.b32.xlu1 %v1351_v35, %s4004_s24 }
 0x1f5   :  { %1416 = vrot.lane.b32.xlu0 %v1404_v56, %s4005_s1 }
 0x1f6   :  { %v4630_v39 = vpop.permute.xlu2 %1048  ;;  %v4632_v38 = vpop.permute.xlu1 %884 }
 0x1f7   :  { %6222 = vst [vmem:[#allocation18_spill] sm:$0xff] %v4630_v39  ;;  %v4634_v36 = vpop.permute.xlu0 %1044 }
 0x1f8   :  { %6223 = vst [vmem:[#allocation19_spill] sm:$0xff] %v4634_v36 }
 0x1fc   :  { %1366 = vrot.lane.b32.xlu2 %v1352_v11, %s4004_s24  ;;  %1418 = vrot.lane.b32.xlu1 %v1405_v3, %s4005_s1 }
 0x1fd   :  { %999 = vrot.lane.b32.xlu0 %v987_v53, %s4005_s1 }
 0x1fe   :  { %v4645_v45 = vpop.permute.xlu2 %1072  ;;  %v4647_v35 = vpop.permute.xlu1 %1046 }
 0x1ff   :  { %6224 = vst [vmem:[#allocation20_spill] sm:$0xff] %v4647_v35  ;;  %v1069_v56 = vpop.permute.xlu0 %1068 }
 0x204   :  { %1420 = vrot.lane.b32.xlu2 %v1406_v9, %s4005_s1  ;;  %1001 = vrot.lane.b32.xlu1 %v988_v6, %s4005_s1 }
 0x205   :  { %1200 = vrot.lane.b32.xlu0 %v1188_v62, %s4006_s28 }
 0x206   :  { %v4658_v11 = vpop.permute.xlu2 %1180  ;;  %v1071_v3 = vpop.permute.xlu1 %1070 }
 0x207   :  { %v4660_v53 = vpop.permute.xlu0 %1314 }
 0x20c   :  { %1003 = vrot.lane.b32.xlu2 %v989_v30, %s4005_s1  ;;  %1202 = vrot.lane.b32.xlu1 %v1189_v19, %s4006_s28 }
 0x20d   :  { %1269 = vrot.lane.b32.xlu0 %v1257_v57, %s4007_s29 }
 0x20e   :  { %v4671_v9 = vpop.permute.xlu2 %1249  ;;  %v4673_v6 = vpop.permute.xlu1 %1316 }
 0x20f   :  { %v1339_v62 = vpop.permute.xlu0 %1338 }
 0x210   :  { %v1353_v40 = vmul.f32 %v1339_v62, %v4689_v2 }
 0x214   :  { %1204 = vrot.lane.b32.xlu2 %v1190_v16, %s4006_s28  ;;  %1271 = vrot.lane.b32.xlu1 %v1258_v43, %s4007_s29  ;;  %v921_v16 = vmul.f32 %v4569_v1, %v4689_v2  ;;  %v922_v1 = vmul.f32 %v4587_v41, %v4705_v22 }
 0x215   :  { %1524 = vrot.lane.b32.xlu0 %v1512_v32, %s4007_s29 }
 0x216   :  { %v4684_v30 = vpop.permute.xlu2 %1318  ;;  %v1341_v19 = vpop.permute.xlu1 %1340 }
 0x217   :  { %v1393_v57 = vpop.permute.xlu0 %1392 }
 0x21c   :  { %1273 = vrot.lane.b32.xlu2 %v1259_v63, %s4007_s29  ;;  %1526 = vrot.lane.b32.xlu1 %v1513_v33, %s4007_s29  ;;  %v1137_v63 = vmul.f32 %v4589_v10, %v4689_v2 }
 0x21d   :  { %936 = vrot.lane.b32.xlu0 %v921_v16, %s4004_s24 }
 0x21e   :  { %v4700_v43 = vpop.permute.xlu2 %1342  ;;  %v1395_v32 = vpop.permute.xlu1 %1394 }
 0x21f   :  { %v976_v8 = vpop.permute.xlu0 %975 }
 0x224   :  { %1528 = vrot.lane.b32.xlu2 %v1514_v58, %s4007_s29  ;;  %938 = vrot.lane.b32.xlu1 %v922_v1, %s4004_s24  ;;  %v4731_v1 = vld [vmem:[%s6207_s4 + $0x28] sm:$0xff] }
 0x225   :  { %1152 = vrot.lane.b32.xlu0 %v1137_v63, %s4005_s1  ;;  %v923_v42 = vmul.f32 %v4546_v55, %v4731_v1  ;;  %v1139_v35 = vmul.f32 %v4565_v17, %v4731_v1  ;;  %v1084_v55 = vmul.f32 %v1071_v3, %v4705_v22  ;;  %v1354_v17 = vmul.f32 %v1341_v19, %v4705_v22 }
 0x226   :  { %v4716_v33 = vpop.permute.xlu2 %1396  ;;  %v978_v16 = vpop.permute.xlu1 %977  ;;  %v1407_v3 = vmul.f32 %v1393_v57, %v4689_v2  ;;  %v990_v19 = vmul.f32 %v976_v8, %v4689_v2 }
 0x227   :  { %v1177_v18 = vpop.permute.xlu0 %1176 }
 0x22c   :  { %1552 = vrot.lane.b32.xlu2 %v4322_v50, %s4008_s8  ;;  %1154 = vrot.lane.b32.xlu1 %v1138_v44, %s4005_s1  ;;  %v1083_v50 = vmul.f32 %v1069_v56, %v4689_v2 }
 0x22d   :  { %1476 = vrot.lane.b32.xlu0 %v1461_v34, %s4006_s28 }
 0x22e   :  { %v4726_v41 = vpop.permute.xlu2 %1504  ;;  %v1179_v10 = vpop.permute.xlu1 %1178 }
 0x22f   :  { %v1246_v58 = vpop.permute.xlu0 %1245 }
 0x234   :  { %940 = vrot.lane.b32.xlu2 %v923_v42, %s4004_s24  ;;  %1478 = vrot.lane.b32.xlu1 %v1462_v59, %s4006_s28  ;;  %v1463_v59 = vmul.f32 %v4585_v28, %v4731_v1  ;;  %v1408_v28 = vmul.f32 %v1395_v32, %v4705_v22 }
 0x235   :  { %1098 = vrot.lane.b32.xlu0 %v1083_v50, %s4004_s24  ;;  %v992_v50 = vmul.f32 %v4615_v23, %v4731_v1  ;;  %v1191_v23 = vmul.f32 %v1177_v18, %v4689_v2  ;;  %v1260_v18 = vmul.f32 %v1246_v58, %v4689_v2 }
 0x236   :  { %v4741_v44 = vpop.permute.xlu2 %934  ;;  %v1248_v63 = vpop.permute.xlu1 %1247 }
 0x237   :  { %v1501_v34 = vpop.permute.xlu0 %1500 }
 0x23c   :  { %1156 = vrot.lane.b32.xlu2 %v1139_v35, %s4005_s1  ;;  %1100 = vrot.lane.b32.xlu1 %v1084_v55, %s4004_s24 }
 0x23d   :  { %1368 = vrot.lane.b32.xlu0 %v1353_v40, %s4004_s24 }
 0x23e   :  { %v4750_v61 = vpop.permute.xlu2 %1150  ;;  %v1503_v56 = vpop.permute.xlu1 %1502 }
 0x23f   :  { %6225 = vst [vmem:[#allocation21_spill] sm:$0xff] %v4750_v61  ;;  %v4752_v42 = vpop.permute.xlu0 %930 }
 0x244   :  { %1480 = vrot.lane.b32.xlu2 %v1463_v59, %s4006_s28  ;;  %1370 = vrot.lane.b32.xlu1 %v1354_v17, %s4004_s24  ;;  %v1085_v17 = vmul.f32 %v4645_v45, %v4731_v1  ;;  %v991_v45 = vmul.f32 %v978_v16, %v4705_v22  ;;  %v1515_v16 = vmul.f32 %v1501_v34, %v4689_v2 }
 0x245   :  { %1422 = vrot.lane.b32.xlu0 %v1407_v3, %s4005_s1 }
 0x246   :  { %v4761_v35 = vpop.permute.xlu2 %1474  ;;  %v4763_v40 = vpop.permute.xlu1 %932 }
 0x247   :  { %v4765_v62 = vpop.permute.xlu0 %1146 }
 0x248   :  { %6226 = vst [vmem:[#allocation22_spill] sm:$0xff] %v4765_v62 }
 0x24c   :  { %1009 = vrot.lane.b32.xlu2 %v992_v50, %s4005_s1  ;;  %1424 = vrot.lane.b32.xlu1 %v1408_v28, %s4005_s1  ;;  %v1193_v50 = vmul.f32 %v4658_v11, %v4731_v1  ;;  %v1192_v11 = vmul.f32 %v1179_v10, %v4705_v22 }
 0x24d   :  { %1005 = vrot.lane.b32.xlu0 %v990_v19, %s4005_s1 }
 0x24e   :  { %v4774_v57 = vpop.permute.xlu2 %1096  ;;  %v4776_v55 = vpop.permute.xlu1 %1148 }
 0x24f   :  { %6227 = vst [vmem:[#allocation23_spill] sm:$0xff] %v4774_v57  ;;  %v4778_v59 = vpop.permute.xlu0 %1470 }
 0x250   :  { %6228 = vst [vmem:[#allocation24_spill] sm:$0xff] %v4776_v55 }
 0x254   :  { %1102 = vrot.lane.b32.xlu2 %v1085_v17, %s4004_s24  ;;  %1550 = vrot.lane.b32.xlu1 %v4325_v51, %s4008_s8  ;;  %v1262_v17 = vmul.f32 %v4671_v9, %v4731_v1  ;;  %v1261_v9 = vmul.f32 %v1248_v63, %v4705_v22 }
 0x255   :  { %1206 = vrot.lane.b32.xlu0 %v1191_v23, %s4006_s28 }
 0x256   :  { %v4787_v8 = vpop.permute.xlu2 %1366  ;;  %v4789_v32 = vpop.permute.xlu1 %1472 }
 0x257   :  { %v4791_v3 = vpop.permute.xlu0 %1092 }
 0x258   :  { %6229 = vst [vmem:[#allocation25_spill] sm:$0xff] %v4791_v3 }
 0x25c   :  { %1210 = vrot.lane.b32.xlu2 %v1193_v50, %s4006_s28  ;;  %1007 = vrot.lane.b32.xlu1 %v991_v45, %s4005_s1  ;;  %v1355_v45 = vmul.f32 %v4700_v43, %v4731_v1  ;;  %v1516_v43 = vmul.f32 %v1503_v56, %v4705_v22 }
 0x25d   :  { %1275 = vrot.lane.b32.xlu0 %v1260_v18, %s4007_s29 }
 0x25e   :  { %v4800_v51 = vpop.permute.xlu2 %1420  ;;  %v4802_v28 = vpop.permute.xlu1 %1094 }
 0x25f   :  { %6230 = vst [vmem:[#allocation26_spill] sm:$0xff] %v4802_v28  ;;  %v4804_v19 = vpop.permute.xlu0 %1362 }
 0x264   :  { %1279 = vrot.lane.b32.xlu2 %v1262_v17, %s4007_s29  ;;  %1208 = vrot.lane.b32.xlu1 %v1192_v11, %s4006_s28  ;;  %v1409_v17 = vmul.f32 %v4716_v33, %v4731_v1 }
 0x265   :  { %1530 = vrot.lane.b32.xlu0 %v1515_v16, %s4007_s29  ;;  %v1517_v16 = vmul.f32 %v4726_v41, %v4731_v1 }
 0x266   :  { %v4813_v58 = vpop.permute.xlu2 %1003  ;;  %v4815_v23 = vpop.permute.xlu1 %1364 }
 0x267   :  { %v4817_v50 = vpop.permute.xlu0 %1416 }
 0x26c   :  { %1372 = vrot.lane.b32.xlu2 %v1355_v45, %s4004_s24  ;;  %1277 = vrot.lane.b32.xlu1 %v1261_v9, %s4007_s29 }
 0x26d   :  { %1548 = vrot.lane.b32.xlu0 %v4330_v52, %s4008_s8 }
 0x26e   :  { %v4826_v10 = vpop.permute.xlu2 %1204  ;;  %v4828_v34 = vpop.permute.xlu1 %1418 }
 0x26f   :  { %6231 = vst [vmem:[#allocation27_spill] sm:$0xff] %v4826_v10  ;;  %v4830_v18 = vpop.permute.xlu0 %999 }
 0x274   :  { %1426 = vrot.lane.b32.xlu2 %v1409_v17, %s4005_s1  ;;  %1532 = vrot.lane.b32.xlu1 %v1516_v43, %s4007_s29 }
 0x275   :  { %1554 = vrot.lane.b32.xlu0 %v4511_v37, %s4008_s8 }
 0x276   :  { %v4839_v63 = vpop.permute.xlu2 %1273  ;;  %v4841_v52 = vpop.permute.xlu1 %1001 }
 0x277   :  { %6232 = vst [vmem:[#allocation28_spill] sm:$0xff] %v4839_v63  ;;  %v4843_v11 = vpop.permute.xlu0 %1200 }
 0x278   :  { %6233 = vst [vmem:[#allocation29_spill] sm:$0xff] %v4843_v11 }
 0x27c   :  { %1534 = vrot.lane.b32.xlu2 %v1517_v16, %s4007_s29  ;;  %1556 = vrot.lane.b32.xlu1 %v4523_v54, %s4008_s8  ;;  %s4022_s29 = smov 119  }
 0x27e   :  { %v4850_v33 = vpop.permute.xlu2 %1528  ;;  %v4852_v56 = vpop.permute.xlu1 %1202 }
 0x27f   :  { %6234 = vst [vmem:[#allocation30_spill] sm:$0xff] %v4852_v56  ;;  %v4854_v45 = vpop.permute.xlu0 %1269 }
 0x280   :  { %6235 = vst [vmem:[#allocation31_spill] sm:$0xff] %v4854_v45 }
 0x284   :  { %1558 = vrot.lane.b32.xlu2 %v4491_v15, %s4008_s8 }
 0x286   :  { %v1553_v37 = vpop.permute.xlu2 %1552  ;;  %v4858_v9 = vpop.permute.xlu1 %1271 }
 0x287   :  { %6236 = vst [vmem:[#allocation32_spill] sm:$0xff] %v4858_v9  ;;  %v4860_v17 = vpop.permute.xlu0 %1524  ;;  %v1568_v41 = vmul.f32 %v1553_v37, %v4574_v14 }
 0x28c   :  { %1582 = vrot.lane.b32.xlu2 %v1568_v41, %s4009_s10 }
 0x28e   :  { %v4864_v54 = vpop.permute.xlu2 %940  ;;  %v4866_v43 = vpop.permute.xlu1 %1526 }
 0x28f   :  { %v4868_v16 = vpop.permute.xlu0 %936 }
 0x296   :  { %v4870_v36 = vpop.permute.xlu2 %1156  ;;  %v4872_v56 = vpop.permute.xlu1 %938 }
 0x297   :  { %6237 = vst [vmem:[#allocation33_spill] sm:$0xff] %v4870_v36  ;;  %v4874_v15 = vpop.permute.xlu0 %1152 }
 0x298   :  { %6238 = vst [vmem:[#allocation34_spill] sm:$0xff] %v4872_v56 }
 0x299   :  { %6239 = vst [vmem:[#allocation35_spill] sm:$0xff] %v4874_v15 }
 0x29e   :  { %v4876_v9 = vpop.permute.xlu2 %1480  ;;  %v4878_v55 = vpop.permute.xlu1 %1154 }
 0x29f   :  { %6240 = vst [vmem:[#allocation36_spill] sm:$0xff] %v4878_v55  ;;  %v4880_v37 = vpop.permute.xlu0 %1476 }
 0x2a6   :  { %v4882_v45 = vpop.permute.xlu2 %1009  ;;  %v4884_v41 = vpop.permute.xlu1 %1478 }
 0x2a7   :  { %6241 = vst [vmem:[#allocation37_spill] sm:$0xff] %v4884_v41  ;;  %v4886_v28 = vpop.permute.xlu0 %1098 }
 0x2a8   :  { %6242 = vst [vmem:[#allocation38_spill] sm:$0xff] %v4886_v28 }
 0x2ae   :  { %v4888_v11 = vpop.permute.xlu2 %1102  ;;  %v4890_v21 = vpop.permute.xlu1 %1100 }
 0x2af   :  { %6243 = vst [vmem:[#allocation39_spill] sm:$0xff] %v4888_v11  ;;  %v4892_v62 = vpop.permute.xlu0 %1368 }
 0x2b0   :  { %6244 = vst [vmem:[#allocation40_spill] sm:$0xff] %v4890_v21 }
 0x2b6   :  { %v4894_v3 = vpop.permute.xlu2 %1210  ;;  %v4896_v15 = vpop.permute.xlu1 %1370 }
 0x2b7   :  { %6245 = vst [vmem:[#allocation41_spill] sm:$0xff] %v4894_v3  ;;  %v4898_v26 = vpop.permute.xlu0 %1422 }
 0x2be   :  { %v4900_v55 = vpop.permute.xlu2 %1279  ;;  %v4902_v36 = vpop.permute.xlu1 %1424 }
 0x2bf   :  { %6246 = vst [vmem:[#allocation42_spill] sm:$0xff] %v4900_v55  ;;  %v4904_v39 = vpop.permute.xlu0 %1005 }
 0x2c0   :  { %6247 = vst [vmem:[#allocation43_spill] sm:$0xff] %v4902_v36 }
 0x2c6   :  { %v4906_v63 = vpop.permute.xlu2 %1372  ;;  %v1551_v28 = vpop.permute.xlu1 %1550 }
 0x2c7   :  { %v4908_v11 = vpop.permute.xlu0 %1206  ;;  %v1567_v21 = vmul.f32 %v1551_v28, %v4553_v27 }
 0x2c8   :  { %6248 = vst [vmem:[#allocation44_spill] sm:$0xff] %v4908_v11 }
 0x2c9   :  { %1580 = vrot.lane.b32.xlu1 %v1567_v21, %s4009_s10 }
 0x2ce   :  { %v4912_v3 = vpop.permute.xlu2 %1426  ;;  %v4914_v10 = vpop.permute.xlu1 %1007 }
 0x2cf   :  { %6249 = vst [vmem:[#allocation45_spill] sm:$0xff] %v4914_v10  ;;  %v4916_v61 = vpop.permute.xlu0 %1275 }
 0x2d0   :  { %6250 = vst [vmem:[#allocation46_spill] sm:$0xff] %v4916_v61  ;;  %v1608_v61 = vrot.slane %v4293_v29, 3 }
 0x2d6   :  { %v4918_v55 = vpop.permute.xlu2 %1534  ;;  %v4920_v57 = vpop.permute.xlu1 %1208 }
 0x2d7   :  { %6251 = vst [vmem:[#allocation47_spill] sm:$0xff] %v4920_v57  ;;  %v4922_v5 = vpop.permute.xlu0 %1530  ;;  %v1606_v57 = vrot.slane %v4235_v47, 3 }
 0x2d8   :  { %6252 = vst [vmem:[#allocation48_spill] sm:$0xff] %v4922_v5 }
 0x2de   :  { %v1559_v41 = vpop.permute.xlu2 %1558  ;;  %v4924_v36 = vpop.permute.xlu1 %1277 }
 0x2df   :  { %6253 = vst [vmem:[#allocation49_spill] sm:$0xff] %v4924_v36  ;;  %v1571_v11 = vmul.f32 %v1559_v41, %v4731_v1  ;;  %v1549_v28 = vpop.permute.xlu0 %1548  ;;  %v1609_v36 = vsel %vm1602_vm8, %v1606_v57, %v1608_v61  ;;  %v1604_v41 = vrot.slane %v4228_v25, 3 }
 0x2e0   :  { %v1566_v21 = vmul.f32 %v1549_v28, %v4538_v46 }
 0x2e1   :  { %1588 = vrot.lane.b32.xlu2 %v1571_v11, %s4009_s10  ;;  %v1612_v11 = vrot.slane %v4361_v60, 3 }
 0x2e2   :  { %1578 = vrot.lane.b32.xlu0 %v1566_v21, %s4009_s10  ;;  %v1603_v21 = vrot.slane %v4223_v24, 3 }
 0x2e3   :  { %v1615_v47 = vsel %vm1602_vm8, %v1612_v11, 0.0 }
 0x2e6   :  { %v4931_v10 = vpop.permute.xlu1 %1532  ;;  %v1583_v24 = vpop.permute.xlu2 %1582 }
 0x2e7   :  { %6254 = vst [vmem:[#allocation50_spill] sm:$0xff] %v4931_v10  ;;  %v1555_v56 = vpop.permute.xlu0 %1554 }
 0x2e8   :  { %v1569_v5 = vmul.f32 %v1555_v56, %v4689_v2  ;;  %v1605_v56 = vsel %vm1602_vm8, %v1603_v21, %v1604_v41 }
 0x2e9   :  { %1621 = vrot.lane.b32.xlu2 %v1609_v36, %s4010_s11  ;;  %v1610_v36 = vrot.slane %v4346_v31, 3 }
 0x2ea   :  { %1584 = vrot.lane.b32.xlu0 %v1569_v5, %s4009_s10  ;;  %v1607_v5 = vsel %vm1602_vm8, %v1604_v41, %v1606_v57 }
 0x2eb   :  { %v1611_v60 = vsel %vm1602_vm8, %v1608_v61, %v1610_v36  ;;  %v1613_v25 = vsel %vm1602_vm8, %v1610_v36, %v1612_v11  ;;  %v896_v61 = vmul.f32 %v4371_v0, %v4574_v14 }
 0x2ed   :  { %v950_v11 = vadd.f32 %v4741_v44, %v896_v61 }
 0x2ee   :  { %v1557_v28 = vpop.permute.xlu1 %1556 }
 0x2ef   :  { %v1570_v29 = vmul.f32 %v1557_v28, %v4705_v22  ;;  %v4962_v41 = vadd.f32 %v4813_v58, %v950_v11  ;;  %v895_v11 = vmul.f32 %v4398_v12, %v4553_v27 }
 0x2f1   :  { %1627 = vrot.lane.b32.xlu2 %v1615_v47, %s4010_s11  ;;  %1586 = vrot.lane.b32.xlu1 %v1570_v29, %s4009_s10  ;;  %s4024_s10 = smov 107  }
 0x2f2   :  { %1617 = vrot.lane.b32.xlu0 %v1605_v56, %s4010_s11 }
 0x2f9   :  { %1619 = vrot.lane.b32.xlu1 %v1607_v5, %s4010_s11 }
 0x2fa   :  { %1623 = vrot.lane.b32.xlu0 %v1611_v60, %s4010_s11 }
 0x301   :  { %1625 = vrot.lane.b32.xlu1 %v1613_v25, %s4010_s11  ;;  %s4026_s11 = smov 112  }
 0x33b   :  { %v1589_v28 = vpop.permute.xlu2 %1588 }
 0x343   :  { %v1622_v10 = vpop.permute.xlu2 %1621 }
 0x344   :  { %v1637_v47 = vmul.f32 %v1622_v10, %v4574_v14  ;;  %v4959_v10 = vpop.permute.xlu1 %1580 }
 0x346   :  { %1651 = vrot.lane.b32.xlu2 %v1637_v47, %s4011_s12 }
 0x34b   :  { %v1628_v29 = vpop.permute.xlu2 %1627 }
 0x34c   :  { %v1640_v31 = vmul.f32 %v1628_v29, %v4731_v1  ;;  %v894_v29 = vmul.f32 %v4400_v13, %v4538_v46  ;;  %v1328_v13 = vmul.f32 %v4412_v20, %v4574_v14  ;;  %v899_v20 = vmul.f32 %v4600_v4, %v4731_v1 }
 0x34e   :  { %1657 = vrot.lane.b32.xlu2 %v1640_v31, %s4011_s12  ;;  %v948_v31 = vadd.f32 %v4752_v42, %v894_v29  ;;  %v1382_v42 = vadd.f32 %v4787_v8, %v1328_v13  ;;  %v953_v8 = vadd.f32 %v4864_v54, %v899_v20  ;;  %v6257_v13 = vld [vmem:[#allocation43_spill] sm:$0xff] }
 0x350   :  { %v4984_v61 = vadd.f32 %v4830_v18, %v948_v31  ;;  %v1436_v18 = vadd.f32 %v4800_v51, %v1382_v42  ;;  %v1331_v51 = vmul.f32 %v4684_v30, %v4731_v1  ;;  %v1326_v30 = vmul.f32 %v4450_v49, %v4538_v46 }
 0x354   :  { %v4952_v57 = vpop.permute.xlu0 %1578 }
 0x356   :  { %2402 = vrot.lane.b32.xlu2 %v4574_v14, %s4012_s13 }
 0x35c   :  { %v4964_v21 = vpop.permute.xlu0 %1584 }
 0x35e   :  { %1681 = vrot.lane.b32.xlu2 %v4962_v41, %s4011_s12 }
 0x363   :  { %v4968_v56 = vpop.permute.xlu1 %1586 }
 0x364   :  { %v1618_v36 = vpop.permute.xlu0 %1617 }
 0x365   :  { %v1635_v5 = vmul.f32 %v1618_v36, %v4538_v46  ;;  %v949_v36 = vadd.f32 %v4763_v40, %v895_v11  ;;  %v1330_v11 = vmul.f32 %v4673_v6, %v4705_v22 }
 0x367   :  { %1647 = vrot.lane.b32.xlu0 %v1635_v5, %s4011_s12  ;;  %v4994_v5 = vadd.f32 %v4841_v52, %v949_v36  ;;  %v1385_v52 = vadd.f32 %v4906_v63, %v1331_v51 }
 0x36b   :  { %v1620_v0 = vpop.permute.xlu1 %1619 }
 0x36c   :  { %v1624_v60 = vpop.permute.xlu0 %1623  ;;  %v1636_v44 = vmul.f32 %v1620_v0, %v4553_v27  ;;  %v1490_v0 = vadd.f32 %v4761_v35, %v1436_v18  ;;  %v5014_v35 = vadd.f32 %v4882_v45, %v953_v8 }
 0x36d   :  { %v1638_v25 = vmul.f32 %v1624_v60, %v4689_v2 }
 0x36e   :  { %1649 = vrot.lane.b32.xlu1 %v1636_v44, %s4011_s12  ;;  %v1544_v60 = vadd.f32 %v4850_v33, %v1490_v0  ;;  %v1439_v33 = vadd.f32 %v4912_v3, %v1385_v52  ;;  %v1380_v3 = vadd.f32 %v4804_v19, %v1326_v30  ;;  %v6263_v30 = vld [vmem:[#allocation21_spill] sm:$0xff] }
 0x36f   :  { %1653 = vrot.lane.b32.xlu0 %v1638_v25, %s4011_s12 }
 0x370   :  { %v1598_v12 = vadd.f32 %v1583_v24, %v1544_v60  ;;  %v1493_v24 = vadd.f32 %v4876_v9, %v1439_v33  ;;  %v1434_v63 = vadd.f32 %v4817_v50, %v1380_v3  ;;  %v6258_v60 = vld [vmem:[#allocation45_spill] sm:$0xff]  ;;  %v6261_v33 = vld [vmem:[#allocation10_spill] sm:$0xff]  ;;  %v6264_v3 = vld [vmem:[#allocation27_spill] sm:$0xff] }
 0x372   :  { %v1547_v4 = vadd.f32 %v4918_v55, %v1493_v24  ;;  %v1327_v55 = vmul.f32 %v4448_v48, %v4553_v27  ;;  %v1488_v9 = vadd.f32 %v4778_v59, %v1434_v63  ;;  %v1058_v24 = vmul.f32 %v6261_v33, %v4574_v14 }
 0x373   :  { %v1626_v58 = vpop.permute.xlu1 %1625 }
 0x374   :  { %v1639_v47 = vmul.f32 %v1626_v58, %v4705_v22  ;;  %v1601_v45 = vadd.f32 %v1589_v28, %v1547_v4  ;;  %v1381_v28 = vadd.f32 %v4815_v23, %v1327_v55  ;;  %v1542_v58 = vadd.f32 %v4860_v17, %v1488_v9  ;;  %v6266_v9 = vld [vmem:[#allocation28_spill] sm:$0xff] }
 0x375   :  { %v897_v17 = vmul.f32 %v4619_v7, %v4689_v2 }
 0x376   :  { %1655 = vrot.lane.b32.xlu1 %v1639_v47, %s4011_s12  ;;  %v1435_v47 = vadd.f32 %v4828_v34, %v1381_v28  ;;  %v1596_v49 = vadd.f32 %v4952_v57, %v1542_v58 }
 0x377   :  { %2398 = vrot.lane.b32.xlu0 %v4538_v46, %s4012_s13  ;;  %v951_v57 = vadd.f32 %v4868_v16, %v897_v17  ;;  %v6271_v17 = vld [vmem:[#allocation41_spill] sm:$0xff] }
 0x378   :  { %v1489_v50 = vadd.f32 %v4789_v32, %v1435_v47  ;;  %v1329_v32 = vmul.f32 %v4660_v53, %v4689_v2  ;;  %v6255_v53 = vld [vmem:[#allocation48_spill] sm:$0xff] }
 0x379   :  { %v5070_v31 = vadd.f32 %v4904_v39, %v951_v57  ;;  %v1384_v39 = vadd.f32 %v4896_v15, %v1330_v11  ;;  %v6272_v57 = vld [vmem:[#allocation42_spill] sm:$0xff] }
 0x37a   :  { %v1543_v48 = vadd.f32 %v4866_v43, %v1489_v50  ;;  %v1383_v43 = vadd.f32 %v4892_v62, %v1329_v32  ;;  %v6256_v62 = vld [vmem:[#allocation34_spill] sm:$0xff]  ;;  %v6268_v50 = vld [vmem:[#allocation39_spill] sm:$0xff] }
 0x37b   :  { %v1438_v42 = vadd.f32 %v6257_v13, %v1384_v39 }
 0x37c   :  { %v1597_v59 = vadd.f32 %v4959_v10, %v1543_v48  ;;  %v1437_v10 = vadd.f32 %v4898_v26, %v1383_v43  ;;  %v898_v26 = vmul.f32 %v4632_v38, %v4705_v22  ;;  %v6260_v38 = vld [vmem:[#allocation50_spill] sm:$0xff] }
 0x37e   :  { %2400 = vrot.lane.b32.xlu1 %v4553_v27, %s4012_s13  ;;  %v1491_v7 = vadd.f32 %v4880_v37, %v1437_v10  ;;  %v952_v16 = vadd.f32 %v6256_v62, %v898_v26 }
 0x37f   :  { %1677 = vrot.lane.b32.xlu0 %v4984_v61, %s4011_s12 }
 0x380   :  { %v1545_v6 = vadd.f32 %v6255_v53, %v1491_v7 }
 0x382   :  { %v1599_v0 = vadd.f32 %v4964_v21, %v1545_v6 }
 0x386   :  { %1679 = vrot.lane.b32.xlu1 %v4994_v5, %s4011_s12 }
 0x3a0   :  { %v1652_v44 = vpop.permute.xlu2 %1651 }
 0x3a1   :  { %v5004_v40 = vadd.f32 %v1652_v44, %v1598_v12  ;;  %v5091_v12 = vadd.f32 %v6258_v60, %v952_v16  ;;  %v6259_v44 = vld [vmem:[#allocation37_spill] sm:$0xff]  ;;  %v6275_v16 = vld [vmem:[#allocation12_spill] sm:$0xff] }
 0x3a2   :  { %v1492_v20 = vadd.f32 %v6259_v44, %v1438_v42  ;;  %v1056_v13 = vmul.f32 %v6275_v16, %v4538_v46 }
 0x3a3   :  { %1711 = vrot.lane.b32.xlu2 %v5004_v40, %s4011_s12 }
 0x3a4   :  { %v1546_v15 = vadd.f32 %v6260_v38, %v1492_v20  ;;  %v6277_v20 = vld [vmem:[#allocation22_spill] sm:$0xff] }
 0x3a6   :  { %v1600_v51 = vadd.f32 %v4968_v56, %v1546_v15  ;;  %v6278_v15 = vld [vmem:[#allocation11_spill] sm:$0xff] }
 0x3a8   :  { %v1658_v54 = vpop.permute.xlu2 %1657 }
 0x3a9   :  { %v5026_v25 = vadd.f32 %v1658_v54, %v1601_v45  ;;  %v6262_v54 = vld [vmem:[#allocation23_spill] sm:$0xff] }
 0x3aa   :  { %v1112_v45 = vadd.f32 %v6262_v54, %v1058_v24 }
 0x3ab   :  { %2464 = vrot.lane.b32.xlu2 %v4538_v46, %s4013_s14 }
 0x3ac   :  { %v1166_v56 = vadd.f32 %v6263_v30, %v1112_v45 }
 0x3ae   :  { %v1220_v63 = vadd.f32 %v6264_v3, %v1166_v56 }
 0x3b0   :  { %v5074_v36 = vpop.permute.xlu2 %2402  ;;  %v5128_v28 = vadd.f32 %v6266_v9, %v1220_v63  ;;  %v6283_v63 = vld [vmem:[#allocation24_spill] sm:$0xff] }
 0x3b3   :  { %1687 = vrot.lane.b32.xlu2 %v5014_v35, %s4011_s12 }
 0x3b8   :  { %v5103_v8 = vpop.permute.xlu2 %1681 }
 0x3bb   :  { %2470 = vrot.lane.b32.xlu2 %v4689_v2, %s4013_s14 }
 0x3c3   :  { %1717 = vrot.lane.b32.xlu2 %v5026_v25, %s4011_s12 }
 0x3cb   :  { %2488 = vrot.lane.b32.xlu2 %v4538_v46, %s4014_s15 }
 0x3d3   :  { %2494 = vrot.lane.b32.xlu2 %v4689_v2, %s4014_s15 }
 0x3d9   :  { %v1648_v29 = vpop.permute.xlu0 %1647 }
 0x3da   :  { %v5045_v19 = vadd.f32 %v1648_v29, %v1596_v49  ;;  %v6267_v49 = vld [vmem:[#allocation18_spill] sm:$0xff] }
 0x3db   :  { %2594 = vrot.lane.b32.xlu2 %v4574_v14, %s4015_s16  ;;  %v1061_v29 = vmul.f32 %v6267_v49, %v4731_v1  ;;  %v6285_v49 = vld [vmem:[#allocation32_spill] sm:$0xff] }
 0x3dc   :  { %1707 = vrot.lane.b32.xlu0 %v5045_v19, %s4011_s12 }
 0x3dd   :  { %v1115_v48 = vadd.f32 %v6268_v50, %v1061_v29 }
 0x3e0   :  { %v1650_v23 = vpop.permute.xlu1 %1649 }
 0x3e1   :  { %v5054_v34 = vadd.f32 %v1650_v23, %v1597_v59  ;;  %v1654_v18 = vpop.permute.xlu0 %1653  ;;  %v6270_v23 = vld [vmem:[#allocation33_spill] sm:$0xff] }
 0x3e2   :  { %v5093_v37 = vadd.f32 %v1654_v18, %v1599_v0  ;;  %v1169_v32 = vadd.f32 %v6270_v23, %v1115_v48  ;;  %v6276_v18 = vld [vmem:[#allocation25_spill] sm:$0xff] }
 0x3e3   :  { %2600 = vrot.lane.b32.xlu2 %v4731_v1, %s4015_s16  ;;  %1709 = vrot.lane.b32.xlu1 %v5054_v34, %s4011_s12  ;;  %v1110_v0 = vadd.f32 %v6276_v18, %v1056_v13  ;;  %v6290_v18 = vld [vmem:[#allocation35_spill] sm:$0xff] }
 0x3e4   :  { %2404 = vrot.lane.b32.xlu0 %v4689_v2, %s4012_s13  ;;  %v1223_v43 = vadd.f32 %v6271_v17, %v1169_v32  ;;  %v6286_v17 = vld [vmem:[#allocation19_spill] sm:$0xff] }
 0x3e5   :  { %v1164_v38 = vadd.f32 %v6277_v20, %v1110_v0  ;;  %v6291_v20 = vld [vmem:[#allocation13_spill] sm:$0xff] }
 0x3e6   :  { %v5152_v10 = vadd.f32 %v6272_v57, %v1223_v43  ;;  %v1059_v43 = vmul.f32 %v6286_v17, %v4689_v2  ;;  %v6287_v57 = vld [vmem:[#allocation38_spill] sm:$0xff] }
 0x3e8   :  { %v1656_v21 = vpop.permute.xlu1 %1655 }
 0x3e9   :  { %v5106_v52 = vadd.f32 %v1656_v21, %v1600_v51  ;;  %v5178_v6 = vpop.permute.xlu0 %2398  ;;  %v1057_v21 = vmul.f32 %v6278_v15, %v4553_v27  ;;  %v6279_v51 = vld [vmem:[#allocation29_spill] sm:$0xff]  ;;  %v6292_v15 = vld [vmem:[#allocation20_spill] sm:$0xff] }
 0x3ea   :  { %v1218_v33 = vadd.f32 %v6279_v51, %v1164_v38  ;;  %v857_v38 = vmul.f32 %v6291_v20, %v4574_v14  ;;  %v6293_v51 = vld [vmem:[#allocation44_spill] sm:$0xff] }
 0x3eb   :  { %2618 = vrot.lane.b32.xlu2 %v4574_v14, %s4016_s17  ;;  %2406 = vrot.lane.b32.xlu1 %v4705_v22, %s4012_s13 }
 0x3ec   :  { %1683 = vrot.lane.b32.xlu0 %v5070_v31, %s4011_s12 }
 0x3f0   :  { %v5186_v42 = vpop.permute.xlu1 %2400 }
 0x3f1   :  { %v5195_v44 = vpop.permute.xlu0 %1677 }
 0x3f3   :  { %2624 = vrot.lane.b32.xlu2 %v4731_v1, %s4016_s17  ;;  %1685 = vrot.lane.b32.xlu1 %v5091_v12, %s4011_s12 }
 0x3f4   :  { %1713 = vrot.lane.b32.xlu0 %v5093_v37, %s4011_s12 }
 0x3f8   :  { %v5207_v45 = vpop.permute.xlu1 %1679 }
 0x3fb   :  { %2672 = vrot.lane.b32.xlu2 %v4574_v14, %s4017_s18  ;;  %1715 = vrot.lane.b32.xlu1 %v5106_v52, %s4011_s12 }
 0x3fc   :  { %2408 = vrot.lane.b32.xlu0 %v4731_v1, %s4012_s13 }
 0x3fd   :  { %v1712_v4 = vpop.permute.xlu2 %1711 }
 0x3fe   :  { %v1727_v58 = vmax.f32 %v5128_v28, %v1712_v4  ;;  %v6281_v4 = vld [vmem:[#allocation31_spill] sm:$0xff] }
 0x3ff   :  { %v5205_v54 = vadd.f32 %v6281_v4, %v1218_v33  ;;  %v1697_v4 = vmax.f32 %v857_v38, %v5103_v8  ;;  %v6298_v8 = vld [vmem:[#allocation49_spill] sm:$0xff] }
 0x403   :  { %2678 = vrot.lane.b32.xlu2 %v4731_v1, %s4017_s18  ;;  %2466 = vrot.lane.b32.xlu1 %v4553_v27, %s4013_s14 }
 0x404   :  { %2468 = vrot.lane.b32.xlu0 %v4574_v14, %s4013_s14 }
 0x405   :  { %v5125_v55 = vpop.permute.xlu2 %2464 }
 0x406   :  { %6265 = vst [vmem:[#allocation48_spill] sm:$0xff] %v5125_v55 }
 0x40b   :  { %1741 = vrot.lane.b32.xlu2 %v1727_v58, %s4018_s20  ;;  %2472 = vrot.lane.b32.xlu1 %v4705_v22, %s4013_s14 }
 0x40c   :  { %2474 = vrot.lane.b32.xlu0 %v4731_v1, %s4013_s14 }
 0x40d   :  { %v5136_v47 = vpop.permute.xlu2 %1687 }
 0x413   :  { %2490 = vrot.lane.b32.xlu1 %v4553_v27, %s4014_s15 }
 0x414   :  { %2492 = vrot.lane.b32.xlu0 %v4574_v14, %s4014_s15  ;;  %v6296_v14 = vld [vmem:[#allocation36_spill] sm:$0xff] }
 0x415   :  { %v5145_v59 = vpop.permute.xlu2 %2470 }
 0x416   :  { %6269 = vst [vmem:[#allocation34_spill] sm:$0xff] %v5145_v59 }
 0x41b   :  { %2496 = vrot.lane.b32.xlu1 %v4705_v22, %s4014_s15 }
 0x41c   :  { %2498 = vrot.lane.b32.xlu0 %v4731_v1, %s4014_s15  ;;  %s4030_s15 = smov 104  }
 0x41d   :  { %v1718_v11 = vpop.permute.xlu2 %1717 }
 0x41e   :  { %v1730_v7 = vmax.f32 %v5152_v10, %v1718_v11  ;;  %v1113_v11 = vadd.f32 %v6287_v57, %v1059_v43 }
 0x420   :  { %1747 = vrot.lane.b32.xlu2 %v1730_v7, %s4018_s20  ;;  %v1167_v0 = vadd.f32 %v6290_v18, %v1113_v11 }
 0x422   :  { %v1221_v33 = vadd.f32 %v6293_v51, %v1167_v0 }
 0x423   :  { %2590 = vrot.lane.b32.xlu1 %v4538_v46, %s4015_s16 }
 0x424   :  { %2592 = vrot.lane.b32.xlu0 %v4553_v27, %s4015_s16 }
 0x425   :  { %v5162_v26 = vpop.permute.xlu2 %2488 }
 0x42b   :  { %2596 = vrot.lane.b32.xlu1 %v4689_v2, %s4015_s16 }
 0x42c   :  { %2598 = vrot.lane.b32.xlu0 %v4705_v22, %s4015_s16 }
 0x42d   :  { %v5168_v39 = vpop.permute.xlu2 %2494 }
 0x433   :  { %2614 = vrot.lane.b32.xlu1 %v4538_v46, %s4016_s17 }
 0x434   :  { %2616 = vrot.lane.b32.xlu0 %v4553_v27, %s4016_s17 }
 0x435   :  { %v5174_v53 = vpop.permute.xlu2 %2594 }
 0x436   :  { %6273 = vst [vmem:[#allocation43_spill] sm:$0xff] %v5174_v53  ;;  %v5327_v53 = vld [vmem:[%s6207_s4 + $0x8] sm:$0xff] }
 0x43b   :  { %2620 = vrot.lane.b32.xlu1 %v4689_v2, %s4016_s17 }
 0x43c   :  { %2622 = vrot.lane.b32.xlu0 %v4705_v22, %s4016_s17 }
 0x43d   :  { %v5182_v62 = vpop.permute.xlu2 %2600 }
 0x43e   :  { %6274 = vst [vmem:[#allocation45_spill] sm:$0xff] %v5182_v62 }
 0x443   :  { %2668 = vrot.lane.b32.xlu1 %v4538_v46, %s4017_s18  ;;  %v6280_v46 = vld [vmem:[#allocation26_spill] sm:$0xff] }
 0x444   :  { %2670 = vrot.lane.b32.xlu0 %v4553_v27, %s4017_s18  ;;  %v1111_v24 = vadd.f32 %v6280_v46, %v1057_v21  ;;  %v6284_v27 = vld [vmem:[#allocation30_spill] sm:$0xff]  ;;  %v1060_v21 = vmul.f32 %v6292_v15, %v4705_v22  ;;  %v6294_v46 = vld [vmem:[#allocation40_spill] sm:$0xff] }
 0x445   :  { %v5193_v60 = vpop.permute.xlu2 %2618 }
 0x446   :  { %v1165_v9 = vadd.f32 %v6283_v63, %v1111_v24  ;;  %v1114_v24 = vadd.f32 %v6294_v46, %v1060_v21 }
 0x448   :  { %v1219_v58 = vadd.f32 %v6284_v27, %v1165_v9 }
 0x44a   :  { %v5216_v29 = vadd.f32 %v6285_v49, %v1219_v58 }
 0x44b   :  { %2674 = vrot.lane.b32.xlu1 %v4689_v2, %s4017_s18 }
 0x44d   :  { %v5209_v30 = vpop.permute.xlu2 %2624 }
 0x44e   :  { %6282 = vst [vmem:[#allocation37_spill] sm:$0xff] %v5209_v30  ;;  %v1708_v56 = vpop.permute.xlu0 %1707 }
 0x44f   :  { %v1725_v3 = vmax.f32 %v5205_v54, %v1708_v56  ;;  %v6295_v56 = vld [vmem:[#allocation46_spill] sm:$0xff] }
 0x451   :  { %1737 = vrot.lane.b32.xlu0 %v1725_v3, %s4018_s20  ;;  %v5244_v3 = vadd.f32 %v6295_v56, %v1221_v33 }
 0x455   :  { %v5218_v50 = vpop.permute.xlu2 %2672  ;;  %v1710_v48 = vpop.permute.xlu1 %1709 }
 0x456   :  { %v5220_v23 = vpop.permute.xlu0 %2404  ;;  %v1726_v32 = vmax.f32 %v5216_v29, %v1710_v48  ;;  %v1168_v48 = vadd.f32 %v6296_v14, %v1114_v24  ;;  %v6304_v24 = vld [vmem:[#allocation16_spill] sm:$0xff] }
 0x458   :  { %1739 = vrot.lane.b32.xlu1 %v1726_v32, %s4018_s20  ;;  %v6297_v32 = vld [vmem:[#allocation47_spill] sm:$0xff] }
 0x459   :  { %2676 = vrot.lane.b32.xlu0 %v4705_v22, %s4017_s18  ;;  %v1222_v17 = vadd.f32 %v6297_v32, %v1168_v48 }
 0x45b   :  { %v5254_v43 = vadd.f32 %v6298_v8, %v1222_v17 }
 0x45d   :  { %v5229_v7 = vpop.permute.xlu2 %2678  ;;  %v5231_v16 = vpop.permute.xlu1 %2406 }
 0x45e   :  { %6288 = vst [vmem:[#allocation50_spill] sm:$0xff] %v5229_v7  ;;  %v5233_v13 = vpop.permute.xlu0 %1683 }
 0x45f   :  { %6289 = vst [vmem:[#allocation10_spill] sm:$0xff] %v5231_v16 }
 0x465   :  { %v1742_v63 = vpop.permute.xlu2 %1741  ;;  %v5246_v9 = vpop.permute.xlu1 %1685 }
 0x466   :  { %v1757_v27 = vmax.f32 %v1697_v4, %v1742_v63  ;;  %v1714_v58 = vpop.permute.xlu0 %1713 }
 0x467   :  { %v1728_v49 = vmax.f32 %v5244_v3, %v1714_v58 }
 0x468   :  { %1789 = vrot.lane.b32.xlu2 %v1757_v27, %s4019_s21  ;;  %v1763_v0 = vsub.f32 %v857_v38, %v1757_v27  ;;  %v860_v38 = vmul.f32 %v6304_v24, %v4731_v1 }
 0x469   :  { %1743 = vrot.lane.b32.xlu0 %v1728_v49, %s4018_s20 }
 0x46a   :  { %v1771_v20 = vmul.f32 1.442695, %v1763_v0  ;;  %v1700_v56 = vmax.f32 %v860_v38, %v5136_v47 }
 0x46c   :  { %3869 = vpow2.f32 %v1771_v20 }
 0x46d   :  { %v1716_v57 = vpop.permute.xlu1 %1715 }
 0x46e   :  { %v1729_v11 = vmax.f32 %v5254_v43, %v1716_v57  ;;  %v5257_v18 = vpop.permute.xlu0 %2408 }
 0x46f   :  { %6299 = vst [vmem:[#allocation23_spill] sm:$0xff] %v5257_v18 }
 0x470   :  { %1825 = vrot.lane.b32.xlu2 %v1757_v27, %s4020_s22  ;;  %1745 = vrot.lane.b32.xlu1 %v1729_v11, %s4018_s20 }
 0x472   :  { %v5270_v46 = vpop.eup %3869 }
 0x475   :  { %v5261_v15 = vpop.permute.xlu1 %2466 }
 0x476   :  { %6300 = vst [vmem:[#allocation21_spill] sm:$0xff] %v5261_v15  ;;  %v5263_v21 = vpop.permute.xlu0 %2468 }
 0x477   :  { %6301 = vst [vmem:[#allocation27_spill] sm:$0xff] %v5263_v21  ;;  %v6312_v21 = vld [vmem:[#allocation14_spill] sm:$0xff] }
 0x478   :  { %1861 = vrot.lane.b32.xlu2 %v1757_v27, %s4001_s19 }
 0x47a   :  { %v1748_v4 = vpop.permute.xlu2 %1747 }
 0x47b   :  { %v1760_v58 = vmax.f32 %v1700_v56, %v1748_v4  ;;  %v5315_v56 = vld [vmem:[%s6207_s4] sm:$0xff] }
 0x47d   :  { %v5266_v51 = vpop.permute.xlu1 %2472  ;;  %v1766_v48 = vsub.f32 %v860_v38, %v1760_v58 }
 0x47e   :  { %6302 = vst [vmem:[#allocation28_spill] sm:$0xff] %v5266_v51  ;;  %v5268_v33 = vpop.permute.xlu0 %2474 }
 0x47f   :  { %6303 = vst [vmem:[#allocation18_spill] sm:$0xff] %v5268_v33  ;;  %v1777_v32 = vmul.f32 1.442695, %v1766_v48 }
 0x480   :  { %1993 = vrot.lane.b32.xlu2 %v5270_v46, %s4006_s28 }
 0x481   :  { %3871 = vpow2.f32 %v1777_v32 }
 0x485   :  { %v5277_v63 = vpop.permute.xlu1 %2490 }
 0x486   :  { %v5279_v27 = vpop.permute.xlu0 %2492 }
 0x487   :  { %v5296_v57 = vpop.eup %3871 }
 0x488   :  { %1795 = vrot.lane.b32.xlu2 %v1760_v58, %s4019_s21 }
 0x48d   :  { %v5282_v49 = vpop.permute.xlu1 %2496 }
 0x48e   :  { %6305 = vst [vmem:[#allocation39_spill] sm:$0xff] %v5282_v49  ;;  %v5284_v14 = vpop.permute.xlu0 %2498 }
 0x48f   :  { %6306 = vst [vmem:[#allocation33_spill] sm:$0xff] %v5284_v14 }
 0x490   :  { %1831 = vrot.lane.b32.xlu2 %v1760_v58, %s4020_s22 }
 0x495   :  { %v5287_v17 = vpop.permute.xlu1 %2590 }
 0x496   :  { %6307 = vst [vmem:[#allocation41_spill] sm:$0xff] %v5287_v17  ;;  %v5289_v1 = vpop.permute.xlu0 %2592 }
 0x497   :  { %6308 = vst [vmem:[#allocation42_spill] sm:$0xff] %v5289_v1 }
 0x498   :  { %1867 = vrot.lane.b32.xlu2 %v1760_v58, %s4001_s19  ;;  %v6311_v58 = vld [vmem:[#allocation9_spill] sm:$0xff] }
 0x499   :  { %v855_v48 = vmul.f32 %v5315_v56, %v6311_v58  ;;  %v856_v58 = vmul.f32 %v5327_v53, %v6312_v21 }
 0x49b   :  { %v1695_v62 = vmax.f32 %v855_v48, %v5195_v44  ;;  %v1696_v15 = vmax.f32 %v856_v58, %v5207_v45 }
 0x49d   :  { %v5292_v47 = vpop.permute.xlu1 %2596 }
 0x49e   :  { %6309 = vst [vmem:[#allocation12_spill] sm:$0xff] %v5292_v47  ;;  %v5294_v8 = vpop.permute.xlu0 %2598 }
 0x49f   :  { %6310 = vst [vmem:[#allocation25_spill] sm:$0xff] %v5294_v8 }
 0x4a0   :  { %1999 = vrot.lane.b32.xlu2 %v5296_v57, %s4006_s28 }
 0x4a5   :  { %v5300_v11 = vpop.permute.xlu1 %2614 }
 0x4a6   :  { %v5302_v0 = vpop.permute.xlu0 %2616 }
 0x4ad   :  { %v5304_v20 = vpop.permute.xlu1 %2620 }
 0x4ae   :  { %v5306_v24 = vpop.permute.xlu0 %2622 }
 0x4b5   :  { %v5308_v38 = vpop.permute.xlu1 %2668 }
 0x4b6   :  { %v5310_v4 = vpop.permute.xlu0 %2670 }
 0x4bd   :  { %v5319_v32 = vpop.permute.xlu1 %2674 }
 0x4c2   :  { %v1790_v33 = vpop.permute.xlu2 %1789 }
 0x4c3   :  { %v1738_v8 = vpop.permute.xlu0 %1737  ;;  %v1805_v51 = vsub.f32 %v4962_v41, %v1790_v33 }
 0x4c4   :  { %v1755_v47 = vmax.f32 %v1695_v62, %v1738_v8 }
 0x4c5   :  { %v1813_v59 = vmul.f32 1.442695, %v1805_v51 }
 0x4c6   :  { %1785 = vrot.lane.b32.xlu0 %v1755_v47, %s4019_s21  ;;  %v1761_v33 = vsub.f32 %v855_v48, %v1755_v47 }
 0x4c7   :  { %3873 = vpow2.f32 %v1813_v59 }
 0x4c8   :  { %v1767_v8 = vmul.f32 1.442695, %v1761_v33 }
 0x4ca   :  { %v1826_v44 = vpop.permute.xlu2 %1825  ;;  %v1740_v1 = vpop.permute.xlu1 %1739 }
 0x4cb   :  { %v1841_v17 = vsub.f32 %v5128_v28, %v1826_v44  ;;  %v1756_v41 = vmax.f32 %v1696_v15, %v1740_v1  ;;  %v5340_v15 = vpop.permute.xlu0 %2676 }
 0x4cc   :  { %6313 = vst [vmem:[#allocation22_spill] sm:$0xff] %v5340_v15 }
 0x4cd   :  { %v3874_v62 = vpop.eup %3873  ;;  %v1849_v51 = vmul.f32 1.442695, %v1841_v17  ;;  %1787 = vrot.lane.b32.xlu1 %v1756_v41, %s4019_s21  ;;  %v1762_v28 = vsub.f32 %v856_v58, %v1756_v41 }
 0x4ce   :  { %1821 = vrot.lane.b32.xlu0 %v1755_v47, %s4020_s22  ;;  %1903 = vrot.lane.b32.xlu2 %v3874_v62, %s4011_s12 }
 0x4cf   :  { %3875 = vpow2.f32 %v1849_v51  ;;  %v1769_v17 = vmul.f32 1.442695, %v1762_v28 }
 0x4d0   :  { %3877 = vpow2.f32 %v1767_v8 }
 0x4d2   :  { %v1862_v21 = vpop.permute.xlu2 %1861 }
 0x4d3   :  { %v1877_v59 = vsub.f32 %v5004_v40, %v1862_v21  ;;  %v6314_v40 = vld [vmem:[#allocation17_spill] sm:$0xff] }
 0x4d5   :  { %v3876_v45 = vpop.eup %3875  ;;  %v1885_v55 = vmul.f32 1.442695, %v1877_v59  ;;  %1823 = vrot.lane.b32.xlu1 %v1756_v41, %s4020_s22 }
 0x4d6   :  { %1857 = vrot.lane.b32.xlu0 %v1755_v47, %s4001_s19  ;;  %1933 = vrot.lane.b32.xlu2 %v3876_v45, %s4018_s20  ;;  %v5344_v48 = vpop.eup %3877  ;;  %v858_v47 = vmul.f32 %v6314_v40, %v4689_v2 }
 0x4d7   :  { %3879 = vpow2.f32 %v1885_v55 }
 0x4d8   :  { %3881 = vpow2.f32 %v1769_v17  ;;  %v1698_v55 = vmax.f32 %v858_v47, %v5233_v13 }
 0x4da   :  { %v5342_v1 = vpop.permute.xlu2 %1993 }
 0x4db   :  { %v1744_v58 = vpop.permute.xlu0 %1743 }
 0x4dc   :  { %v1758_v8 = vmax.f32 %v1698_v55, %v1744_v58 }
 0x4dd   :  { %v3880_v44 = vpop.eup %3879  ;;  %1859 = vrot.lane.b32.xlu1 %v1756_v41, %s4001_s19  ;;  %v6315_v41 = vld [vmem:[#allocation15_spill] sm:$0xff] }
 0x4de   :  { %1989 = vrot.lane.b32.xlu0 %v5344_v48, %s4006_s28  ;;  %1963 = vrot.lane.b32.xlu2 %v3880_v44, %s4012_s13  ;;  %v5353_v33 = vpop.eup %3881  ;;  %v859_v21 = vmul.f32 %v6315_v41, %v4705_v22  ;;  %v1764_v40 = vsub.f32 %v858_v47, %v1758_v8 }
 0x4e0   :  { %v1699_v28 = vmax.f32 %v859_v21, %v5246_v9  ;;  %v1773_v58 = vmul.f32 1.442695, %v1764_v40 }
 0x4e2   :  { %v1796_v51 = vpop.permute.xlu2 %1795  ;;  %v1746_v2 = vpop.permute.xlu1 %1745 }
 0x4e3   :  { %v1808_v59 = vsub.f32 %v5014_v35, %v1796_v51  ;;  %v1759_v44 = vmax.f32 %v1699_v28, %v1746_v2 }
 0x4e5   :  { %1991 = vrot.lane.b32.xlu1 %v5353_v33, %s4006_s28  ;;  %v1819_v17 = vmul.f32 1.442695, %v1808_v59  ;;  %v1765_v9 = vsub.f32 %v859_v21, %v1759_v44 }
 0x4e6   :  { %1791 = vrot.lane.b32.xlu0 %v1758_v8, %s4019_s21  ;;  %2011 = vrot.lane.b32.xlu2 %v3874_v62, %s4015_s16 }
 0x4e7   :  { %3883 = vpow2.f32 %v1819_v17  ;;  %v1775_v51 = vmul.f32 1.442695, %v1765_v9 }
 0x4e8   :  { %3885 = vpow2.f32 %v1773_v58 }
 0x4ea   :  { %v1832_v13 = vpop.permute.xlu2 %1831 }
 0x4eb   :  { %v1844_v62 = vsub.f32 %v5152_v10, %v1832_v13 }
 0x4ed   :  { %1793 = vrot.lane.b32.xlu1 %v1759_v44, %s4019_s21  ;;  %v1855_v22 = vmul.f32 1.442695, %v1844_v62  ;;  %v3884_v35 = vpop.eup %3883 }
 0x4ee   :  { %1827 = vrot.lane.b32.xlu0 %v1758_v8, %s4020_s22  ;;  %2029 = vrot.lane.b32.xlu2 %v3876_v45, %s4013_s14  ;;  %v5371_v41 = vpop.eup %3885 }
 0x4ef   :  { %3887 = vpow2.f32 %v1855_v22 }
 0x4f0   :  { %3889 = vpow2.f32 %v1775_v51 }
 0x4f2   :  { %v1868_v55 = vpop.permute.xlu2 %1867 }
 0x4f3   :  { %v1880_v47 = vsub.f32 %v5026_v25, %v1868_v55  ;;  %v6211_v25 = vmov 3  }
 0x4f4   :  { %3833 = vset.pattern.permute.xlu2 %v6211_v25  ;;  %3831 = vset.pattern.permute.xlu0 %v6211_v25 }
 0x4f5   :  { %1829 = vrot.lane.b32.xlu1 %v1759_v44, %s4020_s22  ;;  %v1891_v45 = vmul.f32 1.442695, %v1880_v47  ;;  %v3888_v10 = vpop.eup %3887 }
 0x4f6   :  { %1863 = vrot.lane.b32.xlu0 %v1758_v8, %s4001_s19  ;;  %1909 = vrot.lane.b32.xlu2 %v3884_v35, %s4011_s12  ;;  %v5377_v8 = vpop.eup %3889 }
 0x4f7   :  { %3891 = vpow2.f32 %v1891_v45  ;;  %3832 = vset.pattern.permute.xlu1 %v6211_v25 }
 0x4fa   :  { %v5387_v59 = vpop.permute.xlu2 %1999 }
 0x4fd   :  { %1865 = vrot.lane.b32.xlu1 %v1759_v44, %s4001_s19  ;;  %v3892_v21 = vpop.eup %3891 }
 0x4fe   :  { %1995 = vrot.lane.b32.xlu0 %v5371_v41, %s4006_s28  ;;  %1939 = vrot.lane.b32.xlu2 %v3888_v10, %s4018_s20 }
 0x505   :  { %1997 = vrot.lane.b32.xlu1 %v5377_v8, %s4006_s28 }
 0x506   :  { %1969 = vrot.lane.b32.xlu2 %v3892_v21, %s4012_s13 }
 0x50e   :  { %2017 = vrot.lane.b32.xlu2 %v3884_v35, %s4015_s16 }
 0x516   :  { %2035 = vrot.lane.b32.xlu2 %v3888_v10, %s4013_s14 }
 0x528   :  { %v1904_v2 = vpop.permute.xlu2 %1903 }
 0x529   :  { %v1919_v13 = vadd.f32 %v5270_v46, %v1904_v2 }
 0x530   :  { %v1934_v28 = vpop.permute.xlu2 %1933 }
 0x531   :  { %v1949_v17 = vadd.f32 %v1934_v28, %v1919_v13 }
 0x538   :  { %v1786_v44 = vpop.permute.xlu0 %1785  ;;  %v5390_v40 = vpop.permute.xlu2 %1963 }
 0x539   :  { %v1803_v62 = vsub.f32 %v4984_v61, %v1786_v44  ;;  %v1979_v58 = vadd.f32 %v5390_v40, %v1949_v17 }
 0x53b   :  { %v1809_v22 = vmul.f32 1.442695, %v1803_v62  ;;  %2076 = vperm.xlu2 %3833, %v1979_v58  }
 0x53d   :  { %3893 = vpow2.f32 %v1809_v22 }
 0x53f   :  { %v1788_v55 = vpop.permute.xlu1 %1787 }
 0x540   :  { %v1822_v35 = vpop.permute.xlu0 %1821  ;;  %v1804_v9 = vsub.f32 %v4994_v5, %v1788_v55  ;;  %v5404_v58 = vpop.permute.xlu2 %2011 }
 0x541   :  { %v1839_v47 = vsub.f32 %v5205_v54, %v1822_v35 }
 0x542   :  { %v1811_v51 = vmul.f32 1.442695, %v1804_v9 }
 0x543   :  { %v3894_v45 = vpop.eup %3893  ;;  %v1845_v46 = vmul.f32 1.442695, %v1839_v47 }
 0x544   :  { %3895 = vpow2.f32 %v1811_v51  ;;  %1899 = vrot.lane.b32.xlu0 %v3894_v45, %s4011_s12 }
 0x545   :  { %3897 = vpow2.f32 %v1845_v46 }
 0x547   :  { %v1824_v10 = vpop.permute.xlu1 %1823 }
 0x548   :  { %v1858_v61 = vpop.permute.xlu0 %1857  ;;  %v1840_v21 = vsub.f32 %v5216_v29, %v1824_v10  ;;  %v5410_v47 = vpop.permute.xlu2 %2029 }
 0x549   :  { %v1875_v2 = vsub.f32 %v5045_v19, %v1858_v61 }
 0x54a   :  { %v3896_v28 = vpop.eup %3895  ;;  %v1847_v13 = vmul.f32 1.442695, %v1840_v21 }
 0x54b   :  { %v3898_v17 = vpop.eup %3897  ;;  %v1881_v44 = vmul.f32 1.442695, %v1875_v2  ;;  %1901 = vrot.lane.b32.xlu1 %v3896_v28, %s4011_s12 }
 0x54c   :  { %3899 = vpow2.f32 %v1847_v13  ;;  %1929 = vrot.lane.b32.xlu0 %v3898_v17, %s4018_s20 }
 0x54d   :  { %3901 = vpow2.f32 %v1881_v44 }
 0x54f   :  { %v1860_v5 = vpop.permute.xlu1 %1859 }
 0x550   :  { %v5401_v54 = vpop.permute.xlu0 %1989  ;;  %v1876_v62 = vsub.f32 %v5054_v34, %v1860_v5  ;;  %v5418_v21 = vpop.permute.xlu2 %1909 }
 0x552   :  { %v3900_v29 = vpop.eup %3899  ;;  %v1883_v22 = vmul.f32 1.442695, %v1876_v62 }
 0x553   :  { %v3902_v19 = vpop.eup %3901  ;;  %1931 = vrot.lane.b32.xlu1 %v3900_v29, %s4018_s20 }
 0x554   :  { %3903 = vpow2.f32 %v1883_v22  ;;  %1959 = vrot.lane.b32.xlu0 %v3902_v19, %s4012_s13 }
 0x557   :  { %v5408_v55 = vpop.permute.xlu1 %1991 }
 0x558   :  { %v1792_v35 = vpop.permute.xlu0 %1791 }
 0x559   :  { %v1806_v34 = vsub.f32 %v5070_v31, %v1792_v35 }
 0x55a   :  { %v3904_v9 = vpop.eup %3903 }
 0x55b   :  { %1961 = vrot.lane.b32.xlu1 %v3904_v9, %s4012_s13  ;;  %v1815_v10 = vmul.f32 1.442695, %v1806_v34 }
 0x55c   :  { %2007 = vrot.lane.b32.xlu0 %v3894_v45, %s4015_s16 }
 0x55d   :  { %3905 = vpow2.f32 %v1815_v10 }
 0x55f   :  { %v1794_v51 = vpop.permute.xlu1 %1793 }
 0x560   :  { %v1828_v46 = vpop.permute.xlu0 %1827  ;;  %v1807_v61 = vsub.f32 %v5091_v12, %v1794_v51 }
 0x561   :  { %v1842_v2 = vsub.f32 %v5244_v3, %v1828_v46 }
 0x562   :  { %v1817_v44 = vmul.f32 1.442695, %v1807_v61 }
 0x563   :  { %2009 = vrot.lane.b32.xlu1 %v3896_v28, %s4015_s16  ;;  %v1851_v5 = vmul.f32 1.442695, %v1842_v2  ;;  %v3906_v62 = vpop.eup %3905  ;;  %v5425_v28 = vpop.permute.xlu2 %1939 }
 0x564   :  { %2025 = vrot.lane.b32.xlu0 %v3898_v17, %s4013_s14  ;;  %3907 = vpow2.f32 %v1817_v44 }
 0x565   :  { %3909 = vpow2.f32 %v1851_v5 }
 0x567   :  { %v1830_v13 = vpop.permute.xlu1 %1829 }
 0x568   :  { %v1864_v45 = vpop.permute.xlu0 %1863  ;;  %v1843_v31 = vsub.f32 %v5254_v43, %v1830_v13 }
 0x569   :  { %v1878_v12 = vsub.f32 %v5093_v37, %v1864_v45 }
 0x56a   :  { %v1853_v17 = vmul.f32 1.442695, %v1843_v31  ;;  %v3908_v19 = vpop.eup %3907 }
 0x56b   :  { %2027 = vrot.lane.b32.xlu1 %v3900_v29, %s4013_s14  ;;  %v1887_v22 = vmul.f32 1.442695, %v1878_v12  ;;  %v3910_v35 = vpop.eup %3909  ;;  %v5430_v9 = vpop.permute.xlu2 %1969 }
 0x56c   :  { %1905 = vrot.lane.b32.xlu0 %v3906_v62, %s4011_s12  ;;  %3911 = vpow2.f32 %v1853_v17 }
 0x56d   :  { %3913 = vpow2.f32 %v1887_v22 }
 0x56f   :  { %v1866_v3 = vpop.permute.xlu1 %1865 }
 0x570   :  { %v1879_v29 = vsub.f32 %v5106_v52, %v1866_v3 }
 0x572   :  { %v1889_v43 = vmul.f32 1.442695, %v1879_v29  ;;  %v3912_v34 = vpop.eup %3911 }
 0x573   :  { %1907 = vrot.lane.b32.xlu1 %v3908_v19, %s4011_s12  ;;  %v3914_v37 = vpop.eup %3913  ;;  %v5434_v46 = vpop.permute.xlu2 %2017  ;;  %s4027_s12 = smov 106  }
 0x574   :  { %1935 = vrot.lane.b32.xlu0 %v3910_v35, %s4018_s20  ;;  %3915 = vpow2.f32 %v1889_v43 }
 0x57a   :  { %v3916_v51 = vpop.eup %3915 }
 0x57b   :  { %1937 = vrot.lane.b32.xlu1 %v3912_v34, %s4018_s20  ;;  %v5440_v52 = vpop.permute.xlu2 %2035 }
 0x57c   :  { %1965 = vrot.lane.b32.xlu0 %v3914_v37, %s4012_s13 }
 0x583   :  { %1967 = vrot.lane.b32.xlu1 %v3916_v51, %s4012_s13  ;;  %s4028_s13 = smov 105  }
 0x584   :  { %2013 = vrot.lane.b32.xlu0 %v3906_v62, %s4015_s16  ;;  %v2046_v62 = vsel %vm2043_vm9, %v5342_v1, %v5404_v58  ;;  %v5455_v1 = vpop.permute.xlu0 %1995  ;;  %v5457_v58 = vpop.permute.xlu1 %1997 }
 0x585   :  { %v2053_v31 = vsel %vm2050_vm10, %v2046_v62, %v5410_v47 }
 0x586   :  { %v2060_v3 = vsel %vm2057_vm12, %v2053_v31, %v5390_v40 }
 0x58b   :  { %2015 = vrot.lane.b32.xlu1 %v3908_v19, %s4015_s16 }
 0x58c   :  { %2031 = vrot.lane.b32.xlu0 %v3910_v35, %s4013_s14 }
 0x593   :  { %2033 = vrot.lane.b32.xlu1 %v3912_v34, %s4013_s14  ;;  %s4029_s14 = smov 111  }
 0x595   :  { %v2077_v10 = vpop.permute.xlu2 %2076 }
 0x596   :  { %3917 = vrcp.f32 %v2077_v10  ;;  %v2135_v44 = vand.u32 2147483648, %v2077_v10  ;;  %v2133_v45 = vand.u32 2147483647, %v2077_v10  ;;  %vm2129_vm13 = vweird.f32 %v2077_v10 }
 0x598   :  { %v2136_v17 = vor.u32 1.1754944e-38, %v2135_v44  ;;  %vm2134_vm15 = vcmp.eq.f32.partialorder %v2133_v45, 8.507059e+37 }
 0x59c   :  { %v3918_v61 = vpop.eup %3917 }
 0x59d   :  { %v2125_v2 = vmul.f32 %v3918_v61, %v2077_v10  ;;  %vm2130_vm11 = vweird.f32 %v3918_v61 }
 0x59e   :  { %vm2131_vm14 = vmor %vm2129_vm13, %vm2130_vm11 }
 0x59f   :  { %v2126_v13 = vsub.f32 1.0, %v2125_v2  ;;  %v1922_v2 = vadd.f32 %v5296_v57, %v5418_v21  ;;  %v5484_v21 = vld [vmem:[%s6207_s4 + $0x18] sm:$0xff] }
 0x5a1   :  { %v2127_v5 = vmul.f32 %v3918_v61, %v2126_v13  ;;  %v1952_v44 = vadd.f32 %v5425_v28, %v1922_v2 }
 0x5a3   :  { %v2128_v12 = vadd.f32 %v3918_v61, %v2127_v5  ;;  %v1982_v62 = vadd.f32 %v5430_v9, %v1952_v44 }
 0x5a5   :  { %v2132_v22 = vsel %vm2131_vm14, %v3918_v61, %v2128_v12 }
 0x5a6   :  { %v2137_v19 = vsel %vm2134_vm15, %v2136_v17, %v2132_v22 }
 0x5a7   :  { %v5450_v35 = vmul.f32 %v2137_v19, %v2060_v3 }
 0x5a9   :  { %3683 = vmatpush.xpose.msk.msra.mxu0 %vm2184_vm0, %v5450_v35  ;;  %2276 = vmatpush.msra.mxu1 %v5450_v35 }
 0x5b6   :  { %v1900_v47 = vpop.permute.xlu0 %1899 }
 0x5b7   :  { %v1917_v34 = vadd.f32 %v5344_v48, %v1900_v47 }
 0x5bd   :  { %v1902_v29 = vpop.permute.xlu1 %1901 }
 0x5be   :  { %v1930_v43 = vpop.permute.xlu0 %1929  ;;  %v1918_v61 = vadd.f32 %v5353_v33, %v1902_v29 }
 0x5bf   :  { %v1947_v37 = vadd.f32 %v1930_v43, %v1917_v34 }
 0x5c5   :  { %v1932_v40 = vpop.permute.xlu1 %1931 }
 0x5c6   :  { %v5460_v51 = vpop.permute.xlu0 %1959  ;;  %v1948_v13 = vadd.f32 %v1932_v40, %v1918_v61 }
 0x5c7   :  { %v1977_v10 = vadd.f32 %v5460_v51, %v1947_v37 }
 0x5c9   :  { %2066 = vperm.xlu0 %3831, %v1977_v10   ;;  %v5521_v10 = vld [vmem:[%s6207_s4 + $0x20] sm:$0xff] }
 0x5cd   :  { %v5467_v5 = vpop.permute.xlu1 %1961 }
 0x5ce   :  { %v5469_v45 = vpop.permute.xlu0 %2007  ;;  %v1978_v48 = vadd.f32 %v5467_v5, %v1948_v13 }
 0x5d0   :  { %2071 = vperm.xlu1 %3832, %v1978_v48  }
 0x5d1   :  { %2091 = vperm.xlu0 %3831, %v1982_v62  }
 0x5d5   :  { %v5473_v31 = vpop.permute.xlu1 %2009 }
 0x5d6   :  { %v5475_v12 = vpop.permute.xlu0 %2025 }
 0x5d9   :  { %2770 = vrot.lane.b32.xlu0 %v5315_v56, %s4006_s28 }
 0x5dd   :  { %v5479_v57 = vpop.permute.xlu1 %2027 }
 0x5de   :  { %v1906_v33 = vpop.permute.xlu0 %1905 }
 0x5df   :  { %v1920_v22 = vadd.f32 %v5371_v41, %v1906_v33  ;;  %v5503_v41 = vld [vmem:[%s6207_s4 + $0x10] sm:$0xff] }
 0x5e1   :  { %2776 = vrot.lane.b32.xlu0 %v5484_v21, %s4006_s28 }
 0x5e5   :  { %v1908_v28 = vpop.permute.xlu1 %1907 }
 0x5e6   :  { %v1936_v17 = vpop.permute.xlu0 %1935  ;;  %v1921_v43 = vadd.f32 %v5377_v8, %v1908_v28  ;;  %v5513_v8 = vld [vmem:[%s6207_s4 + $0x28] sm:$0xff]  ;;  %s4025_s4 = smov 118  }
 0x5e7   :  { %v1950_v3 = vadd.f32 %v1936_v17, %v1920_v22 }
 0x5e9   :  { %2794 = vrot.lane.b32.xlu0 %v5315_v56, %s4022_s29 }
 0x5ed   :  { %v1938_v19 = vpop.permute.xlu1 %1937 }
 0x5ee   :  { %v5491_v47 = vpop.permute.xlu0 %1965  ;;  %v1951_v34 = vadd.f32 %v1938_v19, %v1921_v43 }
 0x5ef   :  { %v1980_v29 = vadd.f32 %v5491_v47, %v1950_v3  ;;  %v2049_v3 = vsel %vm2043_vm9, %v5387_v59, %v5434_v46  ;;  %v2044_v46 = vsel %vm2043_vm9, %v5401_v54, %v5469_v45 }
 0x5f0   :  { %v2056_v19 = vsel %vm2050_vm10, %v2049_v3, %v5440_v52 }
 0x5f1   :  { %2081 = vperm.xlu1 %3832, %v1980_v29   ;;  %2800 = vrot.lane.b32.xlu0 %v5484_v21, %s4022_s29  ;;  %v2063_v59 = vsel %vm2057_vm12, %v2056_v19, %v5430_v9 }
 0x5f5   :  { %v5497_v37 = vpop.permute.xlu1 %1967 }
 0x5f6   :  { %v1981_v40 = vadd.f32 %v5497_v37, %v1951_v34  ;;  %v5543_v61 = vpop.permute.xlu0 %2013 }
 0x5f8   :  { %2086 = vperm.xlu2 %3833, %v1981_v40  }
 0x5f9   :  { %2774 = vrot.lane.b32.xlu1 %v5503_v41, %s4006_s28  ;;  %2848 = vrot.lane.b32.xlu0 %v5315_v56, %s4023_s7 }
 0x5fd   :  { %v5548_v2 = vpop.permute.xlu1 %2015 }
 0x5fe   :  { %v5554_v13 = vpop.permute.xlu0 %2031 }
 0x600   :  { %2772 = vrot.lane.b32.xlu2 %v5327_v53, %s4006_s28 }
 0x601   :  { %2780 = vrot.lane.b32.xlu1 %v5513_v8, %s4006_s28  ;;  %2854 = vrot.lane.b32.xlu0 %v5484_v21, %s4023_s7 }
 0x605   :  { %v5561_v44 = vpop.permute.xlu1 %2033 }
 0x608   :  { %2778 = vrot.lane.b32.xlu2 %v5521_v10, %s4006_s28 }
 0x609   :  { %2798 = vrot.lane.b32.xlu1 %v5503_v41, %s4022_s29  ;;  %2902 = vrot.lane.b32.xlu0 %v5315_v56, %s4024_s10 }
 0x610   :  { %2796 = vrot.lane.b32.xlu2 %v5327_v53, %s4022_s29 }
 0x611   :  { %2804 = vrot.lane.b32.xlu1 %v5513_v8, %s4022_s29  ;;  %2908 = vrot.lane.b32.xlu0 %v5484_v21, %s4024_s10 }
 0x618   :  { %2802 = vrot.lane.b32.xlu2 %v5521_v10, %s4022_s29 }
 0x619   :  { %2852 = vrot.lane.b32.xlu1 %v5503_v41, %s4023_s7  ;;  %3008 = vrot.lane.b32.xlu0 %v5503_v41, %s4025_s4 }
 0x620   :  { %2850 = vrot.lane.b32.xlu2 %v5327_v53, %s4023_s7 }
 0x621   :  { %2858 = vrot.lane.b32.xlu1 %v5513_v8, %s4023_s7  ;;  %3014 = vrot.lane.b32.xlu0 %v5513_v8, %s4025_s4 }
 0x628   :  { %2856 = vrot.lane.b32.xlu2 %v5521_v10, %s4023_s7 }
 0x629   :  { %2906 = vrot.lane.b32.xlu1 %v5503_v41, %s4024_s10  ;;  %3032 = vrot.lane.b32.xlu0 %v5503_v41, %s4026_s11 }
 0x630   :  { %2904 = vrot.lane.b32.xlu2 %v5327_v53, %s4024_s10 }
 0x631   :  { %2912 = vrot.lane.b32.xlu1 %v5513_v8, %s4024_s10  ;;  %3038 = vrot.lane.b32.xlu0 %v5513_v8, %s4026_s11 }
 0x638   :  { %2910 = vrot.lane.b32.xlu2 %v5521_v10, %s4024_s10 }
 0x639   :  { %3006 = vrot.lane.b32.xlu1 %v5327_v53, %s4025_s4  ;;  %3086 = vrot.lane.b32.xlu0 %v5503_v41, %s4027_s12 }
 0x63b   :  { %v2067_v48 = vpop.permute.xlu0 %2066 }
 0x63c   :  { %3919 = vrcp.f32 %v2067_v48  ;;  %vm2099_vm1 = vweird.f32 %v2067_v48  ;;  %v2103_v3 = vand.u32 2147483647, %v2067_v48  ;;  %v2105_v14 = vand.u32 2147483648, %v2067_v48 }
 0x63e   :  { %vm5612_vm11 = vcmp.eq.f32.partialorder %v2103_v3, 8.507059e+37 }
 0x640   :  { %3004 = vrot.lane.b32.xlu2 %v5315_v56, %s4025_s4 }
 0x641   :  { %3012 = vrot.lane.b32.xlu1 %v5521_v10, %s4025_s4  ;;  %3092 = vrot.lane.b32.xlu0 %v5513_v8, %s4027_s12 }
 0x642   :  { %v5569_v62 = vpop.eup %3919  ;;  %v2072_v33 = vpop.permute.xlu1 %2071 }
 0x643   :  { %v2095_v28 = vmul.f32 %v5569_v62, %v2067_v48  ;;  %v2092_v17 = vpop.permute.xlu0 %2091  ;;  %3921 = vrcp.f32 %v2072_v33  ;;  %vm2100_vm2 = vweird.f32 %v5569_v62  ;;  %v2120_v19 = vand.u32 2147483648, %v2072_v33 }
 0x644   :  { %3923 = vrcp.f32 %v2092_v17  ;;  %v2180_v30 = vand.u32 2147483648, %v2092_v17  ;;  %v2178_v54 = vand.u32 2147483647, %v2092_v17  ;;  %v2118_v45 = vand.u32 2147483647, %v2072_v33  ;;  %vm5599_vm6 = vmor %vm2099_vm1, %vm2100_vm2 }
 0x645   :  { %v2096_v22 = vsub.f32 1.0, %v2095_v28  ;;  %v2045_v28 = vsel %vm2043_vm9, %v5408_v55, %v5473_v31  ;;  %v2051_v55 = vsel %vm2050_vm10, %v2044_v46, %v5475_v12  ;;  %vm2114_vm5 = vweird.f32 %v2072_v33 }
 0x646   :  { %v2052_v31 = vsel %vm2050_vm10, %v2045_v28, %v5479_v57  ;;  %vm2174_vm7 = vweird.f32 %v2092_v17  ;;  %v2121_v48 = vor.u32 1.1754944e-38, %v2120_v19  ;;  %v2106_v46 = vor.u32 1.1754944e-38, %v2105_v14 }
 0x647   :  { %v2097_v43 = vmul.f32 %v5569_v62, %v2096_v22  ;;  %vm2179_vm14 = vcmp.eq.f32.partialorder %v2178_v54, 8.507059e+37  ;;  %vm2119_vm15 = vcmp.eq.f32.partialorder %v2118_v45, 8.507059e+37  ;;  %v2058_v19 = vsel %vm2057_vm12, %v2051_v55, %v5460_v51 }
 0x648   :  { %3010 = vrot.lane.b32.xlu2 %v5484_v21, %s4025_s4  ;;  %v2048_v45 = vsel %vm2043_vm9, %v5457_v58, %v5548_v2 }
 0x649   :  { %v3922_v29 = vpop.eup %3921  ;;  %3030 = vrot.lane.b32.xlu1 %v5327_v53, %s4026_s11  ;;  %3208 = vrot.lane.b32.xlu0 %v5315_v56, %s4028_s13  ;;  %v2098_v7 = vadd.f32 %v5569_v62, %v2097_v43  ;;  %v2055_v55 = vsel %vm2050_vm10, %v2048_v45, %v5561_v44 }
 0x64a   :  { %v3924_v34 = vpop.eup %3923  ;;  %v2110_v40 = vmul.f32 %v3922_v29, %v2072_v33  ;;  %vm2115_vm3 = vweird.f32 %v3922_v29  ;;  %v2062_v58 = vsel %vm2057_vm12, %v2055_v55, %v5497_v37 }
 0x64b   :  { %v2170_v52 = vmul.f32 %v3924_v34, %v2092_v17  ;;  %vm2175_vm4 = vweird.f32 %v3924_v34  ;;  %vm5605_vm8 = vmor %vm2114_vm5, %vm2115_vm3  ;;  %v2102_v12 = vsel %vm5599_vm6, %v5569_v62, %v2098_v7  ;;  %v2059_v62 = vsel %vm2057_vm12, %v2052_v31, %v5467_v5 }
 0x64c   :  { %v2111_v22 = vsub.f32 1.0, %v2110_v40  ;;  %vm2176_vm13 = vmor %vm2174_vm7, %vm2175_vm4  ;;  %v2107_v3 = vsel %vm5612_vm11, %v2106_v46, %v2102_v12 }
 0x64d   :  { %v2171_v25 = vsub.f32 1.0, %v2170_v52  ;;  %v2108_v14 = vmul.f32 %v2107_v3, %v2058_v19 }
 0x64e   :  { %v2112_v9 = vmul.f32 %v3922_v29, %v2111_v22 }
 0x64f   :  { %v2172_v18 = vmul.f32 %v3924_v34, %v2171_v25 }
 0x650   :  { %v2113_v40 = vadd.f32 %v3922_v29, %v2112_v9  ;;  %3028 = vrot.lane.b32.xlu2 %v5315_v56, %s4026_s11 }
 0x651   :  { %v2173_v25 = vadd.f32 %v3924_v34, %v2172_v18  ;;  %3036 = vrot.lane.b32.xlu1 %v5521_v10, %s4026_s11  ;;  %3214 = vrot.lane.b32.xlu0 %v5484_v21, %s4028_s13  ;;  %v2181_v18 = vor.u32 1.1754944e-38, %v2180_v30 }
 0x652   :  { %v2087_v33 = vpop.permute.xlu2 %2086  ;;  %v2117_v17 = vsel %vm5605_vm8, %v3922_v29, %v2113_v40 }
 0x653   :  { %v2177_v7 = vsel %vm2176_vm13, %v3924_v34, %v2173_v25  ;;  %3925 = vrcp.f32 %v2087_v33  ;;  %v2122_v28 = vsel %vm2119_vm15, %v2121_v48, %v2117_v17  ;;  %v2165_v34 = vand.u32 2147483648, %v2087_v33 }
 0x654   :  { %v2182_v22 = vsel %vm2179_vm14, %v2181_v18, %v2177_v7  ;;  %v2123_v9 = vmul.f32 %v2122_v28, %v2059_v62  ;;  %v2163_v54 = vand.u32 2147483647, %v2087_v33  ;;  %vm2159_vm2 = vweird.f32 %v2087_v33  ;;  %v5706_v62 = vpop.permute.xlu0 %2770 }
 0x655   :  { %v5627_v30 = vmul.f32 %v2182_v22, %v2063_v59  ;;  %v2166_v40 = vor.u32 1.1754944e-38, %v2165_v34  ;;  %6325 = vst [vmem:[#allocation31_spill] sm:$0xff] %v5706_v62 }
 0x656   :  { %3684 = vmatpush.xpose.msk.msra.mxu0 %vm2184_vm0, %v2123_v9  ;;  %2277 = vmatpush.msra.mxu1 %v2123_v9  ;;  %vm2164_vm4 = vcmp.eq.f32.partialorder %v2163_v54, 8.507059e+37 }
 0x657   :  { %3692 = vmatpush.xpose.msk.msra.mxu2 %vm2184_vm0, %v5627_v30  ;;  %2379 = vmatpush.msra.mxu3 %v5627_v30 }
 0x658   :  { %2278 = vmatpush.msra.mxu1 %v2108_v14  ;;  %3034 = vrot.lane.b32.xlu2 %v5484_v21, %s4026_s11 }
 0x659   :  { %v3926_v5 = vpop.eup %3925  ;;  %3084 = vrot.lane.b32.xlu1 %v5327_v53, %s4027_s12  ;;  %3186 = vrot.lane.b32.xlu0 %v5327_v53, %s4029_s14 }
 0x65a   :  { %v2155_v29 = vmul.f32 %v3926_v5, %v2087_v33  ;;  %3685 = vmatpush.xpose.msk.msra.mxu0 %vm2184_vm0, %v2108_v14  ;;  %vm2160_vm1 = vweird.f32 %v3926_v5  ;;  %v2047_v33 = vsel %vm2043_vm9, %v5455_v1, %v5543_v61  ;;  %vm2220_vm9 = vcmask 195584  }
 0x65b   :  { %vm2161_vm3 = vmor %vm2159_vm2, %vm2160_vm1  ;;  %v2054_v17 = vsel %vm2050_vm10, %v2047_v33, %v5554_v13 }
 0x65c   :  { %v2156_v51 = vsub.f32 1.0, %v2155_v29  ;;  %v2061_v1 = vsel %vm2057_vm12, %v2054_v17, %v5491_v47  ;;  %v5700_v47 = vpop.permute.xlu2 %2772  ;;  %v5714_v22 = vpop.permute.xlu0 %2776 }
 0x65d   :  { %3686 = vmatmul.msk.f32.vlgmr.msra.gmra.mxu0 %vm2184_vm0, %v2108_v14  ;;  %6323 = vst [vmem:[#allocation29_spill] sm:$0xff] %v5700_v47 }
 0x65e   :  { %v2157_v59 = vmul.f32 %v3926_v5, %v2156_v51  ;;  %6327 = vst [vmem:[#allocation30_spill] sm:$0xff] %v5714_v22 }
 0x660   :  { %v2158_v31 = vadd.f32 %v3926_v5, %v2157_v59  ;;  %3082 = vrot.lane.b32.xlu2 %v5315_v56, %s4027_s12 }
 0x661   :  { %3090 = vrot.lane.b32.xlu1 %v5521_v10, %s4027_s12  ;;  %3192 = vrot.lane.b32.xlu0 %v5521_v10, %s4029_s14 }
 0x662   :  { %v2162_v43 = vsel %vm2161_vm3, %v3926_v5, %v2158_v31 }
 0x663   :  { %v2082_v2 = vpop.permute.xlu1 %2081  ;;  %v2167_v44 = vsel %vm2164_vm4, %v2166_v40, %v2162_v43 }
 0x664   :  { %3927 = vrcp.f32 %v2082_v2  ;;  %v2168_v25 = vmul.f32 %v2167_v44, %v2062_v58  ;;  %v2150_v57 = vand.u32 2147483648, %v2082_v2  ;;  %v2148_v48 = vand.u32 2147483647, %v2082_v2 }
 0x665   :  { %3687 = vmatmul.msk.f32.gmra.mxu0 %vm2184_vm0, %v2123_v9  ;;  %vm2144_vm6 = vweird.f32 %v2082_v2  ;;  %v5720_v9 = vpop.permute.xlu0 %2794 }
 0x666   :  { %3693 = vmatpush.xpose.msk.msra.mxu2 %vm2184_vm0, %v2168_v25  ;;  %2380 = vmatpush.msra.mxu3 %v2168_v25  ;;  %v2151_v7 = vor.u32 1.1754944e-38, %v2150_v57  ;;  %vm2149_vm8 = vcmp.eq.f32.partialorder %v2148_v48, 8.507059e+37 }
 0x668   :  { %3088 = vrot.lane.b32.xlu2 %v5484_v21, %s4027_s12 }
 0x669   :  { %3184 = vrot.lane.b32.xlu1 %v5315_v56, %s4029_s14  ;;  %3312 = vrot.lane.b32.xlu0 %v5327_v53, %s4030_s15 }
 0x66a   :  { %v3928_v52 = vpop.eup %3927 }
 0x66b   :  { %v2140_v37 = vmul.f32 %v3928_v52, %v2082_v2  ;;  %vm2145_vm5 = vweird.f32 %v3928_v52 }
 0x66c   :  { %vm2146_vm7 = vmor %vm2144_vm6, %vm2145_vm5 }
 0x66d   :  { %v2141_v12 = vsub.f32 1.0, %v2140_v37  ;;  %3688 = vmatmul.msk.f32.gmra.mxu0 %vm2184_vm0, %v5450_v35  ;;  %v5726_v19 = vpop.permute.xlu0 %2800 }
 0x66f   :  { %v2142_v18 = vmul.f32 %v3928_v52, %v2141_v12 }
 0x670   :  { %3210 = vrot.lane.b32.xlu2 %v5327_v53, %s4028_s13  ;;  %v5694_v53 = vpop.permute.xlu1 %2774 }
 0x671   :  { %v2143_v46 = vadd.f32 %v3928_v52, %v2142_v18  ;;  %3212 = vrot.lane.b32.xlu1 %v5503_v41, %s4028_s13  ;;  %3318 = vrot.lane.b32.xlu0 %v5521_v10, %s4030_s15  ;;  %6322 = vst [vmem:[#allocation11_spill] sm:$0xff] %v5694_v53 }
 0x673   :  { %v2147_v35 = vsel %vm2146_vm7, %v3928_v52, %v2143_v46 }
 0x674   :  { %v2152_v61 = vsel %vm2149_vm8, %v2151_v7, %v2147_v35 }
 0x675   :  { %v2153_v13 = vmul.f32 %v2152_v61, %v2061_v1  ;;  %v5732_v5 = vpop.permute.xlu0 %2848 }
 0x677   :  { %3694 = vmatpush.xpose.msk.msra.mxu2 %vm2184_vm0, %v2153_v13  ;;  %2381 = vmatpush.msra.mxu3 %v2153_v13 }
 0x678   :  { %3216 = vrot.lane.b32.xlu2 %v5521_v10, %s4028_s13  ;;  %v5704_v10 = vpop.permute.xlu1 %2780 }
 0x679   :  { %3218 = vrot.lane.b32.xlu1 %v5513_v8, %s4028_s13  ;;  %6324 = vst [vmem:[#allocation26_spill] sm:$0xff] %v5704_v10 }
 0x67a   :  { %3695 = vmatmul.msk.f32.vlgmr.msra.gmra.mxu2 %vm2184_vm0, %v2153_v13 }
 0x67d   :  { %v5738_v34 = vpop.permute.xlu0 %2854 }
 0x680   :  { %3188 = vrot.lane.b32.xlu2 %v5503_v41, %s4029_s14  ;;  %v5712_v28 = vpop.permute.xlu1 %2798 }
 0x681   :  { %3190 = vrot.lane.b32.xlu1 %v5484_v21, %s4029_s14 }
 0x682   :  { %3696 = vmatmul.msk.f32.gmra.mxu2 %vm2184_vm0, %v2168_v25 }
 0x685   :  { %v5744_v45 = vpop.permute.xlu0 %2902 }
 0x688   :  { %3194 = vrot.lane.b32.xlu2 %v5513_v8, %s4029_s14 }
 0x689   :  { %3310 = vrot.lane.b32.xlu1 %v5315_v56, %s4030_s15  ;;  %v5710_v56 = vpop.permute.xlu2 %2778 }
 0x68a   :  { %3697 = vmatmul.msk.f32.gmra.mxu2 %vm2184_vm0, %v5627_v30  ;;  %6326 = vst [vmem:[#allocation24_spill] sm:$0xff] %v5710_v56 }
 0x68d   :  { %v5751_v58 = vpop.permute.xlu0 %2908 }
 0x690   :  { %3314 = vrot.lane.b32.xlu2 %v5503_v41, %s4030_s15 }
 0x691   :  { %3316 = vrot.lane.b32.xlu1 %v5484_v21, %s4030_s15  ;;  %v5716_v3 = vpop.permute.xlu2 %2796  ;;  %v5718_v21 = vpop.permute.xlu1 %2804 }
 0x692   :  { %6328 = vst [vmem:[#allocation32_spill] sm:$0xff] %v5718_v21 }
 0x695   :  { %v5758_v37 = vpop.permute.xlu0 %3008 }
 0x696   :  { %6337 = vst [vmem:[#allocation36_spill] sm:$0xff] %v5758_v37 }
 0x698   :  { %3320 = vrot.lane.b32.xlu2 %v5513_v8, %s4030_s15 }
 0x699   :  { %v5722_v41 = vpop.permute.xlu2 %2802  ;;  %v5724_v30 = vpop.permute.xlu1 %2852 }
 0x69a   :  { %6329 = vst [vmem:[#allocation19_spill] sm:$0xff] %v5722_v41 }
 0x69d   :  { %v5765_v33 = vpop.permute.xlu0 %3014 }
 0x69e   :  { %6339 = vst [vmem:[#allocation49_spill] sm:$0xff] %v5765_v33 }
 0x6a1   :  { %v5728_v14 = vpop.permute.xlu2 %2850  ;;  %v5730_v8 = vpop.permute.xlu1 %2858 }
 0x6a2   :  { %6330 = vst [vmem:[#allocation38_spill] sm:$0xff] %v5730_v8 }
 0x6a5   :  { %v5771_v7 = vpop.permute.xlu0 %3032 }
 0x6a9   :  { %v5734_v29 = vpop.permute.xlu2 %2856  ;;  %v5736_v51 = vpop.permute.xlu1 %2906 }
 0x6aa   :  { %6331 = vst [vmem:[#allocation35_spill] sm:$0xff] %v5734_v29 }
 0x6b1   :  { %v5740_v59 = vpop.permute.xlu2 %2904  ;;  %v5742_v54 = vpop.permute.xlu1 %2912 }
 0x6b2   :  { %6332 = vst [vmem:[#allocation13_spill] sm:$0xff] %v5742_v54 }
 0x6b9   :  { %v5746_v55 = vpop.permute.xlu2 %2910  ;;  %v5748_v31 = vpop.permute.xlu1 %3006 }
 0x6ba   :  { %6333 = vst [vmem:[#allocation20_spill] sm:$0xff] %v5746_v55 }
 0x6bb   :  { %6334 = vst [vmem:[#allocation44_spill] sm:$0xff] %v5748_v31 }
 0x6c1   :  { %v5753_v2 = vpop.permute.xlu2 %3004  ;;  %v5756_v52 = vpop.permute.xlu1 %3012 }
 0x6c2   :  { %6335 = vst [vmem:[#allocation40_spill] sm:$0xff] %v5753_v2 }
 0x6c3   :  { %6336 = vst [vmem:[#allocation46_spill] sm:$0xff] %v5756_v52 }
 0x6c9   :  { %v5761_v18 = vpop.permute.xlu2 %3010  ;;  %v5763_v48 = vpop.permute.xlu1 %3030 }
 0x6ca   :  { %6338 = vst [vmem:[#allocation47_spill] sm:$0xff] %v5761_v18 }
 0x6d1   :  { %v5767_v17 = vpop.permute.xlu2 %3028  ;;  %v5769_v46 = vpop.permute.xlu1 %3036 }
 0x6d2   :  { %6340 = vst [vmem:[#allocation16_spill] sm:$0xff] %v5769_v46 }
 0x6d9   :  { %v5774_v61 = vpop.permute.xlu2 %3034  ;;  %v5776_v13 = vpop.permute.xlu1 %3084 }
 0x6da   :  { %v2211_v40 = vpop.f32.mrf.mxu0 }
 0x6db   :  { %v2221_v43 = vsel %vm2220_vm9, %v2211_v40, -inf }
 0x6dc   :  { %2222 = vmax.xlane.f32.xlu1 %v2221_v43 }
 0x6e1   :  { %v5781_v33 = vpop.permute.xlu2 %3082  ;;  %v5783_v10 = vpop.permute.xlu1 %3090 }
 0x6e2   :  { %v2214_v44 = vpop.f32.mrf.mxu0  ;;  %6342 = vst [vmem:[#allocation14_spill] sm:$0xff] %v5783_v10 }
 0x6e3   :  { %v2224_v25 = vsel %vm2220_vm9, %v2214_v44, -inf }
 0x6e4   :  { %2225 = vmax.xlane.f32.xlu2 %v2224_v25 }
 0x6e9   :  { %v5790_v18 = vpop.permute.xlu1 %3184 }
 0x6ea   :  { %v2217_v12 = vpop.f32.mrf.mxu0  ;;  %6343 = vst [vmem:[#allocation17_spill] sm:$0xff] %v5790_v18 }
 0x6eb   :  { %v2227_v57 = vsel %vm2220_vm9, %v2217_v12, -inf }
 0x6ec   :  { %2228 = vmax.xlane.f32.xlu0 %v2227_v57  ;;  %v5779_v57 = vpop.permute.xlu0 %3038 }
 0x6ed   :  { %6341 = vst [vmem:[#allocation9_spill] sm:$0xff] %v5779_v57 }
 0x6f1   :  { %v5796_v31 = vpop.permute.xlu1 %3212 }
 0x6f4   :  { %v5786_v22 = vpop.permute.xlu0 %3086 }
 0x6f9   :  { %v5802_v2 = vpop.permute.xlu1 %3218 }
 0x6fa   :  { %6346 = vst [vmem:[#allocation52_spill] sm:$0xff] %v5802_v2 }
 0x6fc   :  { %v5792_v37 = vpop.permute.xlu0 %3092 }
 0x6fd   :  { %v2315_v35 = vpop.f32.mrf.mxu2  ;;  %6344 = vst [vmem:[#allocation15_spill] sm:$0xff] %v5792_v37 }
 0x6fe   :  { %v2324_v1 = vsel %vm2220_vm9, %v2315_v35, -inf }
 0x6ff   :  { %2325 = vmax.xlane.f32.xlu0 %v2324_v1  ;;  %v5788_v1 = vpop.permute.xlu2 %3088 }
 0x701   :  { %v5808_v54 = vpop.permute.xlu1 %3190 }
 0x702   :  { %6348 = vst [vmem:[#allocation54_spill] sm:$0xff] %v5808_v54 }
 0x705   :  { %v2318_v43 = vpop.f32.mrf.mxu2 }
 0x706   :  { %v2327_v25 = vsel %vm2220_vm9, %v2318_v43, -inf }
 0x707   :  { %2328 = vmax.xlane.f32.xlu1 %v2327_v25  ;;  %v5794_v53 = vpop.permute.xlu2 %3210  ;;  %v5798_v25 = vpop.permute.xlu0 %3208 }
 0x709   :  { %v5814_v37 = vpop.permute.xlu1 %3310 }
 0x70d   :  { %v2321_v56 = vpop.f32.mrf.mxu2 }
 0x70e   :  { %v2330_v52 = vsel %vm2220_vm9, %v2321_v56, -inf }
 0x70f   :  { %2331 = vmax.xlane.f32.xlu2 %v2330_v52  ;;  %v5800_v47 = vpop.permute.xlu2 %3216  ;;  %v5804_v62 = vpop.permute.xlu0 %3214 }
 0x710   :  { %6345 = vst [vmem:[#allocation51_spill] sm:$0xff] %v5800_v47 }
 0x711   :  { %v5820_v10 = vpop.permute.xlu1 %3316 }
 0x712   :  { %6352 = vst [vmem:[#allocation58_spill] sm:$0xff] %v5820_v10 }
 0x717   :  { %v5806_v52 = vpop.permute.xlu2 %3188  ;;  %v5810_v8 = vpop.permute.xlu0 %3186 }
 0x718   :  { %6347 = vst [vmem:[#allocation53_spill] sm:$0xff] %v5806_v52 }
 0x719   :  { %6349 = vst [vmem:[#allocation55_spill] sm:$0xff] %v5810_v8 }
 0x71f   :  { %v5812_v18 = vpop.permute.xlu2 %3194  ;;  %v5816_v57 = vpop.permute.xlu0 %3192 }
 0x720   :  { %6350 = vst [vmem:[#allocation56_spill] sm:$0xff] %v5812_v18 }
 0x721   :  { %6351 = vst [vmem:[#allocation57_spill] sm:$0xff] %v5816_v57 }
 0x727   :  { %v5818_v21 = vpop.permute.xlu2 %3314  ;;  %v5822_v55 = vpop.permute.xlu0 %3312 }
 0x72f   :  { %v5824_v2 = vpop.permute.xlu2 %3320  ;;  %v5826_v54 = vpop.permute.xlu0 %3318 }
 0x730   :  { %6353 = vst [vmem:[#allocation59_spill] sm:$0xff] %v5824_v2 }
 0x731   :  { %6354 = vst [vmem:[#allocation60_spill] sm:$0xff] %v5826_v54 }
 0x74f   :  { %v2223_v46 = vpop.xlane.xlu1 %2222 }
 0x750   :  { %v2230_v52 = vsub.f32 %v2211_v40, %v2223_v46 }
 0x752   :  { %v2233_v47 = vmul.f32 1.442695, %v2230_v52 }
 0x754   :  { %3929 = vpow2.f32 %v2233_v47 }
 0x757   :  { %v2226_v8 = vpop.xlane.xlu2 %2225 }
 0x758   :  { %v2231_v18 = vsub.f32 %v2214_v44, %v2226_v8 }
 0x75a   :  { %v3930_v29 = vpop.eup %3929  ;;  %v2235_v49 = vmul.f32 1.442695, %v2231_v18 }
 0x75b   :  { %v2239_v57 = vsel %vm2220_vm9, %v3930_v29, 0.0 }
 0x75c   :  { %3931 = vpow2.f32 %v2235_v49  ;;  %2240 = vadd.xlane.f32.xlu2 %v2239_v57 }
 0x75f   :  { %v2229_v15 = vpop.xlane.xlu0 %2228 }
 0x760   :  { %v2232_v10 = vsub.f32 %v2217_v12, %v2229_v15 }
 0x762   :  { %v3932_v41 = vpop.eup %3931  ;;  %v2237_v16 = vmul.f32 1.442695, %v2232_v10 }
 0x763   :  { %v2242_v2 = vsel %vm2220_vm9, %v3932_v41, 0.0 }
 0x764   :  { %3933 = vpow2.f32 %v2237_v16  ;;  %2243 = vadd.xlane.f32.xlu1 %v2242_v2 }
 0x76a   :  { %v3934_v40 = vpop.eup %3933 }
 0x76b   :  { %v2245_v47 = vsel %vm2220_vm9, %v3934_v40, 0.0 }
 0x76c   :  { %2246 = vadd.xlane.f32.xlu2 %v2245_v47 }
 0x772   :  { %v2326_v46 = vpop.xlane.xlu0 %2325 }
 0x773   :  { %v2333_v8 = vsub.f32 %v2315_v35, %v2326_v46 }
 0x775   :  { %v2336_v44 = vmul.f32 1.442695, %v2333_v8 }
 0x777   :  { %3935 = vpow2.f32 %v2336_v44 }
 0x77a   :  { %v2329_v18 = vpop.xlane.xlu1 %2328 }
 0x77b   :  { %v2334_v52 = vsub.f32 %v2318_v43, %v2329_v18 }
 0x77d   :  { %v3936_v49 = vpop.eup %3935  ;;  %v2338_v57 = vmul.f32 1.442695, %v2334_v52 }
 0x77e   :  { %v2342_v15 = vsel %vm2220_vm9, %v3936_v49, 0.0 }
 0x77f   :  { %3937 = vpow2.f32 %v2338_v57  ;;  %2343 = vadd.xlane.f32.xlu0 %v2342_v15 }
 0x782   :  { %v2332_v10 = vpop.xlane.xlu2 %2331 }
 0x783   :  { %v2335_v12 = vsub.f32 %v2321_v56, %v2332_v10 }
 0x785   :  { %v3938_v16 = vpop.eup %3937  ;;  %v2340_v2 = vmul.f32 1.442695, %v2335_v12 }
 0x786   :  { %v2345_v54 = vsel %vm2220_vm9, %v3938_v16, 0.0 }
 0x787   :  { %3939 = vpow2.f32 %v2340_v2  ;;  %2346 = vadd.xlane.f32.xlu1 %v2345_v54 }
 0x78d   :  { %v3940_v47 = vpop.eup %3939 }
 0x78e   :  { %v2348_v35 = vsel %vm2220_vm9, %v3940_v47, 0.0 }
 0x78f   :  { %2349 = vadd.xlane.f32.xlu2 %v2348_v35 }
 0x7cf   :  { %v2241_v46 = vpop.xlane.xlu2 %2240 }
 0x7d0   :  { %3941 = vrcp.f32 %v2241_v46 }
 0x7d6   :  { %v3942_v43 = vpop.eup %3941 }
 0x7d7   :  { %v2251_v8 = vmul.f32 %v3942_v43, %v3930_v29  ;;  %v2244_v44 = vpop.xlane.xlu1 %2243 }
 0x7d8   :  { %3943 = vrcp.f32 %v2244_v44 }
 0x7d9   :  { %3689 = vmatmul.msk.f32.vlgmr.msra.gmra.mxu1 %vm2220_vm9, %v2251_v8 }
 0x7de   :  { %v3944_v18 = vpop.eup %3943 }
 0x7df   :  { %v2247_v56 = vpop.xlane.xlu2 %2246  ;;  %v2252_v52 = vmul.f32 %v3944_v18, %v3932_v41 }
 0x7e0   :  { %3945 = vrcp.f32 %v2247_v56 }
 0x7e1   :  { %3690 = vmatmul.msk.f32.gmra.mxu1 %vm2220_vm9, %v2252_v52 }
 0x7e6   :  { %v3946_v57 = vpop.eup %3945 }
 0x7e7   :  { %v2253_v54 = vmul.f32 %v3946_v57, %v3934_v40 }
 0x7e9   :  { %3691 = vmatmul.msk.f32.gmra.mxu1 %vm2220_vm9, %v2253_v54 }
 0x7f2   :  { %v2344_v15 = vpop.xlane.xlu0 %2343 }
 0x7f3   :  { %3947 = vrcp.f32 %v2344_v15 }
 0x7f9   :  { %v3948_v10 = vpop.eup %3947 }
 0x7fa   :  { %v2354_v12 = vmul.f32 %v3948_v10, %v3936_v49  ;;  %v2347_v2 = vpop.xlane.xlu1 %2346 }
 0x7fb   :  { %3949 = vrcp.f32 %v2347_v2 }
 0x7fc   :  { %3698 = vmatmul.msk.f32.vlgmr.msra.gmra.mxu3 %vm2220_vm9, %v2354_v12 }
 0x801   :  { %v3950_v29 = vpop.eup %3949 }
 0x802   :  { %v2350_v35 = vpop.xlane.xlu2 %2349  ;;  %v2355_v46 = vmul.f32 %v3950_v29, %v3938_v16  ;;  %v6356_v29 = vld [vmem:[#allocation19_spill] sm:$0xff] }
 0x803   :  { %3951 = vrcp.f32 %v2350_v35 }
 0x804   :  { %3699 = vmatmul.msk.f32.gmra.mxu3 %vm2220_vm9, %v2355_v46 }
 0x809   :  { %v3952_v41 = vpop.eup %3951 }
 0x80a   :  { %v2356_v43 = vmul.f32 %v3952_v41, %v3940_v47 }
 0x80c   :  { %3700 = vmatmul.msk.f32.gmra.mxu3 %vm2220_vm9, %v2356_v43 }
 0x856   :  { %v5840_v40 = vpop.f32.mrf.mxu1 }
 0x857   :  { %v2812_v8 = vmul.f32 %v5720_v9, %v5840_v40  ;;  %v2416_v49 = vmul.f32 %v5178_v6, %v5840_v40  ;;  %v2632_v44 = vmul.f32 %v5300_v11, %v5840_v40  ;;  %v2866_v16 = vmul.f32 %v5732_v5, %v5840_v40 }
 0x858   :  { %v2506_v47 = vmul.f32 %v5162_v26, %v5840_v40  ;;  %v2686_v9 = vmul.f32 %v5308_v38, %v5840_v40  ;;  %v2920_v6 = vmul.f32 %v5744_v45, %v5840_v40  ;;  %v3046_v11 = vmul.f32 %v5767_v17, %v5840_v40 }
 0x859   :  { %2824 = vrot.lane.b32.xlu0 %v2812_v8, %s4004_s24  ;;  %2430 = vperm.xlu2 %3833, %v2416_v49   ;;  %v3226_v5 = vmul.f32 %v5798_v25, %v5840_v40  ;;  %v3328_v38 = vmul.f32 %v5814_v37, %v5840_v40  ;;  %v3100_v45 = vmul.f32 %v5781_v33, %v5840_v40 }
 0x85a   :  { %2644 = vrot.lane.b32.xlu1 %v2632_v44, %s4004_s24  ;;  %v6359_v44 = vld [vmem:[#allocation35_spill] sm:$0xff] }
 0x85e   :  { %v5868_v26 = vpop.f32.mrf.mxu1 }
 0x85f   :  { %v2417_v17 = vmul.f32 %v5186_v42, %v5868_v26  ;;  %v2813_v25 = vmul.f32 %v5716_v3, %v5868_v26  ;;  %v2633_v18 = vmul.f32 %v5302_v0, %v5868_v26  ;;  %v2507_v56 = vmul.f32 %v5277_v63, %v5868_v26 }
 0x860   :  { %v2867_v42 = vmul.f32 %v5728_v14, %v5868_v26  ;;  %v2687_v37 = vmul.f32 %v5310_v4, %v5868_v26  ;;  %v3047_v3 = vmul.f32 %v5763_v48, %v5868_v26  ;;  %v2921_v63 = vmul.f32 %v5740_v59, %v5868_v26 }
 0x861   :  { %2878 = vrot.lane.b32.xlu0 %v2866_v16, %s4005_s1  ;;  %2518 = vrot.lane.b32.xlu2 %v2506_v47, %s4004_s24  ;;  %v3227_v0 = vmul.f32 %v5794_v53, %v5868_v26  ;;  %v3101_v14 = vmul.f32 %v5776_v13, %v5868_v26  ;;  %v3329_v48 = vmul.f32 %v5822_v55, %v5868_v26  ;;  %v6360_v47 = vld [vmem:[#allocation51_spill] sm:$0xff] }
 0x862   :  { %2698 = vrot.lane.b32.xlu1 %v2686_v9, %s4005_s1 }
 0x866   :  { %v5904_v4 = vpop.f32.mrf.mxu1 }
 0x867   :  { %v2418_v59 = vmul.f32 %v5074_v36, %v5904_v4  ;;  %v2814_v53 = vmul.f32 %v5712_v28, %v5904_v4  ;;  %v2634_v33 = vmul.f32 %v5193_v60, %v5904_v4  ;;  %v2508_v13 = vmul.f32 %v5279_v27, %v5904_v4 }
 0x868   :  { %v2868_v52 = vmul.f32 %v5724_v30, %v5904_v4  ;;  %v2688_v36 = vmul.f32 %v5218_v50, %v5904_v4  ;;  %v3048_v28 = vmul.f32 %v5771_v7, %v5904_v4  ;;  %v2922_v60 = vmul.f32 %v5736_v51, %v5904_v4 }
 0x869   :  { %2932 = vrot.lane.b32.xlu0 %v2920_v6, %s4006_s28  ;;  %3058 = vrot.lane.b32.xlu2 %v3046_v11, %s4004_s24  ;;  %v3228_v27 = vmul.f32 %v5796_v31, %v5904_v4  ;;  %v3102_v30 = vmul.f32 %v5786_v22, %v5904_v4  ;;  %v3330_v50 = vmul.f32 %v5818_v21, %v5904_v4  ;;  %v6361_v6 = vld [vmem:[#allocation16_spill] sm:$0xff] }
 0x86a   :  { %3238 = vrot.lane.b32.xlu1 %v3226_v5, %s4004_s24 }
 0x871   :  { %3342 = vperm.xlu0 %3831, %v3328_v38   ;;  %3112 = vrot.lane.b32.xlu2 %v3100_v45, %s4005_s1 }
 0x872   :  { %2435 = vperm.xlu1 %3832, %v2417_v17  }
 0x879   :  { %2826 = vrot.lane.b32.xlu2 %v2813_v25, %s4004_s24  ;;  %2646 = vrot.lane.b32.xlu0 %v2633_v18, %s4004_s24  ;;  %v4031_v25 = vmov 2   ;;  %v6362_v18 = vld [vmem:[#allocation20_spill] sm:$0xff] }
 0x87a   :  { %2520 = vrot.lane.b32.xlu1 %v2507_v56, %s4004_s24 }
 0x87f   :  { %v5939_v51 = vpop.f32.mrf.mxu3 }
 0x880   :  { %v2419_v55 = vmul.f32 %v5220_v23, %v5939_v51  ;;  %v2815_v7 = vmul.f32 %v5726_v19, %v5939_v51  ;;  %v2635_v31 = vmul.f32 %v5304_v20, %v5939_v51  ;;  %v2509_v21 = vmul.f32 %v5168_v39, %v5939_v51 }
 0x881   :  { %2880 = vrot.lane.b32.xlu2 %v2867_v42, %s4005_s1  ;;  %2700 = vrot.lane.b32.xlu0 %v2687_v37, %s4005_s1  ;;  %v2869_v57 = vmul.f32 %v5738_v34, %v5939_v51  ;;  %v2689_v23 = vmul.f32 %v5319_v32, %v5939_v51  ;;  %v3049_v19 = vmul.f32 %v5774_v61, %v5939_v51  ;;  %v6363_v42 = vld [vmem:[#allocation23_spill] sm:$0xff] }
 0x882   :  { %3060 = vrot.lane.b32.xlu1 %v3047_v3, %s4004_s24  ;;  %v2923_v39 = vmul.f32 %v5751_v58, %v5939_v51  ;;  %v3229_v34 = vmul.f32 %v5804_v62, %v5939_v51  ;;  %v3103_v15 = vmul.f32 %v5788_v1, %v5939_v51  ;;  %v6355_v58 = vld [vmem:[#allocation10_spill] sm:$0xff] }
 0x883   :  { %v6357_v1 = vld [vmem:[#allocation22_spill] sm:$0xff] }
 0x884   :  { %v6364_v3 = vld [vmem:[#allocation14_spill] sm:$0xff] }
 0x887   :  { %v5973_v54 = vpop.f32.mrf.mxu3 }
 0x888   :  { %v2636_v61 = vmul.f32 %v5306_v24, %v5973_v54  ;;  %v2420_v10 = vmul.f32 %v6355_v58, %v5973_v54  ;;  %v2816_v35 = vmul.f32 %v6356_v29, %v5973_v54  ;;  %v2690_v46 = vmul.f32 %v6357_v1, %v5973_v54  ;;  %v6358_v24 = vld [vmem:[#allocation39_spill] sm:$0xff] }
 0x889   :  { %2934 = vrot.lane.b32.xlu2 %v2921_v63, %s4006_s28  ;;  %3240 = vrot.lane.b32.xlu0 %v3227_v0, %s4004_s24  ;;  %v2510_v41 = vmul.f32 %v6358_v24, %v5973_v54  ;;  %v2870_v16 = vmul.f32 %v6359_v44, %v5973_v54  ;;  %v3230_v9 = vmul.f32 %v6360_v47, %v5973_v54 }
 0x88a   :  { %3114 = vrot.lane.b32.xlu1 %v3101_v14, %s4005_s1  ;;  %v3050_v11 = vmul.f32 %v6361_v6, %v5973_v54  ;;  %v2924_v56 = vmul.f32 %v6362_v18, %v5973_v54  ;;  %v3104_v63 = vmul.f32 %v6364_v3, %v5973_v54  ;;  %v6377_v6 = vld [vmem:[#allocation17_spill] sm:$0xff]  ;;  %v6378_v3 = vld [vmem:[#allocation40_spill] sm:$0xff] }
 0x88f   :  { %v6011_v45 = vpop.f32.mrf.mxu3 }
 0x890   :  { %v2421_v37 = vmul.f32 %v6363_v42, %v6011_v45 }
 0x891   :  { %3347 = vperm.xlu2 %3833, %v3329_v48   ;;  %2440 = vperm.xlu0 %3831, %v2418_v59   ;;  %v6365_v59 = vld [vmem:[#allocation37_spill] sm:$0xff] }
 0x892   :  { %2828 = vrot.lane.b32.xlu1 %v2814_v53, %s4004_s24  ;;  %v2637_v53 = vmul.f32 %v6365_v59, %v6011_v45 }
 0x899   :  { %2648 = vrot.lane.b32.xlu2 %v2634_v33, %s4004_s24  ;;  %2522 = vrot.lane.b32.xlu0 %v2508_v13, %s4004_s24  ;;  %v6366_v33 = vld [vmem:[#allocation33_spill] sm:$0xff] }
 0x89a   :  { %2882 = vrot.lane.b32.xlu1 %v2868_v52, %s4005_s1  ;;  %v2511_v13 = vmul.f32 %v6366_v33, %v6011_v45  ;;  %v6367_v52 = vld [vmem:[#allocation32_spill] sm:$0xff] }
 0x8a1   :  { %2702 = vrot.lane.b32.xlu2 %v2688_v36, %s4005_s1  ;;  %3062 = vrot.lane.b32.xlu0 %v3048_v28, %s4004_s24  ;;  %v2817_v36 = vmul.f32 %v6367_v52, %v6011_v45  ;;  %v6368_v28 = vmov 0  }
 0x8a2   :  { %2936 = vrot.lane.b32.xlu1 %v2922_v60, %s4006_s28 }
 0x8a9   :  { %3242 = vrot.lane.b32.xlu2 %v3228_v27, %s4004_s24  ;;  %3116 = vrot.lane.b32.xlu0 %v3102_v30, %s4005_s1 }
 0x8aa   :  { %3352 = vperm.xlu1 %3832, %v3330_v50   ;;  %v6369_v50 = vld [vmem:[#allocation50_spill] sm:$0xff] }
 0x8b1   :  { %2445 = vperm.xlu2 %3833, %v2419_v55   ;;  %2830 = vrot.lane.b32.xlu0 %v2815_v7, %s4004_s24  ;;  %v2691_v55 = vmul.f32 %v6369_v50, %v6011_v45  ;;  %v6370_v7 = vld [vmem:[#allocation9_spill] sm:$0xff]  ;;  %v4032_v50 = vmov 1  }
 0x8b2   :  { %2650 = vrot.lane.b32.xlu1 %v2635_v31, %s4004_s24  ;;  %v3051_v31 = vmul.f32 %v6370_v7, %v6011_v45  ;;  %v6382_v7 = vld [vmem:[#allocation42_spill] sm:$0xff] }
 0x8b3   :  { %v5949_v22 = vpop.permute.xlu2 %2430 }
 0x8b9   :  { %2524 = vrot.lane.b32.xlu2 %v2509_v21, %s4004_s24  ;;  %2884 = vrot.lane.b32.xlu0 %v2869_v57, %s4005_s1  ;;  %v6371_v21 = vld [vmem:[#allocation38_spill] sm:$0xff] }
 0x8ba   :  { %2704 = vrot.lane.b32.xlu1 %v2689_v23, %s4005_s1  ;;  %3834 = vset.pattern.permute.xlu2 %v4031_v25  ;;  %v2871_v57 = vmul.f32 %v6371_v21, %v6011_v45 }
 0x8bb   :  { %v5960_v20 = vpop.permute.xlu2 %2518 }
 0x8c1   :  { %3064 = vrot.lane.b32.xlu2 %v3049_v19, %s4004_s24  ;;  %2938 = vrot.lane.b32.xlu0 %v2923_v39, %s4006_s28 }
 0x8c2   :  { %3244 = vrot.lane.b32.xlu1 %v3229_v34, %s4004_s24  ;;  %v6372_v34 = vld [vmem:[#allocation52_spill] sm:$0xff] }
 0x8c3   :  { %v5971_v32 = vpop.permute.xlu2 %3058 }
 0x8c9   :  { %3118 = vrot.lane.b32.xlu2 %v3103_v15, %s4005_s1  ;;  %2652 = vrot.lane.b32.xlu0 %v2636_v61, %s4004_s24  ;;  %v3231_v15 = vmul.f32 %v6372_v34, %v6011_v45  ;;  %v6373_v61 = vld [vmem:[#allocation15_spill] sm:$0xff]  ;;  %v6383_v34 = vld [vmem:[#allocation21_spill] sm:$0xff] }
 0x8ca   :  { %2450 = vperm.xlu1 %3832, %v2420_v10   ;;  %v3105_v58 = vmul.f32 %v6373_v61, %v6011_v45  ;;  %v6374_v10 = vld [vmem:[#allocation13_spill] sm:$0xff] }
 0x8cb   :  { %v2825_v62 = vpop.permute.xlu0 %2824  ;;  %v5983_v12 = vpop.permute.xlu2 %3112  ;;  %v2925_v29 = vmul.f32 %v6374_v10, %v6011_v45 }
 0x8cc   :  { %v5985_v2 = vpop.permute.xlu1 %2644 }
 0x8d1   :  { %2832 = vrot.lane.b32.xlu2 %v2816_v35, %s4004_s24  ;;  %2706 = vrot.lane.b32.xlu0 %v2690_v46, %s4005_s1  ;;  %v6375_v35 = vld [vmem:[#allocation31_spill] sm:$0xff] }
 0x8d2   :  { %2526 = vrot.lane.b32.xlu1 %v2510_v41, %s4004_s24  ;;  %v2788_v1 = vmul.f32 %v6375_v35, %v5840_v40 }
 0x8d3   :  { %v2879_v43 = vpop.permute.xlu0 %2878  ;;  %v5996_v8 = vpop.permute.xlu2 %2826  ;;  %3835 = vset.pattern.permute.xlu1 %v4031_v25 }
 0x8d4   :  { %v5998_v49 = vpop.permute.xlu1 %2698  ;;  %v2842_v46 = vadd.f32 %v2825_v62, %v2788_v1  ;;  %v6385_v1 = vld [vmem:[#allocation53_spill] sm:$0xff] }
 0x8d9   :  { %2886 = vrot.lane.b32.xlu2 %v2870_v16, %s4005_s1  ;;  %3246 = vrot.lane.b32.xlu0 %v3230_v9, %s4004_s24  ;;  %v6376_v16 = vld [vmem:[#allocation48_spill] sm:$0xff]  ;;  %v2896_v9 = vadd.f32 %v2879_v43, %v2842_v46  ;;  %v6386_v46 = vld [vmem:[#allocation27_spill] sm:$0xff] }
 0x8da   :  { %3066 = vrot.lane.b32.xlu1 %v3050_v11, %s4004_s24  ;;  %v2482_v47 = vmul.f32 %v6376_v16, %v5840_v40  ;;  %v3202_v11 = vmul.f32 %v6377_v6, %v5840_v40 }
 0x8db   :  { %v2933_v5 = vpop.permute.xlu0 %2932  ;;  %v6009_v38 = vpop.permute.xlu2 %2880 }
 0x8dc   :  { %v3239_v17 = vpop.permute.xlu1 %3238  ;;  %v2536_v18 = vadd.f32 %v5960_v20, %v2482_v47  ;;  %v6380_v20 = vld [vmem:[#allocation55_spill] sm:$0xff] }
 0x8dd   :  { %v3256_v42 = vadd.f32 %v3239_v17, %v3202_v11 }
 0x8e1   :  { %2940 = vrot.lane.b32.xlu2 %v2924_v56, %s4006_s28  ;;  %2455 = vperm.xlu0 %3831, %v2421_v37   ;;  %v2950_v56 = vadd.f32 %v2933_v5, %v2896_v9  ;;  %v3203_v5 = vmul.f32 %v6380_v20, %v5868_v26 }
 0x8e2   :  { %3120 = vrot.lane.b32.xlu1 %v3104_v63, %s4005_s1  ;;  %v3022_v63 = vmul.f32 %v6378_v3, %v5840_v40 }
 0x8e3   :  { %v6023_v0 = vpop.permute.xlu0 %3342  ;;  %v6025_v14 = vpop.permute.xlu2 %2934 }
 0x8e4   :  { %v6027_v48 = vpop.permute.xlu1 %2435  ;;  %v3076_v33 = vadd.f32 %v5971_v32, %v3022_v63 }
 0x8e6   :  { %v3130_v17 = vadd.f32 %v5983_v12, %v3076_v33 }
 0x8e9   :  { %2654 = vrot.lane.b32.xlu2 %v2637_v53, %s4004_s24  ;;  %2528 = vrot.lane.b32.xlu0 %v2511_v13, %s4004_s24  ;;  %v6379_v53 = vld [vmem:[#allocation41_spill] sm:$0xff] }
 0x8ea   :  { %2834 = vrot.lane.b32.xlu1 %v2817_v36, %s4004_s24  ;;  %3838 = vset.pattern.permute.xlu0 %v6368_v28  ;;  %v2608_v43 = vmul.f32 %v6379_v53, %v5840_v40 }
 0x8eb   :  { %v6039_v60 = vpop.permute.xlu2 %3347  ;;  %v2647_v27 = vpop.permute.xlu0 %2646 }
 0x8ec   :  { %v2521_v30 = vpop.permute.xlu1 %2520  ;;  %v2662_v13 = vadd.f32 %v5985_v2, %v2608_v43  ;;  %v6381_v2 = vld [vmem:[#allocation29_spill] sm:$0xff] }
 0x8ee   :  { %v2716_v52 = vadd.f32 %v5998_v49, %v2662_v13 }
 0x8f1   :  { %2708 = vrot.lane.b32.xlu2 %v2691_v55, %s4005_s1  ;;  %3068 = vrot.lane.b32.xlu0 %v3051_v31, %s4004_s24  ;;  %v2789_v55 = vmul.f32 %v6381_v2, %v5868_v26  ;;  %v2609_v31 = vmul.f32 %v6382_v7, %v5868_v26 }
 0x8f2   :  { %2888 = vrot.lane.b32.xlu1 %v2871_v57, %s4005_s1 }
 0x8f3   :  { %v2701_v23 = vpop.permute.xlu0 %2700  ;;  %v6050_v19 = vpop.permute.xlu2 %2648  ;;  %v2843_v49 = vadd.f32 %v5996_v8, %v2789_v55  ;;  %v2663_v57 = vadd.f32 %v2647_v27, %v2609_v31 }
 0x8f4   :  { %v3061_v39 = vpop.permute.xlu1 %3060 }
 0x8f5   :  { %v2897_v21 = vadd.f32 %v6009_v38, %v2843_v49  ;;  %v6384_v38 = vld [vmem:[#allocation44_spill] sm:$0xff]  ;;  %v6392_v49 = vld [vmem:[#allocation54_spill] sm:$0xff] }
 0x8f6   :  { %v3023_v27 = vmul.f32 %v6384_v38, %v5868_v26  ;;  %v3205_v7 = vmul.f32 %v6392_v49, %v5939_v51 }
 0x8f7   :  { %v2951_v61 = vadd.f32 %v6025_v14, %v2897_v21  ;;  %v3204_v14 = vmul.f32 %v6385_v1, %v5904_v4 }
 0x8f9   :  { %3248 = vrot.lane.b32.xlu2 %v3231_v15, %s4004_s24  ;;  %3122 = vrot.lane.b32.xlu0 %v3105_v58, %s4005_s1  ;;  %v2483_v15 = vmul.f32 %v6383_v34, %v5868_v26  ;;  %v2717_v58 = vadd.f32 %v2701_v23, %v2663_v57  ;;  %v3077_v23 = vadd.f32 %v3061_v39, %v3023_v27  ;;  %v6387_v26 = vld [vmem:[#allocation11_spill] sm:$0xff] }
 0x8fa   :  { %2942 = vrot.lane.b32.xlu1 %v2925_v29, %s4006_s28  ;;  %v2790_v39 = vmul.f32 %v6387_v26, %v5904_v4 }
 0x8fb   :  { %v3241_v24 = vpop.permute.xlu0 %3240  ;;  %v6063_v41 = vpop.permute.xlu2 %2702  ;;  %v2537_v10 = vadd.f32 %v2521_v30, %v2483_v15  ;;  %v2484_v30 = vmul.f32 %v6386_v46, %v5904_v4  ;;  %v6393_v15 = vld [vmem:[#allocation30_spill] sm:$0xff] }
 0x8fc   :  { %v3115_v44 = vpop.permute.xlu1 %3114  ;;  %v3257_v36 = vadd.f32 %v3241_v24, %v3203_v5 }
 0x8fd   :  { %v3131_v9 = vadd.f32 %v3115_v44, %v3077_v23  ;;  %v6389_v44 = vld [vmem:[#allocation36_spill] sm:$0xff] }
 0x901   :  { %2550 = vperm.xlu2 %3834, %v2536_v18   ;;  %2964 = vperm.xlu0 %3838, %v2950_v56   ;;  %v6388_v18 = vld [vmem:[#allocation43_spill] sm:$0xff] }
 0x902   :  { %3270 = vperm.xlu1 %3835, %v3256_v42   ;;  %v2610_v56 = vmul.f32 %v6388_v18, %v5904_v4  ;;  %v3024_v42 = vmul.f32 %v6389_v44, %v5904_v4 }
 0x903   :  { %v3243_v37 = vpop.permute.xlu2 %3242  ;;  %v6070_v62 = vpop.permute.xlu0 %2440 }
 0x904   :  { %v2829_v59 = vpop.permute.xlu1 %2828  ;;  %v3258_v24 = vadd.f32 %v3243_v37, %v3204_v14  ;;  %v2664_v3 = vadd.f32 %v6050_v19, %v2610_v56 }
 0x905   :  { %v2844_v37 = vadd.f32 %v2829_v59, %v2790_v39  ;;  %v6390_v59 = vld [vmem:[#allocation34_spill] sm:$0xff] }
 0x906   :  { %v2718_v20 = vadd.f32 %v6063_v41, %v2664_v3  ;;  %v6391_v41 = vld [vmem:[#allocation47_spill] sm:$0xff]  ;;  %v6398_v3 = vld [vmem:[#allocation46_spill] sm:$0xff] }
 0x907   :  { %v3025_v2 = vmul.f32 %v6391_v41, %v5939_v51  ;;  %v6400_v41 = vld [vmem:[#allocation18_spill] sm:$0xff] }
 0x909   :  { %3837 = vset.pattern.permute.xlu2 %v4032_v50  ;;  %3840 = vset.pattern.permute.xlu0 %v4031_v25 }
 0x90a   :  { %3836 = vset.pattern.permute.xlu1 %v4032_v50  ;;  %3144 = vperm.xlu2 %3837, %v3130_v17  }
 0x90b   :  { %3275 = vperm.xlu0 %3840, %v3257_v36   ;;  %2730 = vperm.xlu1 %3836, %v2716_v52   ;;  %v6085_v40 = vpop.permute.xlu2 %2445  ;;  %v2523_v32 = vpop.permute.xlu0 %2522  ;;  %v2485_v52 = vmul.f32 %v6390_v59, %v5939_v51 }
 0x90c   :  { %v2883_v12 = vpop.permute.xlu1 %2882  ;;  %v2538_v6 = vadd.f32 %v2523_v32, %v2484_v30 }
 0x90d   :  { %v2898_v33 = vadd.f32 %v2883_v12, %v2844_v37 }
 0x912   :  { %3843 = vset.pattern.permute.xlu2 %v6368_v28 }
 0x913   :  { %3841 = vset.pattern.permute.xlu0 %v4032_v50  ;;  %3839 = vset.pattern.permute.xlu1 %v4031_v25  ;;  %v2525_v8 = vpop.permute.xlu2 %2524  ;;  %v3063_v29 = vpop.permute.xlu0 %3062 }
 0x914   :  { %2969 = vperm.xlu2 %3843, %v2951_v61   ;;  %2735 = vperm.xlu0 %3841, %v2717_v58   ;;  %v2937_v35 = vpop.permute.xlu1 %2936  ;;  %v3078_v63 = vadd.f32 %v3063_v29, %v3024_v42  ;;  %v2539_v32 = vadd.f32 %v2525_v8, %v2485_v52  ;;  %v2791_v61 = vmul.f32 %v6393_v15, %v5939_v51  ;;  %v6394_v58 = vld [vmem:[#allocation12_spill] sm:$0xff]  ;;  %v6397_v42 = vld [vmem:[#allocation25_spill] sm:$0xff] }
 0x915   :  { %2555 = vperm.xlu1 %3839, %v2537_v10   ;;  %v2952_v17 = vadd.f32 %v2937_v35, %v2898_v33  ;;  %v2611_v10 = vmul.f32 %v6394_v58, %v5939_v51  ;;  %v2612_v37 = vmul.f32 %v6397_v42, %v5973_v54 }
 0x91b   :  { %v3065_v16 = vpop.permute.xlu2 %3064  ;;  %v3117_v47 = vpop.permute.xlu0 %3116 }
 0x91c   :  { %3845 = vset.pattern.permute.xlu2 %v4031_v25  ;;  %3844 = vset.pattern.permute.xlu0 %v4031_v25  ;;  %v6107_v11 = vpop.permute.xlu1 %3352  ;;  %v3132_v5 = vadd.f32 %v3117_v47, %v3078_v63  ;;  %v3079_v21 = vadd.f32 %v3065_v16, %v3025_v2  ;;  %v6395_v16 = vld [vmem:[#allocation28_spill] sm:$0xff]  ;;  %v3026_v63 = vmul.f32 %v6398_v3, %v5973_v54 }
 0x91d   :  { %3842 = vset.pattern.permute.xlu1 %v4032_v50  ;;  %3280 = vperm.xlu2 %3845, %v3258_v24   ;;  %v2486_v47 = vmul.f32 %v6395_v16, %v5973_v54  ;;  %v2487_v2 = vmul.f32 %v6400_v41, %v6011_v45  ;;  %v2422_v3 = vld [vmem:[#allocation3 + $0x5] sm:$0xff] }
 0x91e   :  { %2560 = vperm.xlu0 %3844, %v2538_v6   ;;  %3149 = vperm.xlu1 %3842, %v3131_v9   ;;  %v6396_v6 = vld [vmem:[#allocation57_spill] sm:$0xff] }
 0x91f   :  { %v3206_v26 = vmul.f32 %v6396_v6, %v5973_v54 }
 0x923   :  { %v3119_v53 = vpop.permute.xlu2 %3118  ;;  %v2831_v43 = vpop.permute.xlu0 %2830 }
 0x924   :  { %v2651_v13 = vpop.permute.xlu1 %2650  ;;  %v3133_v34 = vadd.f32 %v3119_v53, %v3079_v21  ;;  %v2845_v35 = vadd.f32 %v2831_v43, %v2791_v61 }
 0x925   :  { %3846 = vset.pattern.permute.xlu2 %v4032_v50  ;;  %v2665_v38 = vadd.f32 %v2651_v13, %v2611_v10  ;;  %v6403_v10 = vld [vmem:[#allocation49_spill] sm:$0xff] }
 0x926   :  { %3847 = vset.pattern.permute.xlu0 %v4032_v50  ;;  %3848 = vset.pattern.permute.xlu1 %v6368_v28 }
 0x927   :  { %2740 = vperm.xlu2 %3846, %v2718_v20   ;;  %3154 = vperm.xlu0 %3847, %v3132_v5  }
 0x928   :  { %2974 = vperm.xlu1 %3848, %v2952_v17  }
 0x92b   :  { %v2885_v4 = vpop.permute.xlu0 %2884  ;;  %v2833_v19 = vpop.permute.xlu2 %2832 }
 0x92c   :  { %v2705_v36 = vpop.permute.xlu1 %2704  ;;  %v2899_v1 = vadd.f32 %v2885_v4, %v2845_v35  ;;  %v6399_v4 = vld [vmem:[#allocation24_spill] sm:$0xff] }
 0x92d   :  { %v2719_v14 = vadd.f32 %v2705_v36, %v2665_v38  ;;  %v2792_v59 = vmul.f32 %v6399_v4, %v5973_v54 }
 0x92f   :  { %3849 = vset.pattern.permute.xlu2 %v4031_v25  ;;  %3863 = vset.pattern.permute.xlu0 %v6368_v28  ;;  %v2846_v52 = vadd.f32 %v2833_v19, %v2792_v59  ;;  %v3136_v59 = vld [vmem:[#allocation3 + $0x9] sm:$0xff] }
 0x930   :  { %2565 = vperm.xlu2 %3849, %v2539_v32   ;;  %3850 = vset.pattern.permute.xlu1 %v4031_v25 }
 0x933   :  { %v2939_v55 = vpop.permute.xlu0 %2938  ;;  %v2887_v12 = vpop.permute.xlu2 %2886 }
 0x934   :  { %v3245_v31 = vpop.permute.xlu1 %3244  ;;  %v2953_v23 = vadd.f32 %v2939_v55, %v2899_v1  ;;  %v2900_v32 = vadd.f32 %v2887_v12, %v2846_v52  ;;  %v6402_v12 = vld [vmem:[#allocation26_spill] sm:$0xff]  ;;  %v6404_v1 = vld [vmem:[#allocation45_spill] sm:$0xff] }
 0x935   :  { %v3259_v57 = vadd.f32 %v3245_v31, %v3205_v7  ;;  %v2793_v61 = vmul.f32 %v6402_v12, %v6011_v45  ;;  %v2723_v12 = vld [vmem:[#allocation3 + $0xf] sm:$0xff] }
 0x937   :  { %3285 = vperm.xlu1 %3850, %v3259_v57  }
 0x938   :  { %3852 = vset.pattern.permute.xlu2 %v4032_v50 }
 0x939   :  { %3159 = vperm.xlu2 %3852, %v3133_v34   ;;  %v6401_v34 = vld [vmem:[#allocation56_spill] sm:$0xff] }
 0x93a   :  { %v3207_v19 = vmul.f32 %v6401_v34, %v6011_v45 }
 0x93b   :  { %v2941_v8 = vpop.permute.xlu2 %2940  ;;  %v2653_v29 = vpop.permute.xlu0 %2652 }
 0x93c   :  { %v6135_v27 = vpop.permute.xlu1 %2450  ;;  %v2666_v53 = vadd.f32 %v2653_v29, %v2612_v37  ;;  %v2954_v7 = vadd.f32 %v2941_v8, %v2900_v32  ;;  %v3027_v8 = vmul.f32 %v6403_v10, %v6011_v45 }
 0x93f   :  { %3851 = vset.pattern.permute.xlu1 %v4032_v50 }
 0x940   :  { %2745 = vperm.xlu1 %3851, %v2719_v14   ;;  %v2613_v14 = vmul.f32 %v6404_v1, %v6011_v45 }
 0x941   :  { %3853 = vset.pattern.permute.xlu2 %v6368_v28 }
 0x942   :  { %2979 = vperm.xlu2 %3853, %v2953_v23  }
 0x943   :  { %v2707_v46 = vpop.permute.xlu0 %2706  ;;  %v2655_v30 = vpop.permute.xlu2 %2654 }
 0x944   :  { %v2527_v24 = vpop.permute.xlu1 %2526  ;;  %v2720_v5 = vadd.f32 %v2707_v46, %v2666_v53  ;;  %v2667_v16 = vadd.f32 %v2655_v30, %v2613_v14  ;;  %v2542_v30 = vld [vmem:[#allocation3 + $0x6] sm:$0xff] }
 0x945   :  { %v2540_v9 = vadd.f32 %v2527_v24, %v2486_v47 }
 0x948   :  { %3854 = vset.pattern.permute.xlu1 %v4031_v25 }
 0x949   :  { %2570 = vperm.xlu1 %3854, %v2540_v9  }
 0x94a   :  { %3855 = vset.pattern.permute.xlu2 %v4031_v25 }
 0x94b   :  { %v3247_v39 = vpop.permute.xlu0 %3246  ;;  %v2709_v18 = vpop.permute.xlu2 %2708 }
 0x94c   :  { %v3260_v56 = vadd.f32 %v3247_v39, %v3206_v26  ;;  %v3067_v44 = vpop.permute.xlu1 %3066  ;;  %v2721_v47 = vadd.f32 %v2709_v18, %v2667_v16  ;;  %v6405_v26 = vld [vmem:[#allocation58_spill] sm:$0xff]  ;;  %v6408_v18 = vld [vmem:[#allocation60_spill] sm:$0xff] }
 0x94d   :  { %v3080_v43 = vadd.f32 %v3067_v44, %v3026_v63  ;;  %v3331_v39 = vmul.f32 %v6405_v26, %v5939_v51  ;;  %v6407_v44 = vld [vmem:[#allocation59_spill] sm:$0xff]  ;;  %v3332_v37 = vmul.f32 %v6408_v18, %v5973_v54  ;;  %v2458_v51 = vmul.f32 %v5949_v22, %v2422_v3 }
 0x94e   :  { %3290 = vperm.xlu2 %3855, %v3260_v56   ;;  %v6406_v56 = vmov 3   ;;  %v3333_v42 = vmul.f32 %v6407_v44, %v6011_v45  ;;  %v2722_v45 = vld [vmem:[#allocation3 + $0x7] sm:$0xff]  ;;  %v2724_v44 = vld [vmem:[#allocation3 + $0x17] sm:$0xff] }
 0x951   :  { %3857 = vset.pattern.permute.xlu1 %v4032_v50 }
 0x953   :  { %v3249_v33 = vpop.permute.xlu2 %3248  ;;  %v6150_v13 = vpop.permute.xlu0 %2455 }
 0x954   :  { %v3121_v20 = vpop.permute.xlu1 %3120  ;;  %v3261_v15 = vadd.f32 %v3249_v33, %v3207_v19 }
 0x955   :  { %v3134_v17 = vadd.f32 %v3121_v20, %v3080_v43 }
 0x956   :  { %3856 = vset.pattern.permute.xlu2 %v4032_v50 }
 0x957   :  { %3164 = vperm.xlu1 %3857, %v3134_v17   ;;  %2750 = vperm.xlu2 %3856, %v2720_v5   ;;  %v2956_v5 = vld [vmem:[#allocation3 + $0x8] sm:$0xff] }
 0x95b   :  { %v2529_v36 = vpop.permute.xlu0 %2528  ;;  %v2551_v49 = vpop.permute.xlu2 %2550 }
 0x95c   :  { %v2835_v55 = vpop.permute.xlu1 %2834  ;;  %v2541_v31 = vadd.f32 %v2529_v36, %v2487_v2  ;;  %v3262_v36 = vld [vmem:[#allocation3 + $0xa] sm:$0xff] }
 0x95d   :  { %v3334_v2 = vld [vmem:[#allocation3 + $0xb] sm:$0xff] }
 0x95f   :  { %3858 = vset.pattern.permute.xlu1 %v6368_v28  ;;  %3859 = vset.pattern.permute.xlu2 %v4031_v25  ;;  %v2847_v28 = vadd.f32 %v2835_v55, %v2793_v61 }
 0x960   :  { %2984 = vperm.xlu1 %3858, %v2954_v7   ;;  %2575 = vperm.xlu2 %3859, %v2541_v31   ;;  %v2423_v31 = vld [vmem:[#allocation3 + $0xd] sm:$0xff] }
 0x961   :  { %v2459_v34 = vmul.f32 %v6027_v48, %v2423_v31 }
 0x963   :  { %v3069_v21 = vpop.permute.xlu0 %3068 }
 0x964   :  { %v2889_v57 = vpop.permute.xlu1 %2888  ;;  %v3145_v58 = vpop.permute.xlu2 %3144  ;;  %v3081_v29 = vadd.f32 %v3069_v21, %v3027_v8  ;;  %v2957_v8 = vld [vmem:[#allocation3 + $0x10] sm:$0xff] }
 0x965   :  { %v2901_v35 = vadd.f32 %v2889_v57, %v2847_v28  ;;  %v3172_v52 = vmul.f32 %v3145_v58, %v3136_v59  ;;  %v2543_v57 = vld [vmem:[#allocation3 + $0xe] sm:$0xff] }
 0x968   :  { %3860 = vset.pattern.permute.xlu1 %v4031_v25  ;;  %3862 = vset.pattern.permute.xlu2 %v4032_v50 }
 0x969   :  { %3295 = vperm.xlu1 %3860, %v3261_v15  }
 0x96b   :  { %v3123_v38 = vpop.permute.xlu0 %3122 }
 0x96c   :  { %v3135_v23 = vadd.f32 %v3123_v38, %v3081_v29  ;;  %v2943_v46 = vpop.permute.xlu1 %2942 }
 0x96d   :  { %v2955_v24 = vadd.f32 %v2943_v46, %v2901_v35  ;;  %v2544_v46 = vld [vmem:[#allocation3 + $0x16] sm:$0xff] }
 0x96e   :  { %3169 = vperm.xlu2 %3862, %v3135_v23   ;;  %v2970_v9 = vpop.permute.xlu2 %2969  ;;  %v3263_v23 = vld [vmem:[#allocation3 + $0x12] sm:$0xff] }
 0x96f   :  { %2989 = vperm.xlu0 %3863, %v2955_v24   ;;  %v2993_v28 = vmul.f32 %v2970_v9, %v2957_v8  ;;  %v3265_v8 = vld [vmem:[#allocation3 + $0x22] sm:$0xff] }
 0x971   :  { %3861 = vset.pattern.permute.xlu1 %v4032_v50  ;;  %v2578_v50 = vmul.f32 %v2551_v49, %v2542_v30  ;;  %v3370_v49 = vmul.f32 %v6023_v0, %v3334_v2  ;;  %v3137_v0 = vld [vmem:[#allocation3 + $0x11] sm:$0xff] }
 0x972   :  { %2755 = vperm.xlu1 %3861, %v2721_v47   ;;  %v3335_v47 = vld [vmem:[#allocation3 + $0x13] sm:$0xff] }
 0x973   :  { %v2965_v25 = vpop.permute.xlu0 %2964  ;;  %v2584_v33 = vadd.f32 %v2578_v50, %v2458_v51  ;;  %v2958_v50 = vld [vmem:[#allocation3 + $0x18] sm:$0xff] }
 0x974   :  { %v3271_v6 = vpop.permute.xlu1 %3270  ;;  %v2992_v17 = vmul.f32 %v2965_v25, %v2956_v5  ;;  %v2424_v25 = vld [vmem:[#allocation3 + $0x15] sm:$0xff] }
 0x975   :  { %v3298_v32 = vmul.f32 %v3271_v6, %v3262_v36  ;;  %v3371_v6 = vmul.f32 %v6039_v60, %v3335_v47  ;;  %v2460_v26 = vmul.f32 %v6070_v62, %v2424_v25  ;;  %v3336_v62 = vld [vmem:[#allocation3 + $0x1b] sm:$0xff] }
 0x976   :  { %3864 = vset.pattern.permute.xlu2 %v6406_v56  ;;  %v3372_v5 = vmul.f32 %v6107_v11, %v3336_v62 }
 0x977   :  { %3866 = vset.pattern.permute.xlu0 %v6406_v56  ;;  %3357 = vperm.xlu2 %3864, %v3331_v39   ;;  %v6179_v63 = vpop.permute.xlu2 %3280 }
 0x978   :  { %3367 = vperm.xlu0 %3866, %v3333_v42  }
 0x97a   :  { %3865 = vset.pattern.permute.xlu1 %v6406_v56 }
 0x97b   :  { %3362 = vperm.xlu1 %3865, %v3332_v37  }
 0x97d   :  { %v3276_v53 = vpop.permute.xlu0 %3275  ;;  %v2731_v43 = vpop.permute.xlu1 %2730 }
 0x97e   :  { %v2758_v20 = vmul.f32 %v2731_v43, %v2722_v45  ;;  %v3299_v24 = vmul.f32 %v3276_v53, %v3263_v23  ;;  %v3138_v53 = vld [vmem:[#allocation3 + $0x19] sm:$0xff] }
 0x980   :  { %v2764_v4 = vadd.f32 %v2758_v20, %v2584_v33  ;;  %v3264_v33 = vld [vmem:[#allocation3 + $0x1a] sm:$0xff] }
 0x981   :  { %v2741_v55 = vpop.permute.xlu2 %2740  ;;  %v3300_v60 = vmul.f32 %v6179_v63, %v3264_v33 }
 0x982   :  { %v2998_v54 = vadd.f32 %v2992_v17, %v2764_v4  ;;  %v2760_v42 = vmul.f32 %v2741_v55, %v2724_v44 }
 0x984   :  { %v3178_v41 = vadd.f32 %v3172_v52, %v2998_v54 }
 0x986   :  { %v3304_v7 = vadd.f32 %v3298_v32, %v3178_v41  ;;  %v2736_v22 = vpop.permute.xlu0 %2735  ;;  %v2545_v41 = vld [vmem:[#allocation3 + $0x1e] sm:$0xff] }
 0x987   :  { %v2556_v21 = vpop.permute.xlu1 %2555  ;;  %v2759_v58 = vmul.f32 %v2736_v22, %v2723_v12 }
 0x988   :  { %v3376_v19 = vadd.f32 %v3370_v49, %v3304_v7  ;;  %v2579_v15 = vmul.f32 %v2556_v21, %v2543_v57  ;;  %v2425_v49 = vld [vmem:[#allocation3 + $0x1d] sm:$0xff] }
 0x989   :  { %v2725_v7 = vld [vmem:[#allocation3 + $0x1f] sm:$0xff]  ;;  %v2461_v63 = vmul.f32 %v6085_v40, %v2425_v49  ;;  %v3266_v49 = vld [vmem:[#allocation3 + $0x2a] sm:$0xff] }
 0x98a   :  { %3382 = vst [vmem:[#allocation4] sm:$0xff] %v3376_v19  ;;  %v2585_v61 = vadd.f32 %v2579_v15, %v2459_v34  ;;  %v2566_v29 = vpop.permute.xlu2 %2565  ;;  %v2959_v57 = vld [vmem:[#allocation3 + $0x20] sm:$0xff] }
 0x98b   :  { %v2581_v2 = vmul.f32 %v2566_v29, %v2545_v41  ;;  %v2546_v40 = vld [vmem:[#allocation3 + $0x26] sm:$0xff] }
 0x98c   :  { %v2765_v10 = vadd.f32 %v2759_v58, %v2585_v61  ;;  %v3139_v61 = vld [vmem:[#allocation3 + $0x21] sm:$0xff] }
 0x98d   :  { %v2587_v21 = vadd.f32 %v2581_v2, %v2461_v63  ;;  %v3267_v2 = vld [vmem:[#allocation3 + $0x32] sm:$0xff] }
 0x98e   :  { %v2999_v1 = vadd.f32 %v2993_v28, %v2765_v10 }
 0x990   :  { %v2561_v35 = vpop.permute.xlu0 %2560  ;;  %v3150_v38 = vpop.permute.xlu1 %3149 }
 0x991   :  { %v3173_v14 = vmul.f32 %v3150_v38, %v3137_v0  ;;  %v2580_v16 = vmul.f32 %v2561_v35, %v2544_v46  ;;  %v3337_v35 = vld [vmem:[#allocation3 + $0x23] sm:$0xff] }
 0x993   :  { %v3179_v48 = vadd.f32 %v3173_v14, %v2999_v1  ;;  %v2586_v56 = vadd.f32 %v2580_v16, %v2460_v26  ;;  %v3160_v30 = vpop.permute.xlu2 %3159  ;;  %v2547_v26 = vld [vmem:[#allocation3 + $0x2e] sm:$0xff] }
 0x994   :  { %v3175_v58 = vmul.f32 %v3160_v30, %v3139_v61  ;;  %v2960_v30 = vld [vmem:[#allocation3 + $0x28] sm:$0xff] }
 0x995   :  { %v3305_v39 = vadd.f32 %v3299_v24, %v3179_v48  ;;  %v2766_v3 = vadd.f32 %v2760_v42, %v2586_v56  ;;  %v2426_v24 = vld [vmem:[#allocation3 + $0x25] sm:$0xff] }
 0x996   :  { %v2462_v47 = vmul.f32 %v6135_v27, %v2426_v24  ;;  %v2727_v27 = vld [vmem:[#allocation3 + $0x2f] sm:$0xff] }
 0x997   :  { %v3377_v9 = vadd.f32 %v3371_v6, %v3305_v39 }
 0x999   :  { %3383 = vst [vmem:[#allocation4 + $0x8] sm:$0xff] %v3377_v9  ;;  %v3155_v18 = vpop.permute.xlu0 %3154  ;;  %v2726_v9 = vld [vmem:[#allocation3 + $0x27] sm:$0xff] }
 0x99a   :  { %v2975_v37 = vpop.permute.xlu1 %2974  ;;  %v3174_v43 = vmul.f32 %v3155_v18, %v3138_v53 }
 0x99b   :  { %v2994_v51 = vmul.f32 %v2975_v37, %v2958_v50  ;;  %v2427_v37 = vld [vmem:[#allocation3 + $0x2d] sm:$0xff] }
 0x99c   :  { %v2980_v59 = vpop.permute.xlu2 %2979  ;;  %v2463_v53 = vmul.f32 %v6150_v13, %v2427_v37  ;;  %v3141_v13 = vld [vmem:[#allocation3 + $0x31] sm:$0xff] }
 0x99d   :  { %v3000_v45 = vadd.f32 %v2994_v51, %v2766_v3  ;;  %v2995_v34 = vmul.f32 %v2980_v59, %v2959_v57 }
 0x99f   :  { %v3180_v20 = vadd.f32 %v3174_v43, %v3000_v45 }
 0x9a1   :  { %v3306_v17 = vadd.f32 %v3300_v60, %v3180_v20 }
 0x9a3   :  { %v3378_v4 = vadd.f32 %v3372_v5, %v3306_v17  ;;  %v2961_v5 = vld [vmem:[#allocation3 + $0x30] sm:$0xff] }
 0x9a4   :  { %v3140_v17 = vld [vmem:[#allocation3 + $0x29] sm:$0xff] }
 0x9a5   :  { %3384 = vst [vmem:[#allocation4 + $0x10] sm:$0xff] %v3378_v4 }
 0x9a8   :  { %v6188_v52 = vpop.permute.xlu2 %3290 }
 0x9a9   :  { %v3286_v54 = vpop.permute.xlu1 %3285  ;;  %v3302_v63 = vmul.f32 %v6188_v52, %v3266_v49 }
 0x9aa   :  { %v3301_v28 = vmul.f32 %v3286_v54, %v3265_v8 }
 0x9b1   :  { %v2751_v36 = vpop.permute.xlu2 %2750 }
 0x9b2   :  { %v2746_v32 = vpop.permute.xlu1 %2745  ;;  %v2762_v50 = vmul.f32 %v2751_v36, %v2726_v9 }
 0x9b3   :  { %v2761_v31 = vmul.f32 %v2746_v32, %v2725_v7 }
 0x9b5   :  { %v2767_v11 = vadd.f32 %v2761_v31, %v2587_v21  ;;  %v3339_v31 = vld [vmem:[#allocation3 + $0x33] sm:$0xff] }
 0x9b7   :  { %v3001_v12 = vadd.f32 %v2995_v34, %v2767_v11  ;;  %v3338_v34 = vld [vmem:[#allocation3 + $0x2b] sm:$0xff] }
 0x9b9   :  { %v3181_v10 = vadd.f32 %v3175_v58, %v3001_v12 }
 0x9ba   :  { %v2576_v55 = vpop.permute.xlu2 %2575 }
 0x9bb   :  { %v2571_v22 = vpop.permute.xlu1 %2570  ;;  %v3307_v38 = vadd.f32 %v3301_v28, %v3181_v10  ;;  %v2583_v44 = vmul.f32 %v2576_v55, %v2547_v26 }
 0x9bc   :  { %v2582_v46 = vmul.f32 %v2571_v22, %v2546_v40 }
 0x9bd   :  { %v2589_v60 = vadd.f32 %v2583_v44, %v2463_v53 }
 0x9be   :  { %v2588_v39 = vadd.f32 %v2582_v46, %v2462_v47 }
 0x9c0   :  { %v2768_v45 = vadd.f32 %v2762_v50, %v2588_v39 }
 0x9c8   :  { %v3170_v19 = vpop.permute.xlu2 %3169 }
 0x9c9   :  { %v3165_v15 = vpop.permute.xlu1 %3164  ;;  %v3177_v36 = vmul.f32 %v3170_v19, %v3141_v13 }
 0x9ca   :  { %v3176_v54 = vmul.f32 %v3165_v15, %v3140_v17 }
 0x9d1   :  { %v3358_v29 = vpop.permute.xlu2 %3357 }
 0x9d2   :  { %v3373_v0 = vmul.f32 %v3358_v29, %v3337_v35  ;;  %v2985_v1 = vpop.permute.xlu1 %2984 }
 0x9d3   :  { %v2996_v51 = vmul.f32 %v2985_v1, %v2960_v30 }
 0x9d4   :  { %v3379_v14 = vadd.f32 %v3373_v0, %v3307_v38 }
 0x9d5   :  { %v3002_v62 = vadd.f32 %v2996_v51, %v2768_v45 }
 0x9d6   :  { %3385 = vst [vmem:[#allocation4 + $0x18] sm:$0xff] %v3379_v14 }
 0x9d7   :  { %v3182_v41 = vadd.f32 %v3176_v54, %v3002_v62 }
 0x9d9   :  { %v3308_v12 = vadd.f32 %v3302_v63, %v3182_v41 }
 0x9db   :  { %v3296_v23 = vpop.permute.xlu1 %3295 }
 0x9dc   :  { %v3303_v7 = vmul.f32 %v3296_v23, %v3267_v2 }
 0x9dd   :  { %v3388_v16 = vld [vmem:[#allocation4] ss:$4 sm:$0xff]  ;;  %v3392_v48 = vld [vmem:[#allocation4 + $0x1] ss:$4 sm:$0xff]  ;;  %v3398_v6 = vld [vmem:[#allocation4 + $0x2] ss:$4 sm:$0xff] }
 0x9de   :  { %v3395_v25 = vadd.f32 %v3392_v48, %v3388_v16  ;;  %v3404_v42 = vld [vmem:[#allocation4 + $0x3] ss:$4 sm:$0xff] }
 0x9e0   :  { %v3401_v56 = vadd.f32 %v3398_v6, %v3395_v25 }
 0x9e1   :  { %v2990_v18 = vpop.permute.xlu0 %2989 }
 0x9e2   :  { %v3407_v3 = vadd.f32 %v3404_v42, %v3401_v56  ;;  %v2997_v4 = vmul.f32 %v2990_v18, %v2961_v5 }
 0x9e4   :  { %v3409_v43 = vmul.f32 0.25, %v3407_v3  ;;  %v2756_v33 = vpop.permute.xlu1 %2755 }
 0x9e5   :  { %v2763_v20 = vmul.f32 %v2756_v33, %v2727_v27 }
 0x9e6   :  { %3411 = vst [vmem:[%s6208_s5] sm:$0x3f] %v3409_v43 }
 0x9e7   :  { %3701 = vst [vmem:[%s6208_s5 + $0x2] sm:$0xc0] %v3409_v43  ;;  %v2769_v59 = vadd.f32 %v2763_v20, %v2589_v60 }
 0x9e9   :  { %v3003_v32 = vadd.f32 %v2997_v4, %v2769_v59 }
 0x9ea   :  { %v3368_v55 = vpop.permute.xlu0 %3367 }
 0x9eb   :  { %v3183_v22 = vadd.f32 %v3177_v36, %v3003_v32  ;;  %v3375_v11 = vmul.f32 %v3368_v55, %v3339_v31 }
 0x9ed   :  { %v3309_v21 = vadd.f32 %v3303_v7, %v3183_v22  ;;  %v3363_v57 = vpop.permute.xlu1 %3362 }
 0x9ee   :  { %v3374_v61 = vmul.f32 %v3363_v57, %v3338_v34 }
 0x9ef   :  { %v3381_v58 = vadd.f32 %v3375_v11, %v3309_v21 }
 0x9f0   :  { %v3380_v10 = vadd.f32 %v3374_v61, %v3308_v12 }
 0x9f1   :  { %3387 = vst [vmem:[#allocation4 + $0x28] sm:$0xff] %v3381_v58 }
 0x9f2   :  { %3386 = vst [vmem:[#allocation4 + $0x20] sm:$0xff] %v3380_v10 }
 0x9f9   :  { %v3390_v19 = vld [vmem:[#allocation4 + $0x20] ss:$4 sm:$0xf]  ;;  %v3394_v15 = vld [vmem:[#allocation4 + $0x21] ss:$4 sm:$0xf] }
 0x9fa   :  { %v3396_v8 = vadd.f32 %v3394_v15, %v3390_v19  ;;  %v3400_v28 = vld [vmem:[#allocation4 + $0x22] ss:$4 sm:$0xf]  ;;  %v3406_v35 = vld [vmem:[#allocation4 + $0x23] ss:$4 sm:$0xf] }
 0x9fc   :  { %v3402_v29 = vadd.f32 %v3400_v28, %v3396_v8 }
 0x9fe   :  { %v3408_v38 = vadd.f32 %v3406_v35, %v3402_v29 }
 0xa00   :  { %v3410_v0 = vmul.f32 0.25, %v3408_v38 }
 0xa02   :  { %3702 = vst [vmem:[%s6208_s5 + $0xa] sm:$0xf] %v3410_v0 }
 0xa03   :  { %3419 = vsyncpa [#allocation7], 1 }

</bundles_post_ra>
